<compile_context>
chip_gen: v5e
topology: v5e:2x2
jax: 0.10.0
libtpu: 0.0.40
codegen_flags: <defaults>
</compile_context>

<pallas_src>
import functools

import jax
import jax.numpy as jnp
from jax.experimental import pallas as pl
from jax.experimental.pallas import tpu as pltpu

C3 = 1024
_EPS = 1e-5


def _round_up(a, m):
    return ((a + m - 1) // m) * m


# ----------------------------------------------------------------------------
# Pallas kernel 1: per-batch running max / min of (x @ A3) over point tiles.
# Grid = (batch, point_tiles);  batch parallel, point axis is the reduction.
# ----------------------------------------------------------------------------
def _maxmin_kernel(x_ref, a_ref, mx_ref, mn_ref, mx_sc, mn_sc, *, k):
    t = pl.program_id(1)

    @pl.when(t == 0)
    def _init():
        mx_sc[...] = jnp.full(mx_sc.shape, -jnp.inf, dtype=jnp.float32)
        mn_sc[...] = jnp.full(mn_sc.shape, jnp.inf, dtype=jnp.float32)

    x = x_ref[0]                                            # (TN, k)

    # x @ A3 as k broadcast-FMAs on the VPU (k is tiny; an MXU matmul with
    # K=k would be lane-sparse and pure waste).
    h = x[:, 0:1] * a_ref[0:1, :]
    for c in range(1, k):
        h = h + x[:, c:c + 1] * a_ref[c:c + 1, :]           # (TN, 1024) f32

    mx_sc[...] = jnp.maximum(mx_sc[...], jnp.max(h, axis=0, keepdims=True))
    mn_sc[...] = jnp.minimum(mn_sc[...], jnp.min(h, axis=0, keepdims=True))

    # Single lane-dense writeback per batch.
    @pl.when(t == pl.num_programs(1) - 1)
    def _finalize():
        mx_ref[0] = mx_sc[...]
        mn_ref[0] = mn_sc[...]


# ----------------------------------------------------------------------------
# Pallas kernel 2: bn3 select + max-pool + fc1..fc3 head (+ identity add).
# Grid-less, fully VMEM resident (rows == batch).
# ----------------------------------------------------------------------------
def _head_kernel(mx_ref, mn_ref, s3_ref, t3_ref,
                 wf1_ref, bf1_ref, g4_ref, be4_ref,
                 wf2_ref, bf2_ref, g5_ref, be5_ref,
                 wf3_ref, bf3_ref, out_ref, *, k):
    s3 = s3_ref[...]                                        # (1, 1024)
    mx = mx_ref[...][:, 0, :]                               # (B, 1024)  max of x@A3
    mn = mn_ref[...][:, 0, :]                               # (B, 1024)  min of x@A3
    # max over points of bn3(h3): pick max/min by the sign of the bn3 scale.
    pooled = jnp.where(s3 >= 0.0, mx, mn) * s3 + t3_ref[...]   # (B, 1024)

    def bn_relu(h, g, b):                                   # training-mode BN over batch
        mu = jnp.mean(h, axis=0, keepdims=True)
        var = jnp.maximum(jnp.mean(h * h, axis=0, keepdims=True) - mu * mu, 0.0)
        return jnp.maximum((h - mu) * jax.lax.rsqrt(var + _EPS) * g + b, 0.0)

    f = jnp.dot(pooled, wf1_ref[...], preferred_element_type=jnp.float32) + bf1_ref[...]
    f = bn_relu(f, g4_ref[...], be4_ref[...])
    f = jnp.dot(f, wf2_ref[...], preferred_element_type=jnp.float32) + bf2_ref[...]
    f = bn_relu(f, g5_ref[...], be5_ref[...])
    f = jnp.dot(f, wf3_ref[...], preferred_element_type=jnp.float32) + bf3_ref[...]

    # Flattened eye(k): position i is 1 iff i < k*k and i % (k+1) == 0.
    lane = jax.lax.broadcasted_iota(jnp.int32, f.shape, 1)
    eye_flat = jnp.where((lane < k * k) & (lane % (k + 1) == 0), 1.0, 0.0)
    out_ref[...] = f + eye_flat


# ----------------------------------------------------------------------------
# Wrapper.
# ----------------------------------------------------------------------------
def tnet_forward(x, params, k=3, point_tile=2048):
    """x: (B, k, N) NCW like nn.Conv1d. Returns (B, k, k)."""
    B, C, N = x.shape
    assert C == k
    f32 = jnp.float32
    x_pts = jnp.transpose(x, (0, 2, 1)).astype(f32)          # (B, N, k)
    M = float(B * N)

    # ---- tiny input moments (plain XLA; x is only B*N*k floats) -----------
    x_flat = x_pts.reshape(B * N, k)
    Sx = jnp.sum(x_flat, axis=0, keepdims=True)               # (1, k)
    Sxx = jnp.matmul(x_flat.T, x_flat)                         # (k, k)

    w1, b1 = params["conv1_w"], params["conv1_b"]
    w2, b2 = params["conv2_w"], params["conv2_b"]
    w3, b3 = params["conv3_w"], params["conv3_b"]

    def bn_affine(A, c, gamma, beta):
        """Exact training-mode BN (biased var) for h = x@A + c from (Sx, Sxx)."""
        sA = Sx @ A                                            # (1, C)
        mu = (sA + M * c) / M
        G = Sxx @ A                                            # (k, C)
        sumsq = jnp.sum(A * G, axis=0, keepdims=True) + 2.0 * c * sA + M * c * c
        var = jnp.maximum(sumsq / M - mu * mu, 0.0)
        s = gamma * jax.lax.rsqrt(var + _EPS)
        t = beta - mu * s
        return s, t

    # Fold bn1/bn2 into downstream conv weights (valid: no ReLU in the trunk).
    s1, t1 = bn_affine(w1, b1, params["bn1_g"], params["bn1_b"])
    A2 = (w1 * s1) @ w2                                        # (k, 128)
    c2 = (b1 * s1 + t1) @ w2 + b2                              # (1, 128)
    s2, t2 = bn_affine(A2, c2, params["bn2_g"], params["bn2_b"])
    A3 = (A2 * s2) @ w3                                        # (k, 1024)
    c3 = (c2 * s2 + t2) @ w3 + b3                              # (1, 1024)
    s3, t3 = bn_affine(A3, c3, params["bn3_g"], params["bn3_b"])
    t3p = c3 * s3 + t3                                         # fold +c3 into bn3 shift

    # ---- the only per-point pass: per-batch max / min of x @ A3 ------------
    TN = _round_up(min(point_tile, _round_up(N, 8)), 8)
    N_pad = _round_up(N, TN)
    T = N_pad // TN
    if N_pad > N:
        # Pad by repeating each batch's first point: max/min are unaffected,
        # so no in-kernel masking is needed (moments above use the real N).
        pad = jnp.broadcast_to(x_pts[:, :1, :], (B, N_pad - N, k))
        x_pts = jnp.concatenate([x_pts, pad], axis=1)

    mx3, mn3 = pl.pallas_call(
        functools.partial(_maxmin_kernel, k=k),
        grid=(B, T),
        in_specs=[pl.BlockSpec((1, TN, k), lambda b, t: (b, t, 0)),
                  pl.BlockSpec((k, C3), lambda b, t: (0, 0))],   # A3 VMEM resident
        out_specs=(pl.BlockSpec((1, 1, C3), lambda b, t: (b, 0, 0)),
                   pl.BlockSpec((1, 1, C3), lambda b, t: (b, 0, 0))),
        out_shape=(jax.ShapeDtypeStruct((B, 1, C3), f32),
                   jax.ShapeDtypeStruct((B, 1, C3), f32)),
        scratch_shapes=[pltpu.VMEM((1, C3), f32),
                        pltpu.VMEM((1, C3), f32)],
        compiler_params=pltpu.CompilerParams(
            dimension_semantics=("parallel", "arbitrary"),
            vmem_limit_bytes=48 << 20),                       # < v7x 64 MiB physical
    )(x_pts, A3)

    # ---- FC head ------------------------------------------------------------
    kk = k * k
    kk_pad = max(128, _round_up(kk, 128))                     # lane-dense output
    wf3 = jnp.pad(params["fc3_w"], ((0, 0), (0, kk_pad - kk)))
    bf3 = jnp.pad(params["fc3_b"], ((0, 0), (0, kk_pad - kk)))

    head_inputs = [mx3, mn3, s3, t3p,
                   params["fc1_w"], params["fc1_b"],
                   params["bn4_g"], params["bn4_b"],
                   params["fc2_w"], params["fc2_b"],
                   params["bn5_g"], params["bn5_b"],
                   wf3, bf3]
    out_pad = pl.pallas_call(
        functools.partial(_head_kernel, k=k),
        out_shape=jax.ShapeDtypeStruct((B, kk_pad), f32),
        in_specs=[pl.BlockSpec(memory_space=pltpu.MemorySpace.VMEM)] * len(head_inputs),
        out_specs=pl.BlockSpec(memory_space=pltpu.MemorySpace.VMEM),
    )(*head_inputs)

    return out_pad[:, :kk].reshape(B, k, k)


# ----------------------------------------------------------------------------
# Deterministic parameter construction (PyTorch-style default init).
# ----------------------------------------------------------------------------
def init_tnet_params(key, k=3):
    dims = [("conv1", k, 64), ("conv2", 64, 128), ("conv3", 128, 1024),
            ("fc1", 1024, 512), ("fc2", 512, 256), ("fc3", 256, k * k)]
    params = {}
    keys = jax.random.split(key, 2 * len(dims))
    for i, (name, fan_in, fan_out) in enumerate(dims):
        wkey, bkey = keys[2 * i], keys[2 * i + 1]
        bound = 1.0 / jnp.sqrt(float(fan_in))
        # stored as (in, out) so everything computes h @ W + b
        params[name + "_w"] = jax.random.uniform(
            wkey, (fan_in, fan_out), jnp.float32, -bound, bound)
        params[name + "_b"] = jax.random.uniform(
            bkey, (1, fan_out), jnp.float32, -bound, bound)
    for name, c in [("bn1", 64), ("bn2", 128), ("bn3", 1024),
                    ("bn4", 512), ("bn5", 256)]:
        params[name + "_g"] = jnp.ones((1, c), jnp.float32)
        params[name + "_b"] = jnp.zeros((1, c), jnp.float32)
    return params


if __name__ == "__main__":
    key = jax.random.PRNGKey(0)
    pkey, xkey = jax.random.split(key)

    k = 3        # TNet(k=3)
    B = 2        # batch
    N = 50       # points; not a multiple of 8 -> exercises padded point-tile path

    params = init_tnet_params(pkey, k=k)
    x = jax.random.normal(xkey, (B, k, N), jnp.float32)      # NCW, like Conv1d

    # small point_tile so the demo runs several point tiles per batch
    fwd = jax.jit(functools.partial(tnet_forward, k=k, point_tile=16))
    out = jax.block_until_ready(fwd(x, params))

    assert out.shape == (B, k, k), out.shape
    assert bool(jnp.all(jnp.isfinite(out)))
    print("KERNEL_OK")
</pallas_src>

<mosaic_0001>
module attributes {stable_mosaic.version = 11 : i64} {
  func.func @_maxmin_kernel(%arg0: i32, %arg1: i32, %arg2: memref<1x16x3xf32, #tpu.memory_space<vmem>>, %arg3: memref<3x1024xf32, #tpu.memory_space<vmem>>, %arg4: memref<1x1x1024xf32, #tpu.memory_space<vmem>>, %arg5: memref<1x1x1024xf32, #tpu.memory_space<vmem>>, %arg6: memref<1x1024xf32, #tpu.memory_space<vmem>>, %arg7: memref<1x1024xf32, #tpu.memory_space<vmem>>) attributes {dimension_semantics = [#tpu.dimension_semantics<parallel>, #tpu.dimension_semantics<arbitrary>], iteration_bounds = array<i64: 2, 4>, scalar_prefetch = 0 : i64, scratch_operands = 2 : i64, tpu.core_type = #tpu.core_type<tc>, window_params = [{transform_indices = @transform_0, window_bounds = array<i64: 1, 16, 3>}, {pipeline_mode = #tpu.pipeline_mode<synchronous>, transform_indices = @transform_1, window_bounds = array<i64: 3, 1024>}, {transform_indices = @transform_2, window_bounds = array<i64: 1, 1, 1024>}, {transform_indices = @transform_3, window_bounds = array<i64: 1, 1, 1024>}]} {
    %c0_i32 = arith.constant 0 : i32
    %0 = arith.cmpi eq, %arg1, %c0_i32 : i32
    %1 = arith.extui %0 : i1 to i32
    %c0_i32_0 = arith.constant 0 : i32
    %2 = arith.cmpi ne, %1, %c0_i32_0 : i32
    scf.if %2 {
      %cst_17 = arith.constant 0xFF800000 : f32
      %35 = vector.broadcast %cst_17 : f32 to vector<1x1024xf32>
      %c0_18 = arith.constant 0 : index
      %c0_19 = arith.constant 0 : index
      %36 = vector.load %arg6[%c0_18, %c0_19] : memref<1x1024xf32, #tpu.memory_space<vmem>>, vector<1x1024xf32>
      tpu.vector_store %arg6[%c0_18, %c0_19], %35 {strides = array<i32>} : memref<1x1024xf32, #tpu.memory_space<vmem>>, vector<1x1024xf32>,
      %cst_20 = arith.constant 0x7F800000 : f32
      %37 = vector.broadcast %cst_20 : f32 to vector<1x1024xf32>
      %c0_21 = arith.constant 0 : index
      %c0_22 = arith.constant 0 : index
      %38 = vector.load %arg7[%c0_21, %c0_22] : memref<1x1024xf32, #tpu.memory_space<vmem>>, vector<1x1024xf32>
      tpu.vector_store %arg7[%c0_21, %c0_22], %37 {strides = array<i32>} : memref<1x1024xf32, #tpu.memory_space<vmem>>, vector<1x1024xf32>,
    } else {
    }
    %c0 = arith.constant 0 : index
    %c0_1 = arith.constant 0 : index
    %c0_2 = arith.constant 0 : index
    %3 = vector.load %arg2[%c0, %c0_1, %c0_2] : memref<1x16x3xf32, #tpu.memory_space<vmem>>, vector<1x16x3xf32>
    %4 = vector.shape_cast %3 : vector<1x16x3xf32> to vector<16x3xf32>
    %5 = vector.extract_strided_slice %4 {offsets = [0, 0], sizes = [16, 1], strides = [1, 1]} : vector<16x3xf32> to vector<16x1xf32>
    %c0_3 = arith.constant 0 : index
    %c0_4 = arith.constant 0 : index
    %6 = vector.load %arg3[%c0_3, %c0_4] : memref<3x1024xf32, #tpu.memory_space<vmem>>, vector<1x1024xf32>
    %7 = vector.broadcast %5 : vector<16x1xf32> to vector<16x1024xf32>
    %8 = vector.broadcast %6 : vector<1x1024xf32> to vector<16x1024xf32>
    %9 = arith.mulf %7, %8 : vector<16x1024xf32>
    %10 = vector.extract_strided_slice %4 {offsets = [0, 1], sizes = [16, 1], strides = [1, 1]} : vector<16x3xf32> to vector<16x1xf32>
    %c1 = arith.constant 1 : index
    %c0_5 = arith.constant 0 : index
    %11 = vector.load %arg3[%c1, %c0_5] : memref<3x1024xf32, #tpu.memory_space<vmem>>, vector<1x1024xf32>
    %12 = vector.broadcast %10 : vector<16x1xf32> to vector<16x1024xf32>
    %13 = vector.broadcast %11 : vector<1x1024xf32> to vector<16x1024xf32>
    %14 = arith.mulf %12, %13 : vector<16x1024xf32>
    %15 = arith.addf %9, %14 : vector<16x1024xf32>
    %16 = vector.extract_strided_slice %4 {offsets = [0, 2], sizes = [16, 1], strides = [1, 1]} : vector<16x3xf32> to vector<16x1xf32>
    %c2 = arith.constant 2 : index
    %c0_6 = arith.constant 0 : index
    %17 = vector.load %arg3[%c2, %c0_6] : memref<3x1024xf32, #tpu.memory_space<vmem>>, vector<1x1024xf32>
    %18 = vector.broadcast %16 : vector<16x1xf32> to vector<16x1024xf32>
    %19 = vector.broadcast %17 : vector<1x1024xf32> to vector<16x1024xf32>
    %20 = arith.mulf %18, %19 : vector<16x1024xf32>
    %21 = arith.addf %15, %20 : vector<16x1024xf32>
    %c0_7 = arith.constant 0 : index
    %c0_8 = arith.constant 0 : index
    %22 = vector.load %arg6[%c0_7, %c0_8] : memref<1x1024xf32, #tpu.memory_space<vmem>>, vector<1x1024xf32>
    %cst = arith.constant dense<0xFF800000> : vector<1024xf32>
    %23 = vector.multi_reduction <maximumf>, %21, %cst [0] : vector<16x1024xf32> to vector<1024xf32>
    %24 = vector.shape_cast %23 : vector<1024xf32> to vector<1x1024xf32>
    %25 = arith.maximumf %22, %24 : vector<1x1024xf32>
    %c0_9 = arith.constant 0 : index
    %c0_10 = arith.constant 0 : index
    %26 = vector.load %arg6[%c0_9, %c0_10] : memref<1x1024xf32, #tpu.memory_space<vmem>>, vector<1x1024xf32>
    tpu.vector_store %arg6[%c0_9, %c0_10], %25 {strides = array<i32>} : memref<1x1024xf32, #tpu.memory_space<vmem>>, vector<1x1024xf32>,
    %c0_11 = arith.constant 0 : index
    %c0_12 = arith.constant 0 : index
    %27 = vector.load %arg7[%c0_11, %c0_12] : memref<1x1024xf32, #tpu.memory_space<vmem>>, vector<1x1024xf32>
    %cst_13 = arith.constant dense<0x7F800000> : vector<1024xf32>
    %28 = vector.multi_reduction <minimumf>, %21, %cst_13 [0] : vector<16x1024xf32> to vector<1024xf32>
    %29 = vector.shape_cast %28 : vector<1024xf32> to vector<1x1024xf32>
    %30 = arith.minimumf %27, %29 : vector<1x1024xf32>
    %c0_14 = arith.constant 0 : index
    %c0_15 = arith.constant 0 : index
    %31 = vector.load %arg7[%c0_14, %c0_15] : memref<1x1024xf32, #tpu.memory_space<vmem>>, vector<1x1024xf32>
    tpu.vector_store %arg7[%c0_14, %c0_15], %30 {strides = array<i32>} : memref<1x1024xf32, #tpu.memory_space<vmem>>, vector<1x1024xf32>,
    %c3_i32 = arith.constant 3 : i32
    %32 = arith.cmpi eq, %arg1, %c3_i32 : i32
    %33 = arith.extui %32 : i1 to i32
    %c0_i32_16 = arith.constant 0 : i32
    %34 = arith.cmpi ne, %33, %c0_i32_16 : i32
    scf.if %34 {
      %c0_17 = arith.constant 0 : index
      %c0_18 = arith.constant 0 : index
      %35 = vector.load %arg6[%c0_17, %c0_18] : memref<1x1024xf32, #tpu.memory_space<vmem>>, vector<1x1024xf32>
      %c0_19 = arith.constant 0 : index
      %c0_20 = arith.constant 0 : index
      %c0_21 = arith.constant 0 : index
      %36 = vector.load %arg4[%c0_19, %c0_20, %c0_21] : memref<1x1x1024xf32, #tpu.memory_space<vmem>>, vector<1x1x1024xf32>
      %37 = vector.shape_cast %36 : vector<1x1x1024xf32> to vector<1x1024xf32>
      %38 = vector.shape_cast %35 : vector<1x1024xf32> to vector<1x1x1024xf32>
      tpu.vector_store %arg4[%c0_19, %c0_20, %c0_21], %38 {strides = array<i32>} : memref<1x1x1024xf32, #tpu.memory_space<vmem>>, vector<1x1x1024xf32>,
      %c0_22 = arith.constant 0 : index
      %c0_23 = arith.constant 0 : index
      %39 = vector.load %arg7[%c0_22, %c0_23] : memref<1x1024xf32, #tpu.memory_space<vmem>>, vector<1x1024xf32>
      %c0_24 = arith.constant 0 : index
      %c0_25 = arith.constant 0 : index
      %c0_26 = arith.constant 0 : index
      %40 = vector.load %arg5[%c0_24, %c0_25, %c0_26] : memref<1x1x1024xf32, #tpu.memory_space<vmem>>, vector<1x1x1024xf32>
      %41 = vector.shape_cast %40 : vector<1x1x1024xf32> to vector<1x1024xf32>
      %42 = vector.shape_cast %39 : vector<1x1024xf32> to vector<1x1x1024xf32>
      tpu.vector_store %arg5[%c0_24, %c0_25, %c0_26], %42 {strides = array<i32>} : memref<1x1x1024xf32, #tpu.memory_space<vmem>>, vector<1x1x1024xf32>,
    } else {
    }
    return
  }
  func.func @transform_0(%arg0: i32, %arg1: i32) -> (i32, i32, i32) {
    %c0_i32 = arith.constant 0 : i32
    %c0_i32_0 = arith.constant 0 : i32
    return %arg0, %arg1, %c0_i32 : i32, i32, i32
  }
  func.func @transform_1(%arg0: i32, %arg1: i32) -> (i32, i32) {
    %c0_i32 = arith.constant 0 : i32
    %c0_i32_0 = arith.constant 0 : i32
    %c0_i32_1 = arith.constant 0 : i32
    return %c0_i32, %c0_i32_0 : i32, i32
  }
  func.func @transform_2(%arg0: i32, %arg1: i32) -> (i32, i32, i32) {
    %c0_i32 = arith.constant 0 : i32
    %c0_i32_0 = arith.constant 0 : i32
    %c0_i32_1 = arith.constant 0 : i32
    return %arg0, %c0_i32, %c0_i32_0 : i32, i32, i32
  }
  func.func @transform_3(%arg0: i32, %arg1: i32) -> (i32, i32, i32) {
    %c0_i32 = arith.constant 0 : i32
    %c0_i32_0 = arith.constant 0 : i32
    %c0_i32_1 = arith.constant 0 : i32
    return %arg0, %c0_i32, %c0_i32_0 : i32, i32, i32
  }
}

module attributes {stable_mosaic.version = 11 : i64} {
  func.func @_head_kernel(%arg0: memref<2x1x1024xf32, #tpu.memory_space<vmem>>, %arg1: memref<2x1x1024xf32, #tpu.memory_space<vmem>>, %arg2: memref<1x1024xf32, #tpu.memory_space<vmem>>, %arg3: memref<1x1024xf32, #tpu.memory_space<vmem>>, %arg4: memref<1024x512xf32, #tpu.memory_space<vmem>>, %arg5: memref<1x512xf32, #tpu.memory_space<vmem>>, %arg6: memref<1x512xf32, #tpu.memory_space<vmem>>, %arg7: memref<1x512xf32, #tpu.memory_space<vmem>>, %arg8: memref<512x256xf32, #tpu.memory_space<vmem>>, %arg9: memref<1x256xf32, #tpu.memory_space<vmem>>, %arg10: memref<1x256xf32, #tpu.memory_space<vmem>>, %arg11: memref<1x256xf32, #tpu.memory_space<vmem>>, %arg12: memref<256x128xf32, #tpu.memory_space<vmem>>, %arg13: memref<1x128xf32, #tpu.memory_space<vmem>>, %arg14: memref<2x128xf32, #tpu.memory_space<vmem>>) attributes {dimension_semantics = [], scalar_prefetch = 0 : i64, scratch_operands = 0 : i64, tpu.core_type = #tpu.core_type<tc>} {
    %c0 = arith.constant 0 : index
    %c0_0 = arith.constant 0 : index
    %0 = vector.load %arg2[%c0, %c0_0] : memref<1x1024xf32, #tpu.memory_space<vmem>>, vector<1x1024xf32>
    %c0_1 = arith.constant 0 : index
    %c0_2 = arith.constant 0 : index
    %c0_3 = arith.constant 0 : index
    %1 = vector.load %arg0[%c0_1, %c0_2, %c0_3] : memref<2x1x1024xf32, #tpu.memory_space<vmem>>, vector<2x1x1024xf32>
    %2 = vector.shape_cast %1 : vector<2x1x1024xf32> to vector<2x1024xf32>
    %c0_4 = arith.constant 0 : index
    %c0_5 = arith.constant 0 : index
    %c0_6 = arith.constant 0 : index
    %3 = vector.load %arg1[%c0_4, %c0_5, %c0_6] : memref<2x1x1024xf32, #tpu.memory_space<vmem>>, vector<2x1x1024xf32>
    %4 = vector.shape_cast %3 : vector<2x1x1024xf32> to vector<2x1024xf32>
    %cst = arith.constant 0.000000e+00 : f32
    %5 = vector.broadcast %cst : f32 to vector<1x1024xf32>
    %6 = arith.cmpf oge, %0, %5 : vector<1x1024xf32>
    %7 = vector.shape_cast %6 : vector<1x1024xi1> to vector<1x1024xi1>
    %8 = vector.broadcast %7 : vector<1x1024xi1> to vector<2x1024xi1>
    %9 = arith.select %8, %2, %4 : vector<2x1024xi1>, vector<2x1024xf32>
    %10 = vector.broadcast %0 : vector<1x1024xf32> to vector<2x1024xf32>
    %11 = arith.mulf %9, %10 : vector<2x1024xf32>
    %c0_7 = arith.constant 0 : index
    %c0_8 = arith.constant 0 : index
    %12 = vector.load %arg3[%c0_7, %c0_8] : memref<1x1024xf32, #tpu.memory_space<vmem>>, vector<1x1024xf32>
    %13 = vector.broadcast %12 : vector<1x1024xf32> to vector<2x1024xf32>
    %14 = arith.addf %11, %13 : vector<2x1024xf32>
    %c0_9 = arith.constant 0 : index
    %c0_10 = arith.constant 0 : index
    %15 = vector.load %arg4[%c0_9, %c0_10] : memref<1024x512xf32, #tpu.memory_space<vmem>>, vector<1024x512xf32>
    %cst_11 = arith.constant dense<0.000000e+00> : vector<2x512xf32>
    %16 = tpu.matmul %14, %15, %cst_11 {dimension_numbers = #tpu.dot_dimension_numbers<[1], [0], [0], [1], [0, 0, 1, 1], [], []>} : vector<2x1024xf32>, vector<1024x512xf32>, vector<2x512xf32> -> vector<2x512xf32>
    %c0_12 = arith.constant 0 : index
    %c0_13 = arith.constant 0 : index
    %17 = vector.load %arg5[%c0_12, %c0_13] : memref<1x512xf32, #tpu.memory_space<vmem>>, vector<1x512xf32>
    %18 = vector.broadcast %17 : vector<1x512xf32> to vector<2x512xf32>
    %19 = arith.addf %16, %18 : vector<2x512xf32>
    %c0_14 = arith.constant 0 : index
    %c0_15 = arith.constant 0 : index
    %20 = vector.load %arg6[%c0_14, %c0_15] : memref<1x512xf32, #tpu.memory_space<vmem>>, vector<1x512xf32>
    %c0_16 = arith.constant 0 : index
    %c0_17 = arith.constant 0 : index
    %21 = vector.load %arg7[%c0_16, %c0_17] : memref<1x512xf32, #tpu.memory_space<vmem>>, vector<1x512xf32>
    %cst_18 = arith.constant dense<0.000000e+00> : vector<512xf32>
    %22 = vector.multi_reduction <add>, %19, %cst_18 [0] : vector<2x512xf32> to vector<512xf32>
    %23 = vector.shape_cast %22 : vector<512xf32> to vector<1x512xf32>
    %cst_19 = arith.constant 2.000000e+00 : f32
    %24 = vector.broadcast %cst_19 : f32 to vector<1x512xf32>
    %25 = arith.divf %23, %24 : vector<1x512xf32>
    %26 = arith.mulf %19, %19 : vector<2x512xf32>
    %cst_20 = arith.constant dense<0.000000e+00> : vector<512xf32>
    %27 = vector.multi_reduction <add>, %26, %cst_20 [0] : vector<2x512xf32> to vector<512xf32>
    %28 = vector.shape_cast %27 : vector<512xf32> to vector<1x512xf32>
    %cst_21 = arith.constant 2.000000e+00 : f32
    %29 = vector.broadcast %cst_21 : f32 to vector<1x512xf32>
    %30 = arith.divf %28, %29 : vector<1x512xf32>
    %31 = arith.mulf %25, %25 : vector<1x512xf32>
    %32 = arith.subf %30, %31 : vector<1x512xf32>
    %cst_22 = arith.constant 0.000000e+00 : f32
    %33 = vector.broadcast %cst_22 : f32 to vector<1x512xf32>
    %34 = arith.maximumf %32, %33 : vector<1x512xf32>
    %35 = vector.broadcast %25 : vector<1x512xf32> to vector<2x512xf32>
    %36 = arith.subf %19, %35 : vector<2x512xf32>
    %cst_23 = arith.constant 9.99999974E-6 : f32
    %37 = vector.broadcast %cst_23 : f32 to vector<1x512xf32>
    %38 = arith.addf %34, %37 : vector<1x512xf32>
    %39 = math.rsqrt %38 : vector<1x512xf32>
    %40 = vector.broadcast %39 : vector<1x512xf32> to vector<2x512xf32>
    %41 = arith.mulf %36, %40 : vector<2x512xf32>
    %42 = vector.broadcast %20 : vector<1x512xf32> to vector<2x512xf32>
    %43 = arith.mulf %41, %42 : vector<2x512xf32>
    %44 = vector.broadcast %21 : vector<1x512xf32> to vector<2x512xf32>
    %45 = arith.addf %43, %44 : vector<2x512xf32>
    %cst_24 = arith.constant 0.000000e+00 : f32
    %46 = vector.broadcast %cst_24 : f32 to vector<2x512xf32>
    %47 = arith.maximumf %45, %46 : vector<2x512xf32>
    %c0_25 = arith.constant 0 : index
    %c0_26 = arith.constant 0 : index
    %48 = vector.load %arg8[%c0_25, %c0_26] : memref<512x256xf32, #tpu.memory_space<vmem>>, vector<512x256xf32>
    %cst_27 = arith.constant dense<0.000000e+00> : vector<2x256xf32>
    %49 = tpu.matmul %47, %48, %cst_27 {dimension_numbers = #tpu.dot_dimension_numbers<[1], [0], [0], [1], [0, 0, 1, 1], [], []>} : vector<2x512xf32>, vector<512x256xf32>, vector<2x256xf32> -> vector<2x256xf32>
    %c0_28 = arith.constant 0 : index
    %c0_29 = arith.constant 0 : index
    %50 = vector.load %arg9[%c0_28, %c0_29] : memref<1x256xf32, #tpu.memory_space<vmem>>, vector<1x256xf32>
    %51 = vector.broadcast %50 : vector<1x256xf32> to vector<2x256xf32>
    %52 = arith.addf %49, %51 : vector<2x256xf32>
    %c0_30 = arith.constant 0 : index
    %c0_31 = arith.constant 0 : index
    %53 = vector.load %arg10[%c0_30, %c0_31] : memref<1x256xf32, #tpu.memory_space<vmem>>, vector<1x256xf32>
    %c0_32 = arith.constant 0 : index
    %c0_33 = arith.constant 0 : index
    %54 = vector.load %arg11[%c0_32, %c0_33] : memref<1x256xf32, #tpu.memory_space<vmem>>, vector<1x256xf32>
    %cst_34 = arith.constant dense<0.000000e+00> : vector<256xf32>
    %55 = vector.multi_reduction <add>, %52, %cst_34 [0] : vector<2x256xf32> to vector<256xf32>
    %56 = vector.shape_cast %55 : vector<256xf32> to vector<1x256xf32>
    %cst_35 = arith.constant 2.000000e+00 : f32
    %57 = vector.broadcast %cst_35 : f32 to vector<1x256xf32>
    %58 = arith.divf %56, %57 : vector<1x256xf32>
    %59 = arith.mulf %52, %52 : vector<2x256xf32>
    %cst_36 = arith.constant dense<0.000000e+00> : vector<256xf32>
    %60 = vector.multi_reduction <add>, %59, %cst_36 [0] : vector<2x256xf32> to vector<256xf32>
    %61 = vector.shape_cast %60 : vector<256xf32> to vector<1x256xf32>
    %cst_37 = arith.constant 2.000000e+00 : f32
    %62 = vector.broadcast %cst_37 : f32 to vector<1x256xf32>
    %63 = arith.divf %61, %62 : vector<1x256xf32>
    %64 = arith.mulf %58, %58 : vector<1x256xf32>
    %65 = arith.subf %63, %64 : vector<1x256xf32>
    %cst_38 = arith.constant 0.000000e+00 : f32
    %66 = vector.broadcast %cst_38 : f32 to vector<1x256xf32>
    %67 = arith.maximumf %65, %66 : vector<1x256xf32>
    %68 = vector.broadcast %58 : vector<1x256xf32> to vector<2x256xf32>
    %69 = arith.subf %52, %68 : vector<2x256xf32>
    %cst_39 = arith.constant 9.99999974E-6 : f32
    %70 = vector.broadcast %cst_39 : f32 to vector<1x256xf32>
    %71 = arith.addf %67, %70 : vector<1x256xf32>
    %72 = math.rsqrt %71 : vector<1x256xf32>
    %73 = vector.broadcast %72 : vector<1x256xf32> to vector<2x256xf32>
    %74 = arith.mulf %69, %73 : vector<2x256xf32>
    %75 = vector.broadcast %53 : vector<1x256xf32> to vector<2x256xf32>
    %76 = arith.mulf %74, %75 : vector<2x256xf32>
    %77 = vector.broadcast %54 : vector<1x256xf32> to vector<2x256xf32>
    %78 = arith.addf %76, %77 : vector<2x256xf32>
    %cst_40 = arith.constant 0.000000e+00 : f32
    %79 = vector.broadcast %cst_40 : f32 to vector<2x256xf32>
    %80 = arith.maximumf %78, %79 : vector<2x256xf32>
    %c0_41 = arith.constant 0 : index
    %c0_42 = arith.constant 0 : index
    %81 = vector.load %arg12[%c0_41, %c0_42] : memref<256x128xf32, #tpu.memory_space<vmem>>, vector<256x128xf32>
    %cst_43 = arith.constant dense<0.000000e+00> : vector<2x128xf32>
    %82 = tpu.matmul %80, %81, %cst_43 {dimension_numbers = #tpu.dot_dimension_numbers<[1], [0], [0], [1], [0, 0, 1, 1], [], []>} : vector<2x256xf32>, vector<256x128xf32>, vector<2x128xf32> -> vector<2x128xf32>
    %c0_44 = arith.constant 0 : index
    %c0_45 = arith.constant 0 : index
    %83 = vector.load %arg13[%c0_44, %c0_45] : memref<1x128xf32, #tpu.memory_space<vmem>>, vector<1x128xf32>
    %84 = vector.broadcast %83 : vector<1x128xf32> to vector<2x128xf32>
    %85 = arith.addf %82, %84 : vector<2x128xf32>
    %86 = tpu.iota {dimensions = array<i32: 1>} : vector<2x128xi32>
    %c9_i32 = arith.constant 9 : i32
    %87 = vector.broadcast %c9_i32 : i32 to vector<2x128xi32>
    %88 = arith.cmpi slt, %86, %87 : vector<2x128xi32>
    %c4_i32 = arith.constant 4 : i32
    %c0_i32 = arith.constant 0 : i32
    %89 = arith.cmpi eq, %c4_i32, %c0_i32 : i32
    %c1_i32 = arith.constant 1 : i32
    %90 = arith.select %89, %c1_i32, %c4_i32 : i32
    %91 = vector.broadcast %90 : i32 to vector<2x128xi32>
    %92 = arith.remsi %86, %91 : vector<2x128xi32>
    %c0_i32_46 = arith.constant 0 : i32
    %93 = vector.broadcast %c0_i32_46 : i32 to vector<2x128xi32>
    %94 = arith.cmpi ne, %92, %93 : vector<2x128xi32>
    %c0_i32_47 = arith.constant 0 : i32
    %95 = vector.broadcast %c0_i32_47 : i32 to vector<2x128xi32>
    %96 = arith.cmpi slt, %92, %95 : vector<2x128xi32>
    %c0_i32_48 = arith.constant 0 : i32
    %97 = arith.cmpi slt, %90, %c0_i32_48 : i32
    %98 = vector.broadcast %97 : i1 to vector<2x128xi1>
    %99 = vector.broadcast %98 : vector<2x128xi1> to vector<2x128xi1>
    %100 = arith.xori %96, %99 : vector<2x128xi1>
    %101 = arith.andi %100, %94 : vector<2x128xi1>
    %102 = vector.broadcast %90 : i32 to vector<2x128xi32>
    %103 = arith.addi %92, %102 : vector<2x128xi32>
    %104 = arith.select %101, %103, %92 : vector<2x128xi1>, vector<2x128xi32>
    %c0_i32_49 = arith.constant 0 : i32
    %105 = vector.broadcast %c0_i32_49 : i32 to vector<2x128xi32>
    %106 = arith.cmpi eq, %104, %105 : vector<2x128xi32>
    %107 = arith.andi %88, %106 : vector<2x128xi1>
    %cst_50 = arith.constant 1.000000e+00 : f32
    %cst_51 = arith.constant 0.000000e+00 : f32
    %108 = vector.broadcast %cst_50 : f32 to vector<2x128xf32>
    %109 = vector.broadcast %cst_51 : f32 to vector<2x128xf32>
    %110 = arith.select %107, %108, %109 : vector<2x128xi1>, vector<2x128xf32>
    %111 = arith.addf %85, %110 : vector<2x128xf32>
    %c0_52 = arith.constant 0 : index
    %c0_53 = arith.constant 0 : index
    %112 = vector.load %arg14[%c0_52, %c0_53] : memref<2x128xf32, #tpu.memory_space<vmem>>, vector<2x128xf32>
    tpu.vector_store %arg14[%c0_52, %c0_53], %111 {strides = array<i32>} : memref<2x128xf32, #tpu.memory_space<vmem>>, vector<2x128xf32>,
    return
  }
}

</mosaic_0001>

<bundles_post_ra>
// kernel: tnet_forward.2
= control target key start
LH: loop header
LB: loop body
LE: loop exit
PB: predicated region body
PF: predicated region fallthrough
CT: control target
= control target key end

     0   :  { %s788_s12 = smov 0   ;;  %s790_s13 = smov 0   ;;  %s1057_s0 = inlined_call_operand.vmem [shape: f32[2,64,3], index: 0, kind: input, shape index: {}]   ;;  %s1058_s1 = inlined_call_operand.vmem [shape: f32[3,1024], index: 1, kind: input, shape index: {}]   ;;  %s1059_s2 = inlined_call_operand.vmem [shape: f32[2,1,1024], index: 2, kind: output, shape index: {0}]   ;;  %s1060_s3 = inlined_call_operand.vmem [shape: f32[2,1,1024], index: 3, kind: output, shape index: {1}]  }
   0x1   :  { %s792_s14 = smov 0   ;;  %s794_s15 = smov 0  }
   0x2   :  { %s796_s16 = smov 0  }
   0x3 LB: > { %s23_s17 = sadd.s32 1, %s753_s14  ;;  %s26_s18 = sadd.s32 1, %s757_s15  ;;  %s761_s16 = sphi %s796_s16, %s14_s16   ;;  %s757_s15 = sphi %s794_s15, %s1066_s15   ;;  %s753_s14 = sphi %s792_s14, %s1065_s14   ;;  %s749_s13 = sphi %s790_s13, %s1064_s13   ;;  %s745_s12 = sphi %s788_s12, %s1063_s12  }
   0x4   : > { %p24_p0 = scmp.ge.s32.totalorder %s23_s17, 4  ;;  %p662_p1 = scmp.ge.s32.totalorder %s761_s16, 1 }
   0x5   : > { %p159_p2 = scmp.lt.s32.totalorder %s761_s16, 9 }
   0x6   : > { %s1068_s17 = smov (%p24_p0, %s23_s17), 0  ;;  %s1070_s18 = smov (!%p24_p0, %s26_s18), %s757_s15 }
   0x7   : > { %p160_p3 = pnand %p662_p1, %p159_p2  ;;  %p28_p4 = scmp.ge.s32.totalorder %s1070_s18, 2 }
   0x8   : > { %s663_s19 = sshll.u32 (!%p160_p3), %s745_s12, 1  ;;  %p191_p5 = scmp.lt.s32.totalorder (!%p160_p3), %s749_s13, 1 }
   0x9   : > { %s1072_s18 = smov (%p28_p4, %s1070_s18), 0  ;;  %163 = sbr.rel (%p160_p3) target bundleno = 208 (0xd0), region = 28 }
   0xa   : > { %p193_p6 = scmp.lt.s32.totalorder (!%p160_p3), %s663_s19, 7  ;;  %p668_p7 = scmp.ne.s32.totalorder (!%p160_p3), %s745_s12, 0 }
   0xe   : > { %s1074_s13 = smov (!%p191_p5, %s749_s13), 1  ;;  %s1076_s19 = smov (!%p193_p6, %s663_s19), 7 }
   0xf   : > { %s821_s20 = sshll.u32 %s1074_s13, 3  ;;  %211 = sbr.rel (%p668_p7) target bundleno = 23 (0x17), region = 32 }
  0x10   : > { %s196_s21 = sadd.s32 %s821_s20, %s1076_s19  ;;  %s203_s24 = scalar_lea.vmem %s1059_s2, %s821_s20 }
  0x11   : > { %s665_s25 = sshll.u32 %s196_s21, 3  ;;  %s207_s28 = scalar_lea.vmem %s1060_s3, %s821_s20 }
  0x12   : > { %s198_s4 = scalar_lea.vmem %s1057_s0, %s665_s25 }
  0x14   : > { %v763_v0 = vmov -inf   ;;  %v764_v1 = vmov inf  }
  0x15   : > { %212 = vst [vmem:[#allocation2] sm:$0xff] %v763_v0 }
  0x16   : > { %213 = vst [vmem:[#allocation3] sm:$0xff] %v764_v1 }
  0x17 PF: > { %v214_v2 = vld [vmem:[%s198_s4] sm:$0xff]  ;;  %v765_v3 = vmov 1   ;;  %v766_v4 = vmov 0   ;;  %v767_v5 = vmov 2   ;;  %v215_v6 = vld [vmem:[%s198_s4 + $0x8] sm:$0xff]  ;;  %vm450_vm0 = vcmask 1040384  }
  0x18   : > { %720 = vset.pattern.permute.xlu1 %v765_v3  ;;  %719 = vset.pattern.permute.xlu0 %v766_v4  ;;  %v839_v8 = vld [vmem:[%s1058_s1 + $0x1] ss:$4 sm:$0xff]  ;;  %v670_v9 = vld [vmem:[%s1058_s1 + $0x2] ss:$4 sm:$0xff]  ;;  %v855_v18 = vld [vmem:[%s1058_s1] ss:$4 sm:$0xff] }
  0x19   : > { %263 = vperm.xlu1 %720, %v214_v2   ;;  %219 = vperm.xlu0 %719, %v214_v2   ;;  %v271_v10 = vperm.slane %v839_v8, 0  ;;  %v272_v11 = vperm.slane %v839_v8, 1  ;;  %v273_v12 = vperm.slane %v839_v8, 2  ;;  %v274_v13 = vperm.slane %v839_v8, 3  ;;  %p671_p8 = scmp.ne.s32.totalorder %s745_s12, 3 }
  0x1a   : > { %721 = vset.pattern.permute.xlu2 %v767_v5  ;;  %v275_v14 = vperm.slane %v839_v8, 4  ;;  %v276_v15 = vperm.slane %v839_v8, 5  ;;  %v277_v16 = vperm.slane %v839_v8, 6  ;;  %v278_v17 = vperm.slane %v839_v8, 7 }
  0x1b   : > { %322 = vperm.xlu2 %721, %v214_v2   ;;  %v330_v19 = vperm.slane %v670_v9, 0  ;;  %v331_v20 = vperm.slane %v670_v9, 1  ;;  %v332_v21 = vperm.slane %v670_v9, 2  ;;  %v333_v22 = vperm.slane %v670_v9, 3 }
  0x1c   : > { %v334_v23 = vperm.slane %v670_v9, 4  ;;  %v335_v24 = vperm.slane %v670_v9, 5  ;;  %v336_v25 = vperm.slane %v670_v9, 6  ;;  %v337_v26 = vperm.slane %v670_v9, 7 }
  0x1d   : > { %v228_v27 = vperm.slane %v855_v18, 0  ;;  %v229_v28 = vperm.slane %v855_v18, 1  ;;  %v230_v29 = vperm.slane %v855_v18, 2  ;;  %v231_v30 = vperm.slane %v855_v18, 3 }
  0x1e   : > { %v232_v32 = vperm.slane %v855_v18, 4  ;;  %v233_v33 = vperm.slane %v855_v18, 5  ;;  %v1061_v34 = vperm.slane %v855_v18, 6  ;;  %v235_v35 = vperm.slane %v855_v18, 7 }
  0x1f   : > { %v1062_v8 = vperm.slane %v855_v18, 6  ;;  %vm452_vm1 = vcmask 1042434   ;;  %vm454_vm2 = vcmask 1041408   ;;  %vm456_vm3 = vcmask 1044484  }
  0x20   : > { %vm458_vm4 = vcmask 1046534   ;;  %vm460_vm5 = vcmask 1045508   ;;  %vm462_vm6 = vcmask 1043456  }
  0x21   : > { %267 = vperm.xlu1 %720, %v215_v6   ;;  %224 = vperm.xlu0 %719, %v215_v6  }
  0x23   : > { %326 = vperm.xlu2 %721, %v215_v6  }
  0x29   : > { %722 = vset.pattern.permute.xlu0 %v767_v5 }
  0x75   : > { %v323_v7 = vpop.permute.xlu2 %322 }
  0x76   : > { %v346_v36 = vmul.f32 %v330_v19, %v323_v7  ;;  %v347_v37 = vmul.f32 %v331_v20, %v323_v7  ;;  %v348_v38 = vmul.f32 %v332_v21, %v323_v7  ;;  %v349_v39 = vmul.f32 %v333_v22, %v323_v7 }
  0x77   : > { %v350_v40 = vmul.f32 %v334_v23, %v323_v7  ;;  %v351_v41 = vmul.f32 %v335_v24, %v323_v7  ;;  %v352_v42 = vmul.f32 %v336_v25, %v323_v7  ;;  %v353_v43 = vmul.f32 %v337_v26, %v323_v7 }
  0x7d   : > { %v327_v31 = vpop.permute.xlu2 %326 }
  0x7e   : > { %v865_v44 = vmul.f32 %v330_v19, %v327_v31  ;;  %v867_v45 = vmul.f32 %v331_v20, %v327_v31  ;;  %v869_v46 = vmul.f32 %v332_v21, %v327_v31  ;;  %v871_v47 = vmul.f32 %v333_v22, %v327_v31 }
  0x7f   : > { %v873_v50 = vmul.f32 %v334_v23, %v327_v31  ;;  %v875_v51 = vmul.f32 %v335_v24, %v327_v31  ;;  %v877_v52 = vmul.f32 %v336_v25, %v327_v31  ;;  %v879_v53 = vmul.f32 %v337_v26, %v327_v31 }
  0x8b   : > { %v264_v48 = vpop.permute.xlu1 %263  ;;  %v220_v49 = vpop.permute.xlu0 %219 }
  0x8c   : > { %v287_v54 = vmul.f32 %v271_v10, %v264_v48  ;;  %v288_v55 = vmul.f32 %v272_v11, %v264_v48  ;;  %v289_v56 = vmul.f32 %v273_v12, %v264_v48  ;;  %v290_v57 = vmul.f32 %v274_v13, %v264_v48 }
  0x8d   : > { %v291_v58 = vmul.f32 %v275_v14, %v264_v48  ;;  %v292_v59 = vmul.f32 %v276_v15, %v264_v48  ;;  %v293_v60 = vmul.f32 %v277_v16, %v264_v48  ;;  %v294_v61 = vmul.f32 %v278_v17, %v264_v48 }
  0x8e   : > { %v244_v62 = vmul.f32 %v228_v27, %v220_v49  ;;  %v245_v63 = vmul.f32 %v229_v28, %v220_v49  ;;  %v246_v0 = vmul.f32 %v230_v29, %v220_v49  ;;  %v247_v1 = vmul.f32 %v231_v30, %v220_v49 }
  0x8f   : > { %v248_v2 = vmul.f32 %v232_v32, %v220_v49  ;;  %v249_v3 = vmul.f32 %v233_v33, %v220_v49  ;;  %v250_v4 = vmul.f32 %v1061_v34, %v220_v49  ;;  %v251_v5 = vmul.f32 %v235_v35, %v220_v49 }
  0x90   : > { %v303_v6 = vadd.f32 %v287_v54, %v244_v62  ;;  %v304_v7 = vadd.f32 %v288_v55, %v245_v63  ;;  %v305_v9 = vadd.f32 %v289_v56, %v246_v0  ;;  %v306_v19 = vadd.f32 %v290_v57, %v247_v1 }
  0x91   : > { %v307_v20 = vadd.f32 %v291_v58, %v248_v2  ;;  %v308_v21 = vadd.f32 %v292_v59, %v249_v3  ;;  %v309_v22 = vadd.f32 %v293_v60, %v250_v4  ;;  %v310_v23 = vadd.f32 %v294_v61, %v251_v5 }
  0x92   : > { %v913_v24 = vadd.f32 %v346_v36, %v303_v6  ;;  %v915_v25 = vadd.f32 %v347_v37, %v304_v7  ;;  %v917_v26 = vadd.f32 %v348_v38, %v305_v9  ;;  %v919_v31 = vadd.f32 %v349_v39, %v306_v19 }
  0x93   : > { %v268_v48 = vpop.permute.xlu1 %267  ;;  %v921_v34 = vadd.f32 %v350_v40, %v307_v20  ;;  %v923_v49 = vadd.f32 %v351_v41, %v308_v21  ;;  %v925_v54 = vadd.f32 %v352_v42, %v309_v22  ;;  %v927_v55 = vadd.f32 %v353_v43, %v310_v23  ;;  %v225_v56 = vpop.permute.xlu0 %224 }
  0x94   : > { %v295_v36 = vmul.f32 %v271_v10, %v268_v48  ;;  %v296_v37 = vmul.f32 %v272_v11, %v268_v48  ;;  %v297_v38 = vmul.f32 %v273_v12, %v268_v48  ;;  %v298_v39 = vmul.f32 %v274_v13, %v268_v48 }
  0x95   : > { %v299_v40 = vmul.f32 %v275_v14, %v268_v48  ;;  %v300_v41 = vmul.f32 %v276_v15, %v268_v48  ;;  %v301_v42 = vmul.f32 %v277_v16, %v268_v48  ;;  %v302_v10 = vmul.f32 %v278_v17, %v268_v48 }
  0x96   : > { %v252_v11 = vmul.f32 %v228_v27, %v225_v56  ;;  %v253_v12 = vmul.f32 %v229_v28, %v225_v56  ;;  %v254_v13 = vmul.f32 %v230_v29, %v225_v56  ;;  %v255_v14 = vmul.f32 %v231_v30, %v225_v56 }
  0x97   : > { %v256_v15 = vmul.f32 %v232_v32, %v225_v56  ;;  %v257_v16 = vmul.f32 %v233_v33, %v225_v56  ;;  %v258_v17 = vmul.f32 %v1062_v8, %v225_v56  ;;  %v259_v27 = vmul.f32 %v235_v35, %v225_v56 }
  0x98   : > { %v311_v43 = vadd.f32 %v295_v36, %v252_v11  ;;  %v312_v28 = vadd.f32 %v296_v37, %v253_v12  ;;  %v313_v57 = vadd.f32 %v297_v38, %v254_v13  ;;  %v314_v58 = vadd.f32 %v298_v39, %v255_v14 }
  0x99   : > { %v315_v29 = vadd.f32 %v299_v40, %v256_v15  ;;  %v316_v59 = vadd.f32 %v300_v41, %v257_v16  ;;  %v317_v60 = vadd.f32 %v301_v42, %v258_v17  ;;  %v318_v30 = vadd.f32 %v302_v10, %v259_v27 }
  0x9a   : > { %v962_v61 = vadd.f32 %v865_v44, %v311_v43  ;;  %v965_v32 = vadd.f32 %v867_v45, %v312_v28  ;;  %v968_v33 = vadd.f32 %v869_v46, %v313_v57  ;;  %v971_v18 = vadd.f32 %v871_v47, %v314_v58 }
  0x9b   : > { %v974_v35 = vadd.f32 %v873_v50, %v315_v29  ;;  %v977_v62 = vadd.f32 %v875_v51, %v316_v59  ;;  %v980_v63 = vadd.f32 %v877_v52, %v317_v60  ;;  %v983_v44 = vadd.f32 %v879_v53, %v318_v30 }
  0x9c   : > { %v379_v45 = vmax.f32 %v913_v24, %v962_v61  ;;  %v386_v46 = vmax.f32 %v915_v25, %v965_v32  ;;  %v393_v47 = vmax.f32 %v917_v26, %v968_v33  ;;  %v400_v50 = vmax.f32 %v919_v31, %v971_v18 }
  0x9d   : > { %v407_v51 = vmax.f32 %v921_v34, %v974_v35  ;;  %v414_v52 = vmax.f32 %v923_v49, %v977_v62  ;;  %v421_v53 = vmax.f32 %v925_v54, %v980_v63  ;;  %v428_v0 = vmax.f32 %v927_v55, %v983_v44 }
  0x9e   : > { %v380_v1 = vrot.slane %v379_v45, 4  ;;  %v387_v2 = vrot.slane %v386_v46, 4  ;;  %v394_v3 = vrot.slane %v393_v47, 4  ;;  %v401_v4 = vrot.slane %v400_v50, 4 }
  0x9f   : > { %v408_v5 = vrot.slane %v407_v51, 4  ;;  %v415_v6 = vrot.slane %v414_v52, 4  ;;  %v422_v7 = vrot.slane %v421_v53, 4  ;;  %v429_v9 = vrot.slane %v428_v0, 4 }
  0xa0   : > { %v381_v19 = vmax.f32 %v379_v45, %v380_v1  ;;  %v388_v20 = vmax.f32 %v386_v46, %v387_v2  ;;  %v395_v21 = vmax.f32 %v393_v47, %v394_v3  ;;  %v402_v22 = vmax.f32 %v400_v50, %v401_v4 }
  0xa1   : > { %v409_v23 = vmax.f32 %v407_v51, %v408_v5  ;;  %v416_v48 = vmax.f32 %v414_v52, %v415_v6  ;;  %v423_v56 = vmax.f32 %v421_v53, %v422_v7  ;;  %v430_v36 = vmax.f32 %v428_v0, %v429_v9 }
  0xa2   : > { %v382_v37 = vrot.slane %v381_v19, 2  ;;  %v389_v38 = vrot.slane %v388_v20, 2  ;;  %v396_v39 = vrot.slane %v395_v21, 2  ;;  %v403_v40 = vrot.slane %v402_v22, 2 }
  0xa3   : > { %v410_v41 = vrot.slane %v409_v23, 2  ;;  %v417_v42 = vrot.slane %v416_v48, 2  ;;  %v424_v10 = vrot.slane %v423_v56, 2  ;;  %v431_v11 = vrot.slane %v430_v36, 2 }
  0xa4   : > { %v383_v12 = vmax.f32 %v381_v19, %v382_v37  ;;  %v390_v13 = vmax.f32 %v388_v20, %v389_v38  ;;  %v397_v14 = vmax.f32 %v395_v21, %v396_v39  ;;  %v404_v15 = vmax.f32 %v402_v22, %v403_v40 }
  0xa5   : > { %v411_v16 = vmax.f32 %v409_v23, %v410_v41  ;;  %v418_v8 = vmax.f32 %v416_v48, %v417_v42  ;;  %v425_v17 = vmax.f32 %v423_v56, %v424_v10  ;;  %v432_v27 = vmax.f32 %v430_v36, %v431_v11  ;;  %v378_v23 = vld [vmem:[#allocation2] sm:$0xff] }
  0xa6   : > { %v384_v43 = vrot.slane %v383_v12, 1  ;;  %v391_v28 = vrot.slane %v390_v13, 1  ;;  %v398_v57 = vrot.slane %v397_v14, 1  ;;  %v405_v58 = vrot.slane %v404_v15, 1 }
  0xa7   : > { %v412_v29 = vrot.slane %v411_v16, 1  ;;  %v419_v59 = vrot.slane %v418_v8, 1  ;;  %v426_v60 = vrot.slane %v425_v17, 1  ;;  %v433_v30 = vrot.slane %v432_v27, 1 }
  0xa8   : > { %v385_v45 = vmax.f32 %v383_v12, %v384_v43  ;;  %v392_v46 = vmax.f32 %v390_v13, %v391_v28  ;;  %v399_v47 = vmax.f32 %v397_v14, %v398_v57  ;;  %v406_v50 = vmax.f32 %v404_v15, %v405_v58 }
  0xa9   : > { %v413_v51 = vmax.f32 %v411_v16, %v412_v29  ;;  %v420_v52 = vmax.f32 %v418_v8, %v419_v59  ;;  %v427_v53 = vmax.f32 %v425_v17, %v426_v60  ;;  %v434_v0 = vmax.f32 %v432_v27, %v433_v30 }
  0xaa   : > { %v443_v1 = vrot.slane %v392_v46, 7  ;;  %v444_v2 = vrot.slane %v399_v47, 6  ;;  %v445_v3 = vrot.slane %v406_v50, 5  ;;  %v468_v4 = vmin.f32 %v913_v24, %v962_v61 }
  0xab   : > { %v446_v5 = vrot.slane %v413_v51, 4  ;;  %v447_v6 = vrot.slane %v420_v52, 3  ;;  %v448_v7 = vrot.slane %v427_v53, 2  ;;  %v449_v9 = vrot.slane %v434_v0, 1 }
  0xac   : > { %v451_v19 = vsel %vm450_vm0, %v385_v45, %v443_v1  ;;  %v453_v20 = vsel %vm452_vm1, %v444_v2, %v445_v3  ;;  %v469_v21 = vrot.slane %v468_v4, 4  ;;  %v475_v22 = vmin.f32 %v915_v25, %v965_v32 }
  0xad   : > { %v455_v48 = vsel %vm454_vm2, %v451_v19, %v453_v20  ;;  %v457_v56 = vsel %vm456_vm3, %v446_v5, %v447_v6  ;;  %v459_v36 = vsel %vm458_vm4, %v448_v7, %v449_v9  ;;  %v482_v24 = vmin.f32 %v917_v26, %v968_v33 }
  0xae   : > { %v461_v61 = vsel %vm460_vm5, %v457_v56, %v459_v36  ;;  %v470_v37 = vmin.f32 %v468_v4, %v469_v21  ;;  %v476_v38 = vrot.slane %v475_v22, 4  ;;  %v489_v39 = vmin.f32 %v919_v31, %v971_v18 }
  0xaf   : > { %v463_v40 = vsel %vm462_vm6, %v455_v48, %v461_v61  ;;  %v483_v25 = vrot.slane %v482_v24, 4  ;;  %v496_v32 = vmin.f32 %v921_v34, %v974_v35  ;;  %v503_v41 = vmin.f32 %v923_v49, %v977_v62 }
  0xb0   : > { %v465_v42 = vmax.f32 %v378_v23, %v463_v40  ;;  %v471_v10 = vrot.slane %v470_v37, 2  ;;  %v477_v11 = vmin.f32 %v475_v22, %v476_v38  ;;  %v490_v26 = vrot.slane %v489_v39, 4  ;;  %v467_v38 = vld [vmem:[#allocation3] sm:$0xff] }
  0xb1   : > { %v484_v33 = vmin.f32 %v482_v24, %v483_v25  ;;  %v497_v12 = vrot.slane %v496_v32, 4  ;;  %v504_v13 = vrot.slane %v503_v41, 4  ;;  %v510_v14 = vmin.f32 %v925_v54, %v980_v63 }
  0xb2   : > { %466 = vst [vmem:[#allocation2] sm:$0xff] %v465_v42  ;;  %v478_v31 = vrot.slane %v477_v11, 2  ;;  %v491_v18 = vmin.f32 %v489_v39, %v490_v26  ;;  %v517_v15 = vmin.f32 %v927_v55, %v983_v44  ;;  %v472_v62 = vmin.f32 %v470_v37, %v471_v10 }
  0xb3   : > { %v485_v34 = vrot.slane %v484_v33, 2  ;;  %v498_v35 = vmin.f32 %v496_v32, %v497_v12  ;;  %v505_v16 = vmin.f32 %v503_v41, %v504_v13  ;;  %v511_v49 = vrot.slane %v510_v14, 4 }
  0xb4   : > { %v479_v8 = vmin.f32 %v477_v11, %v478_v31  ;;  %v492_v17 = vrot.slane %v491_v18, 2  ;;  %v518_v27 = vrot.slane %v517_v15, 4  ;;  %v473_v55 = vrot.slane %v472_v62, 1 }
  0xb5   : > { %v486_v43 = vmin.f32 %v484_v33, %v485_v34  ;;  %v499_v28 = vrot.slane %v498_v35, 2  ;;  %v506_v57 = vrot.slane %v505_v16, 2  ;;  %v512_v58 = vmin.f32 %v510_v14, %v511_v49 }
  0xb6   : > { %v480_v29 = vrot.slane %v479_v8, 1  ;;  %v493_v54 = vmin.f32 %v491_v18, %v492_v17  ;;  %v519_v63 = vmin.f32 %v517_v15, %v518_v27  ;;  %v474_v7 = vmin.f32 %v472_v62, %v473_v55 }
  0xb7   : > { %v487_v59 = vrot.slane %v486_v43, 1  ;;  %v500_v60 = vmin.f32 %v498_v35, %v499_v28  ;;  %v507_v30 = vmin.f32 %v505_v16, %v506_v57  ;;  %v513_v45 = vrot.slane %v512_v58, 2 }
  0xb8   : > { %v481_v44 = vmin.f32 %v479_v8, %v480_v29  ;;  %v494_v46 = vrot.slane %v493_v54, 1  ;;  %v520_v47 = vrot.slane %v519_v63, 2 }
  0xb9   : > { %v488_v50 = vmin.f32 %v486_v43, %v487_v59  ;;  %v501_v51 = vrot.slane %v500_v60, 1  ;;  %v508_v52 = vrot.slane %v507_v30, 1  ;;  %v514_v53 = vmin.f32 %v512_v58, %v513_v45 }
  0xba   : > { %v495_v0 = vmin.f32 %v493_v54, %v494_v46  ;;  %v521_v1 = vmin.f32 %v519_v63, %v520_v47  ;;  %v532_v2 = vrot.slane %v481_v44, 7 }
  0xbb   : > { %v502_v3 = vmin.f32 %v500_v60, %v501_v51  ;;  %v509_v4 = vmin.f32 %v507_v30, %v508_v52  ;;  %v515_v5 = vrot.slane %v514_v53, 1  ;;  %v533_v6 = vrot.slane %v488_v50, 6 }
  0xbc   : > { %v522_v9 = vrot.slane %v521_v1, 1  ;;  %v534_v19 = vrot.slane %v495_v0, 5  ;;  %v539_v48 = vsel %vm450_vm0, %v474_v7, %v532_v2 }
  0xbd   : > { %v516_v20 = vmin.f32 %v514_v53, %v515_v5  ;;  %v535_v21 = vrot.slane %v502_v3, 4  ;;  %v536_v22 = vrot.slane %v509_v4, 3 }
  0xbe   : > { %v523_v23 = vmin.f32 %v521_v1, %v522_v9  ;;  %v540_v56 = vsel %vm452_vm1, %v533_v6, %v534_v19 }
  0xbf   : > { %v537_v36 = vrot.slane %v516_v20, 2  ;;  %v542_v61 = vsel %vm456_vm3, %v535_v21, %v536_v22  ;;  %v541_v37 = vsel %vm454_vm2, %v539_v48, %v540_v56 }
  0xc0   : > { %v538_v24 = vrot.slane %v523_v23, 1 }
  0xc2   : > { %v543_v39 = vsel %vm458_vm4, %v537_v36, %v538_v24 }
  0xc3   : > { %v544_v40 = vsel %vm460_vm5, %v542_v61, %v543_v39  ;;  %552 = sbr.rel (%p671_p8) target bundleno = 208 (0xd0), region = 36 }
  0xc4   : > { %v545_v25 = vsel %vm462_vm6, %v541_v37, %v544_v40 }
  0xc5   : > { %v547_v32 = vmin.f32 %v467_v38, %v545_v25 }
  0xc7   : > { %548 = vst [vmem:[#allocation3] sm:$0xff] %v547_v32 }
  0xc8   : > { %v553_v41 = vld [vmem:[#allocation2] sm:$0xff] }
  0xc9   : > { %554 = vst [vmem:[%s203_s24] sm:$0xff] %v553_v41 }
  0xce   : > { %v555_v42 = vld [vmem:[#allocation3] sm:$0xff] }
  0xcf   : > { %556 = vst [vmem:[%s207_s28] sm:$0xff] %v555_v42 }
  0xd0 PF: > { %s14_s16 = sadd.s32 1, %s761_s16   ;;  %s1063_s12 = smov %s753_s14 }
  0xd1   : > { %p11_p9 = scmp.ge.s32.totalorder %s14_s16, 10   ;;  %s1064_s13 = smov %s757_s15 }
  0xd2   : > { %s1065_s14 = smov %s1068_s17  ;;  %s1066_s15 = smov %s1072_s18 }
  0xd3   :  { %13 = sbr.rel (!%p11_p9) target bundleno = 3 (0x3), region = 80 }

// kernel: tnet_forward.3
= control target key start
LH: loop header
LB: loop body
LE: loop exit
PB: predicated region body
PF: predicated region fallthrough
CT: control target
= control target key end

     0   :  { %19 = vsyncpa [#allocation3], 0  ;;  %s2854_s0 = inlined_call_operand.vmem [shape: f32[2,1,1024], index: 0, kind: input, shape index: {}]   ;;  %s2855_s1 = inlined_call_operand.vmem [shape: f32[2,1,1024], index: 1, kind: input, shape index: {}]   ;;  %s2856_s2 = inlined_call_operand.vmem [shape: f32[1,1024], index: 2, kind: input, shape index: {}]   ;;  %s2857_s3 = inlined_call_operand.vmem [shape: f32[1,1024], index: 3, kind: input, shape index: {}]   ;;  %s2858_s4 = inlined_call_operand.hbm [shape: f32[1024,512], index: 4, kind: input, shape index: {}]   ;;  %s2859_s5 = inlined_call_operand.hbm [shape: f32[1,512], index: 5, kind: input, shape index: {}]   ;;  %s2860_s6 = inlined_call_operand.hbm [shape: f32[1,512], index: 6, kind: input, shape index: {}]   ;;  %s2861_s7 = inlined_call_operand.hbm [shape: f32[1,512], index: 7, kind: input, shape index: {}]   ;;  %s2862_s8 = inlined_call_operand.hbm [shape: f32[512,256], index: 8, kind: input, shape index: {}]   ;;  %s2863_s9 = inlined_call_operand.hbm [shape: f32[1,256], index: 9, kind: input, shape index: {}]   ;;  %s2864_s10 = inlined_call_operand.hbm [shape: f32[1,256], index: 10, kind: input, shape index: {}]   ;;  %s2865_s11 = inlined_call_operand.hbm [shape: f32[1,256], index: 11, kind: input, shape index: {}]   ;;  %s2866_s12 = inlined_call_operand.vmem [shape: f32[256,128], index: 12, kind: input, shape index: {}]   ;;  %s2867_s13 = inlined_call_operand.vmem [shape: f32[1,128], index: 13, kind: input, shape index: {}]   ;;  %s2868_s14 = inlined_call_operand.vmem [shape: f32[2,128], index: 14, kind: output, shape index: {}]  }
   0x1   :  { %20 = vsyncpa [#allocation5], 0 }
   0x2   :  { %21 = vsyncpa [#allocation8], 0 }
   0x3   :  { %22 = vsyncpa [#allocation11], 0  ;;  %s50_s15 = sshll.u32 %s2859_s5, 4  ;;  %s51_s15 = int_to_ptr.hbm [resolvable:$true] %s50_s15 }
   0x4   :  { %23 = vsyncpa [#allocation14], 0  ;;  %s2334_s16 = smov [#allocation4]   ;;  %s72_s20 = sshll.u32 %s2861_s7, 4  ;;  %s73_s20 = int_to_ptr.hbm [resolvable:$true] %s72_s20 }
   0x5   :  { %s52_s17 = sshll.u32 %s2334_s16, 4  ;;  %s2335_s21 = smov [#allocation7]   ;;  %s53_s17 = int_to_ptr.vmem [resolvable:$true] %s52_s17 }
   0x6   :  { %55 = dma.hbm_to_vmem [thread:$0]  %s51_s15, 64, %s53_s17, [#allocation5]  }
   0x7   :  { %s74_s22 = sshll.u32 %s2335_s21, 4  ;;  %s96_s25 = sshll.u32 %s2863_s9, 4  ;;  %s75_s22 = int_to_ptr.vmem [resolvable:$true] %s74_s22  ;;  %s97_s25 = int_to_ptr.hbm [resolvable:$true] %s96_s25 }
   0x8   :  { %77 = dma.hbm_to_vmem [thread:$0]  %s73_s20, 64, %s75_s22, [#allocation8]  }
   0x9   :  { %s36_s27 = sshll.u32 %s2858_s4, 4  ;;  %s2336_s28 = smov [#allocation10]   ;;  %s37_s27 = int_to_ptr.hbm [resolvable:$true] %s36_s27 }
   0xa   :  { %s98_s29 = sshll.u32 %s2336_s28, 4  ;;  %s2337_s7 = smov [#allocation2]   ;;  %s99_s29 = int_to_ptr.vmem [resolvable:$true] %s98_s29 }
   0xb   :  { %101 = dma.hbm_to_vmem [thread:$0]  %s97_s25, 32, %s99_s29, [#allocation11]  }
   0xc   :  { %s38_s30 = sshll.u32 %s2337_s7, 4  ;;  %s2338_s15 = smov 512   ;;  %s39_s30 = int_to_ptr.vmem [resolvable:$true] %s38_s30 }
   0xd   :  { %s2339_s16 = smov 32   ;;  %s61_s18 = sshll.u32 %s2860_s6, 4  ;;  %s62_s18 = int_to_ptr.hbm [resolvable:$true] %s61_s18 }
   0xe   :  { %44 = dma.hbm_to_vmem [thread:$0]  %s37_s27, 65536, %s39_s30, [#allocation3], %s2338_s15, %s2338_s15, %s2339_s16  }
   0xf   :  { %s2340_s19 = smov [#allocation6]   ;;  %s82_s22 = sshll.u32 %s2862_s8, 4  ;;  %s83_s22 = int_to_ptr.hbm [resolvable:$true] %s82_s22 }
  0x10   :  { %s63_s20 = sshll.u32 %s2340_s19, 4  ;;  %s2341_s23 = smov [#allocation9]   ;;  %s64_s20 = int_to_ptr.vmem [resolvable:$true] %s63_s20 }
  0x11   :  { %66 = dma.hbm_to_vmem [thread:$0]  %s62_s18, 64, %s64_s20, [#allocation5]  }
  0x12   :  { %s84_s24 = sshll.u32 %s2341_s23, 4  ;;  %s2342_s25 = smov 256   ;;  %s85_s24 = int_to_ptr.vmem [resolvable:$true] %s84_s24 }
  0x13   :  { %s2343_s5 = smov 16   ;;  %s107_s6 = sshll.u32 %s2864_s10, 4  ;;  %s108_s6 = int_to_ptr.hbm [resolvable:$true] %s107_s6 }
  0x14   :  { %90 = dma.hbm_to_vmem [thread:$0]  %s83_s22, 16384, %s85_s24, [#allocation8], %s2342_s25, %s2342_s25, %s2343_s5  }
  0x15   :  { %s2344_s28 = smov [#allocation12]   ;;  %s118_s8 = sshll.u32 %s2865_s11, 4  ;;  %s119_s8 = int_to_ptr.hbm [resolvable:$true] %s118_s8 }
  0x16   :  { %s109_s29 = sshll.u32 %s2344_s28, 4  ;;  %s2345_s15 = smov [#allocation13]   ;;  %s110_s29 = int_to_ptr.vmem [resolvable:$true] %s109_s29 }
  0x17   :  { %112 = dma.hbm_to_vmem [thread:$0]  %s108_s6, 32, %s110_s29, [#allocation11]  }
  0x18   :  { %s120_s16 = sshll.u32 %s2345_s15, 4  ;;  %s121_s16 = int_to_ptr.vmem [resolvable:$true] %s120_s16 }
  0x19   :  { %123 = dma.hbm_to_vmem [thread:$0]  %s119_s8, 32, %s121_s16, [#allocation14]  }
  0x1a   :  { %2324 = dma.done.wait [#allocation3], 65536  }
  0x1b   :  { %2325 = vsyncadd [#allocation3], 4294901760 }
  0x1c   :  { %2326 = dma.done.wait [#allocation5], 128  }
  0x1d   :  { %2327 = vsyncadd [#allocation5], 4294967168 }
  0x1e   :  { %2328 = dma.done.wait [#allocation8], 16448  }
  0x1f   :  { %2329 = vsyncadd [#allocation8], 4294950848 }
  0x20   :  { %2330 = dma.done.wait [#allocation11], 64  }
  0x21   :  { %2331 = vsyncadd [#allocation11], 4294967232 }
  0x22   :  { %2332 = dma.done.wait [#allocation14], 32  }
  0x23   :  { %2333 = vsyncadd [#allocation14], 4294967264  ;;  %v344_v0 = vld [vmem:[#allocation2 + $0x1e0] sm:$0xff]  ;;  %vm1448_vm9 = vcmask 1041408  }
  0x24   :  { %v472_v1 = vld [vmem:[#allocation2 + $0x5e0] sm:$0xff]  ;;  %806 = vmatpush.msra.mxu0 %v344_v0 }
  0x25   :  { %v340_v2 = vld [vmem:[#allocation2 + $0x1c0] sm:$0xff]  ;;  %846 = vmatpush.msra.mxu2 %v472_v1 }
  0x26   :  { %v468_v3 = vld [vmem:[#allocation2 + $0x5c0] sm:$0xff]  ;;  %807 = vmatpush.msra.mxu0 %v340_v2 }
  0x27   :  { %v536_v4 = vld [vmem:[#allocation2 + $0x7e0] sm:$0xff]  ;;  %847 = vmatpush.msra.mxu2 %v468_v3 }
  0x28   :  { %v336_v5 = vld [vmem:[#allocation2 + $0x1a0] sm:$0xff]  ;;  %866 = vmatpush.msra.mxu3 %v536_v4 }
  0x29   :  { %v408_v6 = vld [vmem:[#allocation2 + $0x3e0] sm:$0xff]  ;;  %808 = vmatpush.msra.mxu0 %v336_v5 }
  0x2a   :  { %v464_v7 = vld [vmem:[#allocation2 + $0x5a0] sm:$0xff]  ;;  %826 = vmatpush.msra.mxu1 %v408_v6 }
  0x2b   :  { %v532_v8 = vld [vmem:[#allocation2 + $0x7c0] sm:$0xff]  ;;  %848 = vmatpush.msra.mxu2 %v464_v7 }
  0x2c   :  { %v404_v9 = vld [vmem:[#allocation2 + $0x3c0] sm:$0xff]  ;;  %867 = vmatpush.msra.mxu3 %v532_v8 }
  0x2d   :  { %v332_v10 = vld [vmem:[#allocation2 + $0x180] sm:$0xff]  ;;  %827 = vmatpush.msra.mxu1 %v404_v9 }
  0x2e   :  { %v460_v11 = vld [vmem:[#allocation2 + $0x580] sm:$0xff]  ;;  %809 = vmatpush.msra.mxu0 %v332_v10 }
  0x2f   :  { %v528_v12 = vld [vmem:[#allocation2 + $0x7a0] sm:$0xff]  ;;  %849 = vmatpush.msra.mxu2 %v460_v11 }
  0x30   :  { %v400_v13 = vld [vmem:[#allocation2 + $0x3a0] sm:$0xff]  ;;  %868 = vmatpush.msra.mxu3 %v528_v12 }
  0x31   :  { %v524_v14 = vld [vmem:[#allocation2 + $0x780] sm:$0xff]  ;;  %828 = vmatpush.msra.mxu1 %v400_v13  ;;  %v161_v13 = vld [vmem:[%s2854_s0] sm:$0xff] }
  0x32   :  { %v328_v15 = vld [vmem:[#allocation2 + $0x160] sm:$0xff]  ;;  %869 = vmatpush.msra.mxu3 %v524_v14  ;;  %185 = vst [vmem:[#allocation1] ss:$9 sm:$0xff] %v161_v13 }
  0x33   :  { %v456_v16 = vld [vmem:[#allocation2 + $0x560] sm:$0xff]  ;;  %810 = vmatpush.msra.mxu0 %v328_v15 }
  0x34   :  { %v396_v17 = vld [vmem:[#allocation2 + $0x380] sm:$0xff]  ;;  %850 = vmatpush.msra.mxu2 %v456_v16 }
  0x35   :  { %v520_v18 = vld [vmem:[#allocation2 + $0x760] sm:$0xff]  ;;  %829 = vmatpush.msra.mxu1 %v396_v17 }
  0x36   :  { %v324_v19 = vld [vmem:[#allocation2 + $0x140] sm:$0xff]  ;;  %870 = vmatpush.msra.mxu3 %v520_v18 }
  0x37   :  { %v452_v20 = vld [vmem:[#allocation2 + $0x540] sm:$0xff]  ;;  %811 = vmatpush.msra.mxu0 %v324_v19 }
  0x38   :  { %v392_v21 = vld [vmem:[#allocation2 + $0x360] sm:$0xff]  ;;  %851 = vmatpush.msra.mxu2 %v452_v20 }
  0x39   :  { %v516_v22 = vld [vmem:[#allocation2 + $0x740] sm:$0xff]  ;;  %830 = vmatpush.msra.mxu1 %v392_v21 }
  0x3a   :  { %v320_v23 = vld [vmem:[#allocation2 + $0x120] sm:$0xff]  ;;  %871 = vmatpush.msra.mxu3 %v516_v22 }
  0x3b   :  { %v448_v24 = vld [vmem:[#allocation2 + $0x520] sm:$0xff]  ;;  %812 = vmatpush.msra.mxu0 %v320_v23 }
  0x3c   :  { %v388_v25 = vld [vmem:[#allocation2 + $0x340] sm:$0xff]  ;;  %852 = vmatpush.msra.mxu2 %v448_v24  ;;  %v2457_v24 = vld [vmem:[%s2856_s2] sm:$0xff] }
  0x3d   :  { %v512_v26 = vld [vmem:[#allocation2 + $0x720] sm:$0xff]  ;;  %831 = vmatpush.msra.mxu1 %v388_v25  ;;  %vm165_vm0 = vcmp.ge.f32.partialorder %v2457_v24, 0.0  ;;  %v237_v13 = vperm.slane %v2457_v24, 3 }
  0x3e   :  { %v316_v27 = vld [vmem:[#allocation2 + $0x100] sm:$0xff]  ;;  %872 = vmatpush.msra.mxu3 %v512_v26 }
  0x3f   :  { %v444_v28 = vld [vmem:[#allocation2 + $0x500] sm:$0xff]  ;;  %813 = vmatpush.msra.mxu0 %v316_v27 }
  0x40   :  { %v384_v29 = vld [vmem:[#allocation2 + $0x320] sm:$0xff]  ;;  %853 = vmatpush.msra.mxu2 %v444_v28 }
  0x41   :  { %v508_v30 = vld [vmem:[#allocation2 + $0x700] sm:$0xff]  ;;  %832 = vmatpush.msra.mxu1 %v384_v29 }
  0x42   :  { %v312_v31 = vld [vmem:[#allocation2 + $0xe0] sm:$0xff]  ;;  %873 = vmatpush.msra.mxu3 %v508_v30 }
  0x43   :  { %v440_v32 = vld [vmem:[#allocation2 + $0x4e0] sm:$0xff]  ;;  %814 = vmatpush.msra.mxu0 %v312_v31 }
  0x44   :  { %v380_v33 = vld [vmem:[#allocation2 + $0x300] sm:$0xff]  ;;  %854 = vmatpush.msra.mxu2 %v440_v32 }
  0x45   :  { %v504_v34 = vld [vmem:[#allocation2 + $0x6e0] sm:$0xff]  ;;  %833 = vmatpush.msra.mxu1 %v380_v33 }
  0x46   :  { %v308_v35 = vld [vmem:[#allocation2 + $0xc0] sm:$0xff]  ;;  %874 = vmatpush.msra.mxu3 %v504_v34 }
  0x47   :  { %v436_v36 = vld [vmem:[#allocation2 + $0x4c0] sm:$0xff]  ;;  %815 = vmatpush.msra.mxu0 %v308_v35 }
  0x48   :  { %v376_v37 = vld [vmem:[#allocation2 + $0x2e0] sm:$0xff]  ;;  %855 = vmatpush.msra.mxu2 %v436_v36  ;;  %v163_v36 = vld [vmem:[%s2855_s1] sm:$0xff] }
  0x49   :  { %v500_v38 = vld [vmem:[#allocation2 + $0x6c0] sm:$0xff]  ;;  %834 = vmatpush.msra.mxu1 %v376_v37 }
  0x4a   :  { %v304_v39 = vld [vmem:[#allocation2 + $0xa0] sm:$0xff]  ;;  %875 = vmatpush.msra.mxu3 %v500_v38 }
  0x4b   :  { %v432_v40 = vld [vmem:[#allocation2 + $0x4a0] sm:$0xff]  ;;  %816 = vmatpush.msra.mxu0 %v304_v39 }
  0x4c   :  { %v372_v41 = vld [vmem:[#allocation2 + $0x2c0] sm:$0xff]  ;;  %856 = vmatpush.msra.mxu2 %v432_v40 }
  0x4d   :  { %v496_v42 = vld [vmem:[#allocation2 + $0x6a0] sm:$0xff]  ;;  %835 = vmatpush.msra.mxu1 %v372_v41 }
  0x4e   :  { %v300_v43 = vld [vmem:[#allocation2 + $0x80] sm:$0xff]  ;;  %876 = vmatpush.msra.mxu3 %v496_v42 }
  0x4f   :  { %v428_v44 = vld [vmem:[#allocation2 + $0x480] sm:$0xff]  ;;  %817 = vmatpush.msra.mxu0 %v300_v43  ;;  %v2346_v43 = vmov 0  }
  0x50   :  { %v368_v45 = vld [vmem:[#allocation2 + $0x2a0] sm:$0xff]  ;;  %857 = vmatpush.msra.mxu2 %v428_v44  ;;  %v2474_v44 = vsel %vm165_vm0, 1, %v2346_v43 }
  0x51   :  { %v492_v46 = vld [vmem:[#allocation2 + $0x680] sm:$0xff]  ;;  %836 = vmatpush.msra.mxu1 %v368_v45 }
  0x52   :  { %v296_v47 = vld [vmem:[#allocation2 + $0x60] sm:$0xff]  ;;  %877 = vmatpush.msra.mxu3 %v492_v46 }
  0x53   :  { %v424_v48 = vld [vmem:[#allocation2 + $0x460] sm:$0xff]  ;;  %818 = vmatpush.msra.mxu0 %v296_v47 }
  0x54   :  { %v364_v49 = vld [vmem:[#allocation2 + $0x280] sm:$0xff]  ;;  %858 = vmatpush.msra.mxu2 %v424_v48 }
  0x55   :  { %v488_v50 = vld [vmem:[#allocation2 + $0x660] sm:$0xff]  ;;  %837 = vmatpush.msra.mxu1 %v364_v49 }
  0x56   :  { %v292_v51 = vld [vmem:[#allocation2 + $0x40] sm:$0xff]  ;;  %878 = vmatpush.msra.mxu3 %v488_v50 }
  0x57   :  { %v420_v52 = vld [vmem:[#allocation2 + $0x440] sm:$0xff]  ;;  %819 = vmatpush.msra.mxu0 %v292_v51 }
  0x58   :  { %v360_v53 = vld [vmem:[#allocation2 + $0x260] sm:$0xff]  ;;  %859 = vmatpush.msra.mxu2 %v420_v52 }
  0x59   :  { %v484_v54 = vld [vmem:[#allocation2 + $0x640] sm:$0xff]  ;;  %838 = vmatpush.msra.mxu1 %v360_v53  ;;  %v2489_v53 = vld [vmem:[%s2857_s3] sm:$0xff] }
  0x5a   :  { %v288_v55 = vld [vmem:[#allocation2 + $0x20] sm:$0xff]  ;;  %879 = vmatpush.msra.mxu3 %v484_v54 }
  0x5b   :  { %v416_v56 = vld [vmem:[#allocation2 + $0x420] sm:$0xff]  ;;  %820 = vmatpush.msra.mxu0 %v288_v55 }
  0x5c   :  { %v356_v57 = vld [vmem:[#allocation2 + $0x240] sm:$0xff]  ;;  %860 = vmatpush.msra.mxu2 %v416_v56  ;;  %v169_v56 = vperm.slane %v2474_v44, 2 }
  0x5d   :  { %v480_v58 = vld [vmem:[#allocation2 + $0x620] sm:$0xff]  ;;  %839 = vmatpush.msra.mxu1 %v356_v57  ;;  %v167_v57 = vperm.slane %v2474_v44, 0 }
  0x5e   :  { %v284_v59 = vld [vmem:[#allocation2] sm:$0xff]  ;;  %880 = vmatpush.msra.mxu3 %v480_v58  ;;  %vm2501_vm1 = vcmp.eq.s32.totalorder %v169_v56, 1 }
  0x5f   :  { %v412_v60 = vld [vmem:[#allocation2 + $0x400] sm:$0xff]  ;;  %821 = vmatpush.msra.mxu0 %v284_v59  ;;  %vm2505_vm2 = vcmp.eq.s32.totalorder %v167_v57, 1 }
  0x60   :  { %v600_v61 = vld [vmem:[#allocation2 + $0x9e0] sm:$0xff]  ;;  %861 = vmatpush.msra.mxu2 %v412_v60 }
  0x61   :  { %v728_v62 = vld [vmem:[#allocation2 + $0xde0] sm:$0xff]  ;;  %886 = vmatpush.msrb.mxu0 %v600_v61  ;;  %v170_v61 = vperm.slane %v2474_v44, 3 }
  0x62   :  { %v352_v63 = vld [vmem:[#allocation2 + $0x220] sm:$0xff]  ;;  %926 = vmatpush.msrb.mxu2 %v728_v62 }
  0x63   :  { %v476_v0 = vld [vmem:[#allocation2 + $0x600] sm:$0xff]  ;;  %840 = vmatpush.msra.mxu1 %v352_v63  ;;  %vm2511_vm3 = vcmp.eq.s32.totalorder %v170_v61, 1 }
  0x64   :  { %v596_v1 = vld [vmem:[#allocation2 + $0x9c0] sm:$0xff]  ;;  %881 = vmatpush.msra.mxu3 %v476_v0  ;;  %v236_v0 = vperm.slane %v2457_v24, 2 }
  0x65   :  { %v724_v2 = vld [vmem:[#allocation2 + $0xdc0] sm:$0xff]  ;;  %887 = vmatpush.msrb.mxu0 %v596_v1  ;;  %v262_v1 = vperm.slane %v2489_v53, 2 }
  0x66   :  { %v792_v3 = vld [vmem:[#allocation2 + $0xfe0] sm:$0xff]  ;;  %927 = vmatpush.msrb.mxu2 %v724_v2 }
  0x67   :  { %v348_v4 = vld [vmem:[#allocation2 + $0x200] sm:$0xff]  ;;  %946 = vmatpush.msrb.mxu3 %v792_v3  ;;  %v168_v3 = vperm.slane %v2474_v44, 1 }
  0x68   :  { %v592_v5 = vld [vmem:[#allocation2 + $0x9a0] sm:$0xff]  ;;  %841 = vmatpush.msra.mxu1 %v348_v4 }
  0x69   :  { %v664_v6 = vld [vmem:[#allocation2 + $0xbe0] sm:$0xff]  ;;  %888 = vmatpush.msrb.mxu0 %v592_v5  ;;  %vm2518_vm4 = vcmp.eq.s32.totalorder %v168_v3, 1 }
  0x6a   :  { %v720_v7 = vld [vmem:[#allocation2 + $0xda0] sm:$0xff]  ;;  %906 = vmatpush.msrb.mxu1 %v664_v6  ;;  %v234_v6 = vperm.slane %v2457_v24, 0 }
  0x6b   :  { %v788_v8 = vld [vmem:[#allocation2 + $0xfc0] sm:$0xff]  ;;  %928 = vmatpush.msrb.mxu2 %v720_v7  ;;  %v260_v7 = vperm.slane %v2489_v53, 0 }
  0x6c   :  { %v588_v9 = vld [vmem:[#allocation2 + $0x980] sm:$0xff]  ;;  %947 = vmatpush.msrb.mxu3 %v788_v8  ;;  %v173_v8 = vperm.slane %v2474_v44, 6 }
  0x6d   :  { %v660_v10 = vld [vmem:[#allocation2 + $0xbc0] sm:$0xff]  ;;  %889 = vmatpush.msrb.mxu0 %v588_v9  ;;  %v171_v9 = vperm.slane %v2474_v44, 4 }
  0x6e   :  { %v716_v11 = vld [vmem:[#allocation2 + $0xd80] sm:$0xff]  ;;  %907 = vmatpush.msrb.mxu1 %v660_v10  ;;  %vm2525_vm5 = vcmp.eq.s32.totalorder %v173_v8, 1  ;;  %v473_v10 = vld [vmem:[#allocation2 + $0x5e8] sm:$0xff] }
  0x6f   :  { %v784_v12 = vld [vmem:[#allocation2 + $0xfa0] sm:$0xff]  ;;  %929 = vmatpush.msrb.mxu2 %v716_v11  ;;  %vm2529_vm6 = vcmp.eq.s32.totalorder %v171_v9, 1  ;;  %v267_v9 = vperm.slane %v2489_v53, 7 }
  0x70   :  { %v584_v14 = vld [vmem:[#allocation2 + $0x960] sm:$0xff]  ;;  %948 = vmatpush.msrb.mxu3 %v784_v12 }
  0x71   :  { %v656_v15 = vld [vmem:[#allocation2 + $0xba0] sm:$0xff]  ;;  %890 = vmatpush.msrb.mxu0 %v584_v14 }
  0x72   :  { %v162_v16 = vld [vmem:[%s2854_s0 + $0x8] sm:$0xff]  ;;  %908 = vmatpush.msrb.mxu1 %v656_v15  ;;  %v174_v15 = vperm.slane %v2474_v44, 7 }
  0x73   :  { %v712_v17 = vld [vmem:[#allocation2 + $0xd60] sm:$0xff]  ;;  %187 = vst [vmem:[#allocation1 + $0x1] ss:$9 sm:$0xff] %v162_v16 }
  0x74   :  { %v780_v18 = vld [vmem:[#allocation2 + $0xf80] sm:$0xff]  ;;  %930 = vmatpush.msrb.mxu2 %v712_v17  ;;  %v263_v17 = vperm.slane %v2489_v53, 3  ;;  %vm2543_vm7 = vcmp.eq.s32.totalorder %v174_v15, 1 }
  0x75   :  { %v580_v19 = vld [vmem:[#allocation2 + $0x940] sm:$0xff]  ;;  %949 = vmatpush.msrb.mxu3 %v780_v18 }
  0x76   :  { %v652_v20 = vld [vmem:[#allocation2 + $0xb80] sm:$0xff]  ;;  %891 = vmatpush.msrb.mxu0 %v580_v19 }
  0x77   :  { %v708_v21 = vld [vmem:[#allocation2 + $0xd40] sm:$0xff]  ;;  %909 = vmatpush.msrb.mxu1 %v652_v20  ;;  %v235_v20 = vperm.slane %v2457_v24, 1 }
  0x78   :  { %v776_v22 = vld [vmem:[#allocation2 + $0xf60] sm:$0xff]  ;;  %931 = vmatpush.msrb.mxu2 %v708_v21  ;;  %v261_v21 = vperm.slane %v2489_v53, 1 }
  0x79   :  { %v576_v23 = vld [vmem:[#allocation2 + $0x920] sm:$0xff]  ;;  %950 = vmatpush.msrb.mxu3 %v776_v22 }
  0x7a   :  { %v648_v25 = vld [vmem:[#allocation2 + $0xb60] sm:$0xff]  ;;  %892 = vmatpush.msrb.mxu0 %v576_v23  ;;  %v2466_v40 = vld [vmem:[#allocation1] sm:$0xff]  ;;  %v2470_v42 = vld [vmem:[#allocation1 + $0x12] sm:$0xff] }
  0x7b   :  { %v704_v26 = vld [vmem:[#allocation2 + $0xd20] sm:$0xff]  ;;  %910 = vmatpush.msrb.mxu1 %v648_v25  ;;  %v2476_v45 = vld [vmem:[#allocation1 + $0x1b] sm:$0xff]  ;;  %v465_v23 = vld [vmem:[#allocation2 + $0x5a8] sm:$0xff] }
  0x7c   :  { %v772_v27 = vld [vmem:[#allocation2 + $0xf40] sm:$0xff]  ;;  %932 = vmatpush.msrb.mxu2 %v704_v26  ;;  %v2482_v49 = vld [vmem:[#allocation1 + $0x36] sm:$0xff]  ;;  %v2484_v50 = vld [vmem:[#allocation1 + $0x3f] sm:$0xff]  ;;  %v240_v26 = vperm.slane %v2457_v24, 6 }
  0x7d   :  { %v572_v28 = vld [vmem:[#allocation2 + $0x900] sm:$0xff]  ;;  %951 = vmatpush.msrb.mxu3 %v772_v27  ;;  %v238_v27 = vperm.slane %v2457_v24, 4 }
  0x7e   :  { %v644_v29 = vld [vmem:[#allocation2 + $0xb40] sm:$0xff]  ;;  %893 = vmatpush.msrb.mxu0 %v572_v28  ;;  %v172_v28 = vperm.slane %v2474_v44, 5  ;;  %v517_v44 = vld [vmem:[#allocation2 + $0x748] sm:$0xff] }
  0x7f   :  { %v700_v30 = vld [vmem:[#allocation2 + $0xd00] sm:$0xff]  ;;  %911 = vmatpush.msrb.mxu1 %v644_v29 }
  0x80   :  { %v768_v31 = vld [vmem:[#allocation2 + $0xf20] sm:$0xff]  ;;  %933 = vmatpush.msrb.mxu2 %v700_v30  ;;  %vm2557_vm8 = vcmp.eq.s32.totalorder %v172_v28, 1  ;;  %v461_v28 = vld [vmem:[#allocation2 + $0x588] sm:$0xff] }
  0x81   :  { %v568_v32 = vld [vmem:[#allocation2 + $0x8e0] sm:$0xff]  ;;  %952 = vmatpush.msrb.mxu3 %v768_v31 }
  0x82   :  { %v640_v33 = vld [vmem:[#allocation2 + $0xb20] sm:$0xff]  ;;  %894 = vmatpush.msrb.mxu0 %v568_v32  ;;  %v457_v32 = vld [vmem:[#allocation2 + $0x568] sm:$0xff] }
  0x83   :  { %v696_v34 = vld [vmem:[#allocation2 + $0xce0] sm:$0xff]  ;;  %912 = vmatpush.msrb.mxu1 %v640_v33  ;;  %v525_v33 = vld [vmem:[#allocation2 + $0x788] sm:$0xff] }
  0x84   :  { %v764_v35 = vld [vmem:[#allocation2 + $0xf00] sm:$0xff]  ;;  %934 = vmatpush.msrb.mxu2 %v696_v34  ;;  %v241_v34 = vperm.slane %v2457_v24, 7 }
  0x85   :  { %v164_v37 = vld [vmem:[%s2855_s1 + $0x8] sm:$0xff]  ;;  %953 = vmatpush.msrb.mxu3 %v764_v35 }
  0x86   :  { %v564_v38 = vld [vmem:[#allocation2 + $0x8c0] sm:$0xff] }
  0x87   :  { %v636_v39 = vld [vmem:[#allocation2 + $0xb00] sm:$0xff]  ;;  %895 = vmatpush.msrb.mxu0 %v564_v38 }
  0x88   :  { %v2468_v41 = vld [vmem:[#allocation1 + $0x9] sm:$0xff]  ;;  %913 = vmatpush.msrb.mxu1 %v636_v39 }
  0x89   :  { %v2478_v46 = vld [vmem:[#allocation1 + $0x24] sm:$0xff]  ;;  %v2480_v47 = vld [vmem:[#allocation1 + $0x2d] sm:$0xff] }
  0x8a   :  { %v692_v48 = vld [vmem:[#allocation2 + $0xcc0] sm:$0xff]  ;;  %206 = vst [vmem:[#allocation1] ss:$9 sm:$0xff] %v163_v36 }
  0x8b   :  { %v760_v51 = vld [vmem:[#allocation2 + $0xee0] sm:$0xff]  ;;  %208 = vst [vmem:[#allocation1 + $0x1] ss:$9 sm:$0xff] %v164_v37  ;;  %935 = vmatpush.msrb.mxu2 %v692_v48 }
  0x8c   :  { %v560_v52 = vld [vmem:[#allocation2 + $0x8a0] sm:$0xff]  ;;  %954 = vmatpush.msrb.mxu3 %v760_v51 }
  0x8d   :  { %v632_v54 = vld [vmem:[#allocation2 + $0xae0] sm:$0xff]  ;;  %896 = vmatpush.msrb.mxu0 %v560_v52 }
  0x8e   :  { %v688_v55 = vld [vmem:[#allocation2 + $0xca0] sm:$0xff]  ;;  %914 = vmatpush.msrb.mxu1 %v632_v54 }
  0x8f   :  { %v756_v58 = vld [vmem:[#allocation2 + $0xec0] sm:$0xff]  ;;  %936 = vmatpush.msrb.mxu2 %v688_v55 }
  0x90   :  { %v556_v59 = vld [vmem:[#allocation2 + $0x880] sm:$0xff]  ;;  %955 = vmatpush.msrb.mxu3 %v756_v58  ;;  %v437_v58 = vld [vmem:[#allocation2 + $0x4c8] sm:$0xff] }
  0x91   :  { %v628_v60 = vld [vmem:[#allocation2 + $0xac0] sm:$0xff]  ;;  %897 = vmatpush.msrb.mxu0 %v556_v59 }
  0x92   :  { %v684_v62 = vld [vmem:[#allocation2 + $0xc80] sm:$0xff]  ;;  %915 = vmatpush.msrb.mxu1 %v628_v60  ;;  %v211_v29 = vld [vmem:[#allocation1 + $0x12] sm:$0xff]  ;;  %v209_v30 = vld [vmem:[#allocation1] sm:$0xff] }
  0x93   :  { %v752_v63 = vld [vmem:[#allocation2 + $0xea0] sm:$0xff]  ;;  %937 = vmatpush.msrb.mxu2 %v684_v62  ;;  %v212_v31 = vld [vmem:[#allocation1 + $0x1b] sm:$0xff]  ;;  %v227_v35 = vsel %vm2501_vm1, %v2470_v42, %v211_v29  ;;  %v225_v36 = vsel %vm2505_vm2, %v2466_v40, %v209_v30  ;;  %v239_v40 = vperm.slane %v2457_v24, 5  ;;  %v529_v29 = vld [vmem:[#allocation2 + $0x7a8] sm:$0xff] }
  0x94   :  { %v552_v2 = vld [vmem:[#allocation2 + $0x860] sm:$0xff]  ;;  %956 = vmatpush.msrb.mxu3 %v752_v63  ;;  %v228_v37 = vsel %vm2511_vm3, %v2476_v45, %v212_v31  ;;  %v215_v39 = vld [vmem:[#allocation1 + $0x36] sm:$0xff]  ;;  %v252_v48 = vmul.f32 %v236_v0, %v227_v35  ;;  %v250_v51 = vmul.f32 %v234_v6, %v225_v36  ;;  %v216_v55 = vld [vmem:[#allocation1 + $0x3f] sm:$0xff]  ;;  %v266_v63 = vperm.slane %v2489_v53, 6 }
  0x95   :  { %v624_v4 = vld [vmem:[#allocation2 + $0xaa0] sm:$0xff]  ;;  %898 = vmatpush.msrb.mxu0 %v552_v2  ;;  %v253_v42 = vmul.f32 %v237_v13, %v228_v37  ;;  %v231_v56 = vsel %vm2525_vm5, %v2482_v49, %v215_v39  ;;  %v232_v0 = vsel %vm2543_vm7, %v2484_v50, %v216_v55  ;;  %v345_v50 = vld [vmem:[#allocation2 + $0x1e8] sm:$0xff]  ;;  %v265_v13 = vperm.slane %v2489_v53, 5 }
  0x96   :  { %v680_v5 = vld [vmem:[#allocation2 + $0xc60] sm:$0xff]  ;;  %916 = vmatpush.msrb.mxu1 %v624_v4  ;;  %v2563_v24 = vadd.f32 %v262_v1, %v252_v48  ;;  %v2565_v60 = vadd.f32 %v260_v7, %v250_v51  ;;  %v257_v8 = vmul.f32 %v241_v34, %v232_v0  ;;  %v329_v30 = vld [vmem:[#allocation2 + $0x168] sm:$0xff] }
  0x97   :  { %v748_v11 = vld [vmem:[#allocation2 + $0xe80] sm:$0xff]  ;;  %938 = vmatpush.msrb.mxu2 %v680_v5  ;;  %v264_v5 = vperm.slane %v2489_v53, 4  ;;  %v401_v31 = vld [vmem:[#allocation2 + $0x3a8] sm:$0xff] }
  0x98   :  { %v548_v14 = vld [vmem:[#allocation2 + $0x840] sm:$0xff]  ;;  %957 = vmatpush.msrb.mxu3 %v748_v11  ;;  %862 = vmatmul.f32.vlgmr.msra.gmra.mxu2 %v2563_v24  ;;  %v325_v34 = vld [vmem:[#allocation2 + $0x148] sm:$0xff] }
  0x99   :  { %v620_v18 = vld [vmem:[#allocation2 + $0xa80] sm:$0xff]  ;;  %899 = vmatpush.msrb.mxu0 %v548_v14  ;;  %v397_v35 = vld [vmem:[#allocation2 + $0x388] sm:$0xff] }
  0x9a   :  { %v676_v19 = vld [vmem:[#allocation2 + $0xc40] sm:$0xff]  ;;  %917 = vmatpush.msrb.mxu1 %v620_v18  ;;  %822 = vmatmul.f32.vlgmr.msra.gmra.mxu0 %v2565_v60  ;;  %v537_v18 = vld [vmem:[#allocation2 + $0x7e8] sm:$0xff] }
  0x9b   :  { %v744_v22 = vld [vmem:[#allocation2 + $0xe60] sm:$0xff]  ;;  %939 = vmatpush.msrb.mxu2 %v676_v19  ;;  %v2589_v19 = vadd.f32 %v267_v9, %v257_v8  ;;  %v453_v36 = vld [vmem:[#allocation2 + $0x548] sm:$0xff] }
  0x9c   :  { %v544_v25 = vld [vmem:[#allocation2 + $0x820] sm:$0xff]  ;;  %958 = vmatpush.msrb.mxu3 %v744_v22  ;;  %v409_v22 = vld [vmem:[#allocation2 + $0x3e8] sm:$0xff] }
  0x9d   :  { %v210_v38 = vld [vmem:[#allocation1 + $0x9] sm:$0xff]  ;;  %900 = vmatpush.msrb.mxu0 %v544_v25 }
  0x9e   :  { %v213_v43 = vld [vmem:[#allocation1 + $0x24] sm:$0xff]  ;;  %v226_v45 = vsel %vm2518_vm4, %v2468_v41, %v210_v38  ;;  %v214_v59 = vld [vmem:[#allocation1 + $0x2d] sm:$0xff]  ;;  %v2567_v41 = vadd.f32 %v263_v17, %v253_v42 }
  0x9f   :  { %v616_v52 = vld [vmem:[#allocation2 + $0xa60] sm:$0xff]  ;;  %v229_v57 = vsel %vm2529_vm6, %v2478_v46, %v213_v43  ;;  %v251_v61 = vmul.f32 %v235_v20, %v226_v45  ;;  %v256_v46 = vmul.f32 %v240_v26, %v231_v56  ;;  %v230_v6 = vsel %vm2557_vm8, %v2480_v47, %v214_v59  ;;  %v341_v47 = vld [vmem:[#allocation2 + $0x1c8] sm:$0xff] }
  0xa0   :  { %v672_v54 = vld [vmem:[#allocation2 + $0xc20] sm:$0xff]  ;;  %918 = vmatpush.msrb.mxu1 %v616_v52  ;;  %v254_v4 = vmul.f32 %v238_v27, %v229_v57  ;;  %882 = vmatmul.f32.vlgmr.msra.gmra.mxu3 %v2567_v41  ;;  %v255_v12 = vmul.f32 %v239_v40, %v230_v6  ;;  %v469_v17 = vld [vmem:[#allocation2 + $0x5c8] sm:$0xff] }
  0xa1   :  { %v540_v49 = vld [vmem:[#allocation2 + $0x800] sm:$0xff]  ;;  %940 = vmatpush.msrb.mxu2 %v672_v54  ;;  %v2575_v1 = vadd.f32 %v261_v21, %v251_v61  ;;  %v2585_v15 = vadd.f32 %v266_v63, %v256_v46  ;;  %v337_v21 = vld [vmem:[#allocation2 + $0x1a8] sm:$0xff] }
  0xa2   :  { %v740_v62 = vld [vmem:[#allocation2 + $0xe40] sm:$0xff]  ;;  %901 = vmatpush.msrb.mxu0 %v540_v49  ;;  %v2587_v16 = vadd.f32 %v264_v5, %v254_v4  ;;  %v2591_v53 = vadd.f32 %v265_v13, %v255_v12  ;;  %v533_v25 = vld [vmem:[#allocation2 + $0x7c8] sm:$0xff] }
  0xa3   :  { %v612_v2 = vld [vmem:[#allocation2 + $0xa40] sm:$0xff]  ;;  %842 = vmatmul.f32.vlgmr.msra.gmra.mxu1 %v2575_v1  ;;  %959 = vmatpush.msrb.mxu3 %v740_v62  ;;  %v333_v26 = vld [vmem:[#allocation2 + $0x188] sm:$0xff] }
  0xa4   :  { %v668_v3 = vld [vmem:[#allocation2 + $0xc00] sm:$0xff]  ;;  %919 = vmatpush.msrb.mxu1 %v612_v2  ;;  %966 = vmatpush.msra.mxu0 %v345_v50  ;;  %v405_v27 = vld [vmem:[#allocation2 + $0x3c8] sm:$0xff] }
  0xa5   :  { %v736_v7 = vld [vmem:[#allocation2 + $0xe20] sm:$0xff]  ;;  %941 = vmatpush.msrb.mxu2 %v668_v3  ;;  %902 = vmatmul.f32.vlgmr.msrb.gmra.mxu0 %v2587_v16  ;;  %v521_v37 = vld [vmem:[#allocation2 + $0x768] sm:$0xff] }
  0xa6   :  { %v608_v11 = vld [vmem:[#allocation2 + $0xa20] sm:$0xff]  ;;  %960 = vmatpush.msrb.mxu3 %v736_v7  ;;  %967 = vmatpush.msra.mxu0 %v341_v47  ;;  %v321_v38 = vld [vmem:[#allocation2 + $0x128] sm:$0xff] }
  0xa7   :  { %v732_v14 = vld [vmem:[#allocation2 + $0xe00] sm:$0xff]  ;;  %1006 = vmatpush.msra.mxu2 %v473_v10  ;;  %920 = vmatpush.msrb.mxu1 %v608_v11  ;;  %v393_v39 = vld [vmem:[#allocation2 + $0x368] sm:$0xff] }
  0xa8   :  { %961 = vmatpush.msrb.mxu3 %v732_v14  ;;  %v604_v20 = vld [vmem:[#allocation2 + $0xa00] sm:$0xff]  ;;  %942 = vmatmul.f32.vlgmr.msrb.gmra.mxu2 %v2585_v15  ;;  %v449_v43 = vld [vmem:[#allocation2 + $0x528] sm:$0xff] }
  0xa9   :  { %1007 = vmatpush.msra.mxu2 %v469_v17  ;;  %962 = vmatmul.f32.vlgmr.msrb.gmra.mxu3 %v2589_v19  ;;  %v317_v48 = vld [vmem:[#allocation2 + $0x108] sm:$0xff] }
  0xaa   :  { %1026 = vmatpush.msra.mxu3 %v537_v18  ;;  %921 = vmatpush.msrb.mxu1 %v604_v20  ;;  %v389_v51 = vld [vmem:[#allocation2 + $0x348] sm:$0xff] }
  0xab   :  { %922 = vmatmul.f32.vlgmr.msrb.gmra.mxu1 %v2591_v53  ;;  %968 = vmatpush.msra.mxu0 %v337_v21  ;;  %v445_v42 = vld [vmem:[#allocation2 + $0x508] sm:$0xff] }
  0xac   :  { %986 = vmatpush.msra.mxu1 %v409_v22  ;;  %1008 = vmatpush.msra.mxu2 %v465_v23  ;;  %v513_v52 = vld [vmem:[#allocation2 + $0x728] sm:$0xff] }
  0xad   :  { %1027 = vmatpush.msra.mxu3 %v533_v25  ;;  %969 = vmatpush.msra.mxu0 %v333_v26  ;;  %v313_v54 = vld [vmem:[#allocation2 + $0xe8] sm:$0xff] }
  0xae   :  { %987 = vmatpush.msra.mxu1 %v405_v27  ;;  %1009 = vmatpush.msra.mxu2 %v461_v28  ;;  %v385_v55 = vld [vmem:[#allocation2 + $0x328] sm:$0xff] }
  0xaf   :  { %1028 = vmatpush.msra.mxu3 %v529_v29  ;;  %970 = vmatpush.msra.mxu0 %v329_v30  ;;  %v441_v40 = vld [vmem:[#allocation2 + $0x4e8] sm:$0xff] }
  0xb0   :  { %988 = vmatpush.msra.mxu1 %v401_v31  ;;  %1010 = vmatpush.msra.mxu2 %v457_v32  ;;  %v509_v45 = vld [vmem:[#allocation2 + $0x708] sm:$0xff] }
  0xb1   :  { %1029 = vmatpush.msra.mxu3 %v525_v33  ;;  %971 = vmatpush.msra.mxu0 %v325_v34  ;;  %v309_v56 = vld [vmem:[#allocation2 + $0xc8] sm:$0xff] }
  0xb2   :  { %989 = vmatpush.msra.mxu1 %v397_v35  ;;  %1011 = vmatpush.msra.mxu2 %v453_v36  ;;  %v381_v57 = vld [vmem:[#allocation2 + $0x308] sm:$0xff] }
  0xb3   :  { %1030 = vmatpush.msra.mxu3 %v521_v37  ;;  %972 = vmatpush.msra.mxu0 %v321_v38  ;;  %v505_v59 = vld [vmem:[#allocation2 + $0x6e8] sm:$0xff] }
  0xb4   :  { %990 = vmatpush.msra.mxu1 %v393_v39  ;;  %1012 = vmatpush.msra.mxu2 %v449_v43  ;;  %v305_v61 = vld [vmem:[#allocation2 + $0xa8] sm:$0xff] }
  0xb5   :  { %1031 = vmatpush.msra.mxu3 %v517_v44  ;;  %973 = vmatpush.msra.mxu0 %v317_v48  ;;  %v377_v49 = vld [vmem:[#allocation2 + $0x2e8] sm:$0xff] }
  0xb6   :  { %991 = vmatpush.msra.mxu1 %v389_v51  ;;  %1013 = vmatpush.msra.mxu2 %v445_v42  ;;  %v433_v62 = vld [vmem:[#allocation2 + $0x4a8] sm:$0xff] }
  0xb7   :  { %1032 = vmatpush.msra.mxu3 %v513_v52  ;;  %974 = vmatpush.msra.mxu0 %v313_v54  ;;  %v501_v46 = vld [vmem:[#allocation2 + $0x6c8] sm:$0xff] }
  0xb8   :  { %992 = vmatpush.msra.mxu1 %v385_v55  ;;  %1014 = vmatpush.msra.mxu2 %v441_v40  ;;  %v301_v63 = vld [vmem:[#allocation2 + $0x88] sm:$0xff] }
  0xb9   :  { %1033 = vmatpush.msra.mxu3 %v509_v45  ;;  %975 = vmatpush.msra.mxu0 %v309_v56  ;;  %v373_v0 = vld [vmem:[#allocation2 + $0x2c8] sm:$0xff] }
  0xba   :  { %993 = vmatpush.msra.mxu1 %v381_v57  ;;  %1015 = vmatpush.msra.mxu2 %v437_v58  ;;  %v429_v2 = vld [vmem:[#allocation2 + $0x488] sm:$0xff] }
  0xbb   :  { %1034 = vmatpush.msra.mxu3 %v505_v59  ;;  %976 = vmatpush.msra.mxu0 %v305_v61  ;;  %v497_v3 = vld [vmem:[#allocation2 + $0x6a8] sm:$0xff] }
  0xbc   :  { %994 = vmatpush.msra.mxu1 %v377_v49  ;;  %1016 = vmatpush.msra.mxu2 %v433_v62  ;;  %v297_v4 = vld [vmem:[#allocation2 + $0x68] sm:$0xff] }
  0xbd   :  { %1035 = vmatpush.msra.mxu3 %v501_v46  ;;  %977 = vmatpush.msra.mxu0 %v301_v63  ;;  %v369_v5 = vld [vmem:[#allocation2 + $0x2a8] sm:$0xff] }
  0xbe   :  { %v425_v6 = vld [vmem:[#allocation2 + $0x468] sm:$0xff]  ;;  %995 = vmatpush.msra.mxu1 %v373_v0  ;;  %1017 = vmatpush.msra.mxu2 %v429_v2 }
  0xbf   :  { %v493_v7 = vld [vmem:[#allocation2 + $0x688] sm:$0xff]  ;;  %1036 = vmatpush.msra.mxu3 %v497_v3  ;;  %978 = vmatpush.msra.mxu0 %v297_v4 }
  0xc0   :  { %v293_v50 = vld [vmem:[#allocation2 + $0x48] sm:$0xff]  ;;  %996 = vmatpush.msra.mxu1 %v369_v5  ;;  %1018 = vmatpush.msra.mxu2 %v425_v6 }
  0xc1   :  { %v365_v8 = vld [vmem:[#allocation2 + $0x288] sm:$0xff]  ;;  %1037 = vmatpush.msra.mxu3 %v493_v7  ;;  %979 = vmatpush.msra.mxu0 %v293_v50 }
  0xc2   :  { %v421_v9 = vld [vmem:[#allocation2 + $0x448] sm:$0xff]  ;;  %997 = vmatpush.msra.mxu1 %v365_v8 }
  0xc3   :  { %v489_v10 = vld [vmem:[#allocation2 + $0x668] sm:$0xff]  ;;  %1019 = vmatpush.msra.mxu2 %v421_v9 }
  0xc4   :  { %v289_v11 = vld [vmem:[#allocation2 + $0x28] sm:$0xff]  ;;  %1038 = vmatpush.msra.mxu3 %v489_v10 }
  0xc5   :  { %v361_v12 = vld [vmem:[#allocation2 + $0x268] sm:$0xff]  ;;  %980 = vmatpush.msra.mxu0 %v289_v11 }
  0xc6   :  { %v417_v13 = vld [vmem:[#allocation2 + $0x428] sm:$0xff]  ;;  %998 = vmatpush.msra.mxu1 %v361_v12 }
  0xc7   :  { %v485_v14 = vld [vmem:[#allocation2 + $0x648] sm:$0xff]  ;;  %1020 = vmatpush.msra.mxu2 %v417_v13 }
  0xc8   :  { %v285_v47 = vld [vmem:[#allocation2 + $0x8] sm:$0xff]  ;;  %1039 = vmatpush.msra.mxu3 %v485_v14 }
  0xc9   :  { %v357_v17 = vld [vmem:[#allocation2 + $0x248] sm:$0xff]  ;;  %981 = vmatpush.msra.mxu0 %v285_v47 }
  0xca   :  { %v413_v18 = vld [vmem:[#allocation2 + $0x408] sm:$0xff]  ;;  %999 = vmatpush.msra.mxu1 %v357_v17  ;;  %982 = vmatmul.f32.vlgmr.msra.gmra.mxu0 %v2565_v60 }
  0xcb   :  { %v481_v20 = vld [vmem:[#allocation2 + $0x628] sm:$0xff]  ;;  %1021 = vmatpush.msra.mxu2 %v413_v18 }
  0xcc   :  { %v601_v21 = vld [vmem:[#allocation2 + $0x9e8] sm:$0xff]  ;;  %1040 = vmatpush.msra.mxu3 %v481_v20  ;;  %1022 = vmatmul.f32.vlgmr.msra.gmra.mxu2 %v2563_v24 }
  0xcd   :  { %v729_v22 = vld [vmem:[#allocation2 + $0xde8] sm:$0xff]  ;;  %1046 = vmatpush.msrb.mxu0 %v601_v21 }
  0xce   :  { %v353_v23 = vld [vmem:[#allocation2 + $0x228] sm:$0xff]  ;;  %1086 = vmatpush.msrb.mxu2 %v729_v22 }
  0xcf   :  { %v477_v25 = vld [vmem:[#allocation2 + $0x608] sm:$0xff]  ;;  %1000 = vmatpush.msra.mxu1 %v353_v23 }
  0xd0   :  { %v597_v26 = vld [vmem:[#allocation2 + $0x9c8] sm:$0xff]  ;;  %1041 = vmatpush.msra.mxu3 %v477_v25 }
  0xd1   :  { %v725_v27 = vld [vmem:[#allocation2 + $0xdc8] sm:$0xff]  ;;  %1047 = vmatpush.msrb.mxu0 %v597_v26  ;;  %1042 = vmatmul.f32.vlgmr.msra.gmra.mxu3 %v2567_v41 }
  0xd2   :  { %v793_v28 = vld [vmem:[#allocation2 + $0xfe8] sm:$0xff]  ;;  %1087 = vmatpush.msrb.mxu2 %v725_v27 }
  0xd3   :  { %v349_v29 = vld [vmem:[#allocation2 + $0x208] sm:$0xff]  ;;  %1106 = vmatpush.msrb.mxu3 %v793_v28 }
  0xd4   :  { %v593_v30 = vld [vmem:[#allocation2 + $0x9a8] sm:$0xff]  ;;  %1001 = vmatpush.msra.mxu1 %v349_v29 }
  0xd5   :  { %v665_v31 = vld [vmem:[#allocation2 + $0xbe8] sm:$0xff]  ;;  %1048 = vmatpush.msrb.mxu0 %v593_v30  ;;  %1002 = vmatmul.f32.vlgmr.msra.gmra.mxu1 %v2575_v1  ;;  %v346_v30 = vld [vmem:[#allocation2 + $0x1f0] sm:$0xff] }
  0xd6   :  { %v721_v32 = vld [vmem:[#allocation2 + $0xda8] sm:$0xff]  ;;  %1066 = vmatpush.msrb.mxu1 %v665_v31  ;;  %v474_v31 = vld [vmem:[#allocation2 + $0x5f0] sm:$0xff] }
  0xd7   :  { %v789_v33 = vld [vmem:[#allocation2 + $0xfc8] sm:$0xff]  ;;  %1088 = vmatpush.msrb.mxu2 %v721_v32 }
  0xd8   :  { %v589_v34 = vld [vmem:[#allocation2 + $0x988] sm:$0xff]  ;;  %1107 = vmatpush.msrb.mxu3 %v789_v33 }
  0xd9   :  { %v661_v35 = vld [vmem:[#allocation2 + $0xbc8] sm:$0xff]  ;;  %1049 = vmatpush.msrb.mxu0 %v589_v34  ;;  %v342_v34 = vld [vmem:[#allocation2 + $0x1d0] sm:$0xff] }
  0xda   :  { %v717_v36 = vld [vmem:[#allocation2 + $0xd88] sm:$0xff]  ;;  %1067 = vmatpush.msrb.mxu1 %v661_v35  ;;  %v470_v35 = vld [vmem:[#allocation2 + $0x5d0] sm:$0xff] }
  0xdb   :  { %v785_v37 = vld [vmem:[#allocation2 + $0xfa8] sm:$0xff]  ;;  %1089 = vmatpush.msrb.mxu2 %v717_v36  ;;  %v538_v36 = vld [vmem:[#allocation2 + $0x7f0] sm:$0xff] }
  0xdc   :  { %v585_v38 = vld [vmem:[#allocation2 + $0x968] sm:$0xff]  ;;  %1108 = vmatpush.msrb.mxu3 %v785_v37 }
  0xdd   :  { %v657_v39 = vld [vmem:[#allocation2 + $0xba8] sm:$0xff]  ;;  %1050 = vmatpush.msrb.mxu0 %v585_v38  ;;  %v338_v38 = vld [vmem:[#allocation2 + $0x1b0] sm:$0xff] }
  0xde   :  { %v713_v43 = vld [vmem:[#allocation2 + $0xd68] sm:$0xff]  ;;  %1068 = vmatpush.msrb.mxu1 %v657_v39  ;;  %v410_v39 = vld [vmem:[#allocation2 + $0x3f0] sm:$0xff] }
  0xdf   :  { %v781_v44 = vld [vmem:[#allocation2 + $0xf88] sm:$0xff]  ;;  %1090 = vmatpush.msrb.mxu2 %v713_v43  ;;  %v466_v43 = vld [vmem:[#allocation2 + $0x5b0] sm:$0xff] }
  0xe0   :  { %v581_v48 = vld [vmem:[#allocation2 + $0x948] sm:$0xff]  ;;  %1109 = vmatpush.msrb.mxu3 %v781_v44  ;;  %v534_v44 = vld [vmem:[#allocation2 + $0x7d0] sm:$0xff] }
  0xe1   :  { %v653_v51 = vld [vmem:[#allocation2 + $0xb88] sm:$0xff]  ;;  %1051 = vmatpush.msrb.mxu0 %v581_v48  ;;  %v334_v48 = vld [vmem:[#allocation2 + $0x190] sm:$0xff] }
  0xe2   :  { %v709_v42 = vld [vmem:[#allocation2 + $0xd48] sm:$0xff]  ;;  %1069 = vmatpush.msrb.mxu1 %v653_v51  ;;  %v406_v51 = vld [vmem:[#allocation2 + $0x3d0] sm:$0xff] }
  0xe3   :  { %v777_v52 = vld [vmem:[#allocation2 + $0xf68] sm:$0xff]  ;;  %1091 = vmatpush.msrb.mxu2 %v709_v42  ;;  %v462_v42 = vld [vmem:[#allocation2 + $0x590] sm:$0xff] }
  0xe4   :  { %v577_v54 = vld [vmem:[#allocation2 + $0x928] sm:$0xff]  ;;  %1110 = vmatpush.msrb.mxu3 %v777_v52  ;;  %v530_v52 = vld [vmem:[#allocation2 + $0x7b0] sm:$0xff] }
  0xe5   :  { %v649_v55 = vld [vmem:[#allocation2 + $0xb68] sm:$0xff]  ;;  %1052 = vmatpush.msrb.mxu0 %v577_v54  ;;  %v330_v54 = vld [vmem:[#allocation2 + $0x170] sm:$0xff] }
  0xe6   :  { %v705_v40 = vld [vmem:[#allocation2 + $0xd28] sm:$0xff]  ;;  %1070 = vmatpush.msrb.mxu1 %v649_v55  ;;  %v402_v55 = vld [vmem:[#allocation2 + $0x3b0] sm:$0xff] }
  0xe7   :  { %v773_v45 = vld [vmem:[#allocation2 + $0xf48] sm:$0xff]  ;;  %1092 = vmatpush.msrb.mxu2 %v705_v40  ;;  %v458_v40 = vld [vmem:[#allocation2 + $0x570] sm:$0xff] }
  0xe8   :  { %v573_v56 = vld [vmem:[#allocation2 + $0x908] sm:$0xff]  ;;  %1111 = vmatpush.msrb.mxu3 %v773_v45  ;;  %v526_v45 = vld [vmem:[#allocation2 + $0x790] sm:$0xff] }
  0xe9   :  { %v645_v57 = vld [vmem:[#allocation2 + $0xb48] sm:$0xff]  ;;  %1053 = vmatpush.msrb.mxu0 %v573_v56  ;;  %v326_v56 = vld [vmem:[#allocation2 + $0x150] sm:$0xff] }
  0xea   :  { %v701_v58 = vld [vmem:[#allocation2 + $0xd08] sm:$0xff]  ;;  %1071 = vmatpush.msrb.mxu1 %v645_v57  ;;  %v398_v57 = vld [vmem:[#allocation2 + $0x390] sm:$0xff] }
  0xeb   :  { %v769_v59 = vld [vmem:[#allocation2 + $0xf28] sm:$0xff]  ;;  %1093 = vmatpush.msrb.mxu2 %v701_v58  ;;  %v454_v58 = vld [vmem:[#allocation2 + $0x550] sm:$0xff] }
  0xec   :  { %v569_v61 = vld [vmem:[#allocation2 + $0x8e8] sm:$0xff]  ;;  %1112 = vmatpush.msrb.mxu3 %v769_v59  ;;  %v522_v59 = vld [vmem:[#allocation2 + $0x770] sm:$0xff] }
  0xed   :  { %v641_v49 = vld [vmem:[#allocation2 + $0xb28] sm:$0xff]  ;;  %1054 = vmatpush.msrb.mxu0 %v569_v61  ;;  %v322_v61 = vld [vmem:[#allocation2 + $0x130] sm:$0xff] }
  0xee   :  { %v697_v62 = vld [vmem:[#allocation2 + $0xce8] sm:$0xff]  ;;  %1072 = vmatpush.msrb.mxu1 %v641_v49  ;;  %v394_v49 = vld [vmem:[#allocation2 + $0x370] sm:$0xff] }
  0xef   :  { %v765_v46 = vld [vmem:[#allocation2 + $0xf08] sm:$0xff]  ;;  %1094 = vmatpush.msrb.mxu2 %v697_v62  ;;  %v450_v62 = vld [vmem:[#allocation2 + $0x530] sm:$0xff] }
  0xf0   :  { %v565_v63 = vld [vmem:[#allocation2 + $0x8c8] sm:$0xff]  ;;  %1113 = vmatpush.msrb.mxu3 %v765_v46  ;;  %v518_v46 = vld [vmem:[#allocation2 + $0x750] sm:$0xff] }
  0xf1   :  { %v637_v0 = vld [vmem:[#allocation2 + $0xb08] sm:$0xff]  ;;  %1055 = vmatpush.msrb.mxu0 %v565_v63  ;;  %v318_v63 = vld [vmem:[#allocation2 + $0x110] sm:$0xff] }
  0xf2   :  { %v693_v2 = vld [vmem:[#allocation2 + $0xcc8] sm:$0xff]  ;;  %1073 = vmatpush.msrb.mxu1 %v637_v0  ;;  %v390_v0 = vld [vmem:[#allocation2 + $0x350] sm:$0xff] }
  0xf3   :  { %v761_v3 = vld [vmem:[#allocation2 + $0xee8] sm:$0xff]  ;;  %1095 = vmatpush.msrb.mxu2 %v693_v2  ;;  %v446_v2 = vld [vmem:[#allocation2 + $0x510] sm:$0xff] }
  0xf4   :  { %v561_v4 = vld [vmem:[#allocation2 + $0x8a8] sm:$0xff]  ;;  %1114 = vmatpush.msrb.mxu3 %v761_v3  ;;  %v514_v3 = vld [vmem:[#allocation2 + $0x730] sm:$0xff] }
  0xf5   :  { %v633_v5 = vld [vmem:[#allocation2 + $0xae8] sm:$0xff]  ;;  %1056 = vmatpush.msrb.mxu0 %v561_v4  ;;  %v314_v4 = vld [vmem:[#allocation2 + $0xf0] sm:$0xff] }
  0xf6   :  { %v689_v6 = vld [vmem:[#allocation2 + $0xca8] sm:$0xff]  ;;  %1074 = vmatpush.msrb.mxu1 %v633_v5  ;;  %v386_v5 = vld [vmem:[#allocation2 + $0x330] sm:$0xff] }
  0xf7   :  { %v757_v7 = vld [vmem:[#allocation2 + $0xec8] sm:$0xff]  ;;  %1096 = vmatpush.msrb.mxu2 %v689_v6  ;;  %v442_v6 = vld [vmem:[#allocation2 + $0x4f0] sm:$0xff] }
  0xf8   :  { %v557_v50 = vld [vmem:[#allocation2 + $0x888] sm:$0xff]  ;;  %1115 = vmatpush.msrb.mxu3 %v757_v7  ;;  %v510_v7 = vld [vmem:[#allocation2 + $0x710] sm:$0xff] }
  0xf9   :  { %v629_v8 = vld [vmem:[#allocation2 + $0xac8] sm:$0xff]  ;;  %1057 = vmatpush.msrb.mxu0 %v557_v50  ;;  %v310_v50 = vld [vmem:[#allocation2 + $0xd0] sm:$0xff] }
  0xfa   :  { %v685_v9 = vld [vmem:[#allocation2 + $0xc88] sm:$0xff]  ;;  %1075 = vmatpush.msrb.mxu1 %v629_v8  ;;  %v382_v8 = vld [vmem:[#allocation2 + $0x310] sm:$0xff] }
  0xfb   :  { %v753_v10 = vld [vmem:[#allocation2 + $0xea8] sm:$0xff]  ;;  %1097 = vmatpush.msrb.mxu2 %v685_v9  ;;  %v438_v9 = vld [vmem:[#allocation2 + $0x4d0] sm:$0xff] }
  0xfc   :  { %v553_v11 = vld [vmem:[#allocation2 + $0x868] sm:$0xff]  ;;  %1116 = vmatpush.msrb.mxu3 %v753_v10  ;;  %v506_v10 = vld [vmem:[#allocation2 + $0x6f0] sm:$0xff] }
  0xfd   :  { %v625_v12 = vld [vmem:[#allocation2 + $0xaa8] sm:$0xff]  ;;  %1058 = vmatpush.msrb.mxu0 %v553_v11  ;;  %v306_v11 = vld [vmem:[#allocation2 + $0xb0] sm:$0xff] }
  0xfe   :  { %v681_v13 = vld [vmem:[#allocation2 + $0xc68] sm:$0xff]  ;;  %1076 = vmatpush.msrb.mxu1 %v625_v12  ;;  %v378_v12 = vld [vmem:[#allocation2 + $0x2f0] sm:$0xff] }
  0xff   :  { %v749_v14 = vld [vmem:[#allocation2 + $0xe88] sm:$0xff]  ;;  %1098 = vmatpush.msrb.mxu2 %v681_v13  ;;  %v434_v13 = vld [vmem:[#allocation2 + $0x4b0] sm:$0xff] }
 0x100   :  { %v549_v47 = vld [vmem:[#allocation2 + $0x848] sm:$0xff]  ;;  %1117 = vmatpush.msrb.mxu3 %v749_v14  ;;  %v502_v14 = vld [vmem:[#allocation2 + $0x6d0] sm:$0xff] }
 0x101   :  { %v621_v17 = vld [vmem:[#allocation2 + $0xa88] sm:$0xff]  ;;  %1059 = vmatpush.msrb.mxu0 %v549_v47  ;;  %v302_v47 = vld [vmem:[#allocation2 + $0x90] sm:$0xff] }
 0x102   :  { %v677_v18 = vld [vmem:[#allocation2 + $0xc48] sm:$0xff]  ;;  %1077 = vmatpush.msrb.mxu1 %v621_v17  ;;  %v374_v17 = vld [vmem:[#allocation2 + $0x2d0] sm:$0xff] }
 0x103   :  { %v745_v20 = vld [vmem:[#allocation2 + $0xe68] sm:$0xff]  ;;  %1099 = vmatpush.msrb.mxu2 %v677_v18  ;;  %v430_v18 = vld [vmem:[#allocation2 + $0x490] sm:$0xff] }
 0x104   :  { %v545_v21 = vld [vmem:[#allocation2 + $0x828] sm:$0xff]  ;;  %1118 = vmatpush.msrb.mxu3 %v745_v20  ;;  %v498_v20 = vld [vmem:[#allocation2 + $0x6b0] sm:$0xff] }
 0x105   :  { %v617_v22 = vld [vmem:[#allocation2 + $0xa68] sm:$0xff]  ;;  %1060 = vmatpush.msrb.mxu0 %v545_v21  ;;  %v298_v21 = vld [vmem:[#allocation2 + $0x70] sm:$0xff] }
 0x106   :  { %v673_v23 = vld [vmem:[#allocation2 + $0xc28] sm:$0xff]  ;;  %1078 = vmatpush.msrb.mxu1 %v617_v22  ;;  %v370_v22 = vld [vmem:[#allocation2 + $0x2b0] sm:$0xff] }
 0x107   :  { %v741_v25 = vld [vmem:[#allocation2 + $0xe48] sm:$0xff]  ;;  %1100 = vmatpush.msrb.mxu2 %v673_v23  ;;  %v426_v23 = vld [vmem:[#allocation2 + $0x470] sm:$0xff] }
 0x108   :  { %v541_v26 = vld [vmem:[#allocation2 + $0x808] sm:$0xff]  ;;  %1119 = vmatpush.msrb.mxu3 %v741_v25  ;;  %v494_v25 = vld [vmem:[#allocation2 + $0x690] sm:$0xff] }
 0x109   :  { %v613_v27 = vld [vmem:[#allocation2 + $0xa48] sm:$0xff]  ;;  %1061 = vmatpush.msrb.mxu0 %v541_v26  ;;  %v294_v26 = vld [vmem:[#allocation2 + $0x50] sm:$0xff] }
 0x10a   :  { %v669_v28 = vld [vmem:[#allocation2 + $0xc08] sm:$0xff]  ;;  %1079 = vmatpush.msrb.mxu1 %v613_v27  ;;  %1062 = vmatmul.f32.vlgmr.msrb.gmra.mxu0 %v2587_v16  ;;  %v366_v27 = vld [vmem:[#allocation2 + $0x290] sm:$0xff] }
 0x10b   :  { %v737_v29 = vld [vmem:[#allocation2 + $0xe28] sm:$0xff]  ;;  %1101 = vmatpush.msrb.mxu2 %v669_v28  ;;  %1126 = vmatpush.msra.mxu0 %v346_v30  ;;  %v422_v28 = vld [vmem:[#allocation2 + $0x450] sm:$0xff] }
 0x10c   :  { %v609_v32 = vld [vmem:[#allocation2 + $0xa28] sm:$0xff]  ;;  %1120 = vmatpush.msrb.mxu3 %v737_v29  ;;  %1102 = vmatmul.f32.vlgmr.msrb.gmra.mxu2 %v2585_v15  ;;  %v490_v29 = vld [vmem:[#allocation2 + $0x670] sm:$0xff] }
 0x10d   :  { %v733_v33 = vld [vmem:[#allocation2 + $0xe08] sm:$0xff]  ;;  %1166 = vmatpush.msra.mxu2 %v474_v31  ;;  %1080 = vmatpush.msrb.mxu1 %v609_v32  ;;  %v290_v30 = vld [vmem:[#allocation2 + $0x30] sm:$0xff] }
 0x10e   :  { %1121 = vmatpush.msrb.mxu3 %v733_v33  ;;  %v605_v37 = vld [vmem:[#allocation2 + $0xa08] sm:$0xff]  ;;  %1127 = vmatpush.msra.mxu0 %v342_v34  ;;  %v362_v31 = vld [vmem:[#allocation2 + $0x270] sm:$0xff] }
 0x10f   :  { %1122 = vmatmul.f32.vlgmr.msrb.gmra.mxu3 %v2589_v19  ;;  %1167 = vmatpush.msra.mxu2 %v470_v35  ;;  %v418_v32 = vld [vmem:[#allocation2 + $0x430] sm:$0xff] }
 0x110   :  { %1186 = vmatpush.msra.mxu3 %v538_v36  ;;  %1081 = vmatpush.msrb.mxu1 %v605_v37  ;;  %v486_v33 = vld [vmem:[#allocation2 + $0x650] sm:$0xff] }
 0x111   :  { %1082 = vmatmul.f32.vlgmr.msrb.gmra.mxu1 %v2591_v53  ;;  %1128 = vmatpush.msra.mxu0 %v338_v38  ;;  %v286_v34 = vld [vmem:[#allocation2 + $0x10] sm:$0xff] }
 0x112   :  { %1146 = vmatpush.msra.mxu1 %v410_v39  ;;  %1168 = vmatpush.msra.mxu2 %v466_v43  ;;  %v358_v35 = vld [vmem:[#allocation2 + $0x250] sm:$0xff] }
 0x113   :  { %1187 = vmatpush.msra.mxu3 %v534_v44  ;;  %1129 = vmatpush.msra.mxu0 %v334_v48  ;;  %v414_v36 = vld [vmem:[#allocation2 + $0x410] sm:$0xff] }
 0x114   :  { %1147 = vmatpush.msra.mxu1 %v406_v51  ;;  %1169 = vmatpush.msra.mxu2 %v462_v42  ;;  %v482_v37 = vld [vmem:[#allocation2 + $0x630] sm:$0xff] }
 0x115   :  { %1188 = vmatpush.msra.mxu3 %v530_v52  ;;  %1130 = vmatpush.msra.mxu0 %v330_v54  ;;  %v602_v38 = vld [vmem:[#allocation2 + $0x9f0] sm:$0xff] }
 0x116   :  { %1148 = vmatpush.msra.mxu1 %v402_v55  ;;  %1170 = vmatpush.msra.mxu2 %v458_v40  ;;  %v730_v39 = vld [vmem:[#allocation2 + $0xdf0] sm:$0xff] }
 0x117   :  { %1189 = vmatpush.msra.mxu3 %v526_v45  ;;  %1131 = vmatpush.msra.mxu0 %v326_v56  ;;  %v354_v43 = vld [vmem:[#allocation2 + $0x230] sm:$0xff] }
 0x118   :  { %1149 = vmatpush.msra.mxu1 %v398_v57  ;;  %1171 = vmatpush.msra.mxu2 %v454_v58  ;;  %v478_v44 = vld [vmem:[#allocation2 + $0x610] sm:$0xff] }
 0x119   :  { %1190 = vmatpush.msra.mxu3 %v522_v59  ;;  %1132 = vmatpush.msra.mxu0 %v322_v61  ;;  %v598_v48 = vld [vmem:[#allocation2 + $0x9d0] sm:$0xff] }
 0x11a   :  { %1150 = vmatpush.msra.mxu1 %v394_v49  ;;  %1172 = vmatpush.msra.mxu2 %v450_v62  ;;  %v726_v51 = vld [vmem:[#allocation2 + $0xdd0] sm:$0xff] }
 0x11b   :  { %1191 = vmatpush.msra.mxu3 %v518_v46  ;;  %1133 = vmatpush.msra.mxu0 %v318_v63  ;;  %v794_v42 = vld [vmem:[#allocation2 + $0xff0] sm:$0xff] }
 0x11c   :  { %1151 = vmatpush.msra.mxu1 %v390_v0  ;;  %1173 = vmatpush.msra.mxu2 %v446_v2  ;;  %v350_v52 = vld [vmem:[#allocation2 + $0x210] sm:$0xff] }
 0x11d   :  { %1192 = vmatpush.msra.mxu3 %v514_v3  ;;  %1134 = vmatpush.msra.mxu0 %v314_v4  ;;  %v594_v54 = vld [vmem:[#allocation2 + $0x9b0] sm:$0xff] }
 0x11e   :  { %1152 = vmatpush.msra.mxu1 %v386_v5  ;;  %1174 = vmatpush.msra.mxu2 %v442_v6  ;;  %v666_v55 = vld [vmem:[#allocation2 + $0xbf0] sm:$0xff] }
 0x11f   :  { %1193 = vmatpush.msra.mxu3 %v510_v7  ;;  %1135 = vmatpush.msra.mxu0 %v310_v50  ;;  %v722_v40 = vld [vmem:[#allocation2 + $0xdb0] sm:$0xff] }
 0x120   :  { %1153 = vmatpush.msra.mxu1 %v382_v8  ;;  %1175 = vmatpush.msra.mxu2 %v438_v9  ;;  %v790_v45 = vld [vmem:[#allocation2 + $0xfd0] sm:$0xff] }
 0x121   :  { %1194 = vmatpush.msra.mxu3 %v506_v10  ;;  %1136 = vmatpush.msra.mxu0 %v306_v11  ;;  %v590_v56 = vld [vmem:[#allocation2 + $0x990] sm:$0xff] }
 0x122   :  { %1154 = vmatpush.msra.mxu1 %v378_v12  ;;  %1176 = vmatpush.msra.mxu2 %v434_v13  ;;  %v662_v57 = vld [vmem:[#allocation2 + $0xbd0] sm:$0xff]  ;;  %v2605_v12 = vld [vmem:[#allocation4] sm:$0xf] }
 0x123   :  { %1195 = vmatpush.msra.mxu3 %v502_v14  ;;  %1137 = vmatpush.msra.mxu0 %v302_v47  ;;  %v718_v58 = vld [vmem:[#allocation2 + $0xd90] sm:$0xff] }
 0x124   :  { %1155 = vmatpush.msra.mxu1 %v374_v17  ;;  %1177 = vmatpush.msra.mxu2 %v430_v18  ;;  %v786_v59 = vld [vmem:[#allocation2 + $0xfb0] sm:$0xff] }
 0x125   :  { %1196 = vmatpush.msra.mxu3 %v498_v20  ;;  %1138 = vmatpush.msra.mxu0 %v298_v21  ;;  %v586_v61 = vld [vmem:[#allocation2 + $0x970] sm:$0xff]  ;;  %v798_v21 = vperm.slane %v2605_v12, 0 }
 0x126   :  { %1156 = vmatpush.msra.mxu1 %v370_v22  ;;  %1178 = vmatpush.msra.mxu2 %v426_v23  ;;  %v658_v49 = vld [vmem:[#allocation2 + $0xbb0] sm:$0xff] }
 0x127   :  { %1197 = vmatpush.msra.mxu3 %v494_v25  ;;  %1139 = vmatpush.msra.mxu0 %v294_v26  ;;  %v714_v62 = vld [vmem:[#allocation2 + $0xd70] sm:$0xff] }
 0x128   :  { %1157 = vmatpush.msra.mxu1 %v366_v27  ;;  %1179 = vmatpush.msra.mxu2 %v422_v28  ;;  %v782_v46 = vld [vmem:[#allocation2 + $0xf90] sm:$0xff] }
 0x129   :  { %1198 = vmatpush.msra.mxu3 %v490_v29  ;;  %1140 = vmatpush.msra.mxu0 %v290_v30  ;;  %v582_v63 = vld [vmem:[#allocation2 + $0x950] sm:$0xff]  ;;  %v823_v29 = vpop.f32.mrf.mxu0 }
 0x12a   :  { %1158 = vmatpush.msra.mxu1 %v362_v31  ;;  %1180 = vmatpush.msra.mxu2 %v418_v32  ;;  %v654_v0 = vld [vmem:[#allocation2 + $0xb90] sm:$0xff]  ;;  %v824_v32 = vadd.f32 %v823_v29, %v798_v21  ;;  %v407_v21 = vld [vmem:[#allocation2 + $0x3d8] sm:$0xff] }
 0x12b   :  { %1199 = vmatpush.msra.mxu3 %v486_v33  ;;  %1141 = vmatpush.msra.mxu0 %v286_v34  ;;  %v710_v2 = vld [vmem:[#allocation2 + $0xd50] sm:$0xff]  ;;  %v843_v34 = vpop.f32.mrf.mxu1  ;;  %v403_v29 = vld [vmem:[#allocation2 + $0x3b8] sm:$0xff] }
 0x12c   :  { %1159 = vmatpush.msra.mxu1 %v358_v35  ;;  %1181 = vmatpush.msra.mxu2 %v414_v36  ;;  %v778_v3 = vld [vmem:[#allocation2 + $0xf70] sm:$0xff] }
 0x12d   :  { %1200 = vmatpush.msra.mxu3 %v482_v37  ;;  %1206 = vmatpush.msrb.mxu0 %v602_v38  ;;  %v578_v4 = vld [vmem:[#allocation2 + $0x930] sm:$0xff]  ;;  %v844_v37 = vadd.f32 %v843_v34, %v824_v32  ;;  %v327_v32 = vld [vmem:[#allocation2 + $0x158] sm:$0xff] }
 0x12e   :  { %1246 = vmatpush.msrb.mxu2 %v730_v39  ;;  %1160 = vmatpush.msra.mxu1 %v354_v43  ;;  %v650_v5 = vld [vmem:[#allocation2 + $0xb70] sm:$0xff]  ;;  %v399_v34 = vld [vmem:[#allocation2 + $0x398] sm:$0xff] }
 0x12f   :  { %1201 = vmatpush.msra.mxu3 %v478_v44  ;;  %1207 = vmatpush.msrb.mxu0 %v598_v48  ;;  %v706_v6 = vld [vmem:[#allocation2 + $0xd30] sm:$0xff]  ;;  %v863_v48 = vpop.f32.mrf.mxu2 }
 0x130   :  { %1247 = vmatpush.msrb.mxu2 %v726_v51  ;;  %1161 = vmatpush.msra.mxu1 %v350_v52  ;;  %v774_v7 = vld [vmem:[#allocation2 + $0xf50] sm:$0xff]  ;;  %v864_v52 = vadd.f32 %v863_v48, %v844_v37  ;;  %v523_v37 = vld [vmem:[#allocation2 + $0x778] sm:$0xff] }
 0x131   :  { %1266 = vmatpush.msrb.mxu3 %v794_v42  ;;  %1208 = vmatpush.msrb.mxu0 %v594_v54  ;;  %v574_v50 = vld [vmem:[#allocation2 + $0x910] sm:$0xff]  ;;  %v883_v54 = vpop.f32.mrf.mxu3  ;;  %v519_v48 = vld [vmem:[#allocation2 + $0x758] sm:$0xff] }
 0x132   :  { %1226 = vmatpush.msrb.mxu1 %v666_v55  ;;  %1248 = vmatpush.msrb.mxu2 %v722_v40  ;;  %v646_v8 = vld [vmem:[#allocation2 + $0xb50] sm:$0xff]  ;;  %v903_v40 = vpop.f32.mrf.mxu0 }
 0x133   :  { %1267 = vmatpush.msrb.mxu3 %v790_v45  ;;  %1209 = vmatpush.msrb.mxu0 %v590_v56  ;;  %v702_v9 = vld [vmem:[#allocation2 + $0xd10] sm:$0xff] }
 0x134   :  { %1227 = vmatpush.msrb.mxu1 %v662_v57  ;;  %1249 = vmatpush.msrb.mxu2 %v718_v58  ;;  %v770_v10 = vld [vmem:[#allocation2 + $0xf30] sm:$0xff]  ;;  %v884_v57 = vadd.f32 %v883_v54, %v864_v52  ;;  %v391_v54 = vld [vmem:[#allocation2 + $0x358] sm:$0xff] }
 0x135   :  { %1268 = vmatpush.msrb.mxu3 %v786_v59  ;;  %1210 = vmatpush.msrb.mxu0 %v586_v61  ;;  %v570_v11 = vld [vmem:[#allocation2 + $0x8f0] sm:$0xff]  ;;  %v923_v61 = vpop.f32.mrf.mxu1 }
 0x136   :  { %1228 = vmatpush.msrb.mxu1 %v658_v49  ;;  %1250 = vmatpush.msrb.mxu2 %v714_v62  ;;  %v642_v13 = vld [vmem:[#allocation2 + $0xb30] sm:$0xff] }
 0x137   :  { %1269 = vmatpush.msrb.mxu3 %v782_v46  ;;  %1211 = vmatpush.msrb.mxu0 %v582_v63  ;;  %v698_v14 = vld [vmem:[#allocation2 + $0xcf0] sm:$0xff]  ;;  %v904_v46 = vadd.f32 %v903_v40, %v884_v57  ;;  %v387_v57 = vld [vmem:[#allocation2 + $0x338] sm:$0xff] }
 0x138   :  { %1229 = vmatpush.msrb.mxu1 %v654_v0  ;;  %1251 = vmatpush.msrb.mxu2 %v710_v2  ;;  %v766_v47 = vld [vmem:[#allocation2 + $0xf10] sm:$0xff]  ;;  %v347_v0 = vld [vmem:[#allocation2 + $0x1f8] sm:$0xff] }
 0x139   :  { %1270 = vmatpush.msrb.mxu3 %v778_v3  ;;  %1212 = vmatpush.msrb.mxu0 %v578_v4  ;;  %v566_v17 = vld [vmem:[#allocation2 + $0x8d0] sm:$0xff]  ;;  %v475_v2 = vld [vmem:[#allocation2 + $0x5f8] sm:$0xff]  ;;  %v924_v3 = vadd.f32 %v923_v61, %v904_v46 }
 0x13a   :  { %1230 = vmatpush.msrb.mxu1 %v650_v5  ;;  %1252 = vmatpush.msrb.mxu2 %v706_v6  ;;  %v638_v18 = vld [vmem:[#allocation2 + $0xb10] sm:$0xff]  ;;  %v943_v6 = vpop.f32.mrf.mxu2  ;;  %v311_v61 = vld [vmem:[#allocation2 + $0xd8] sm:$0xff] }
 0x13b   :  { %1271 = vmatpush.msrb.mxu3 %v774_v7  ;;  %1213 = vmatpush.msrb.mxu0 %v574_v50  ;;  %v694_v20 = vld [vmem:[#allocation2 + $0xcd0] sm:$0xff]  ;;  %v944_v7 = vadd.f32 %v943_v6, %v924_v3  ;;  %v963_v50 = vpop.f32.mrf.mxu3  ;;  %v383_v46 = vld [vmem:[#allocation2 + $0x318] sm:$0xff] }
 0x13c   :  { %1231 = vmatpush.msrb.mxu1 %v646_v8  ;;  %1253 = vmatpush.msrb.mxu2 %v702_v9  ;;  %v762_v22 = vld [vmem:[#allocation2 + $0xef0] sm:$0xff]  ;;  %v343_v8 = vld [vmem:[#allocation2 + $0x1d8] sm:$0xff] }
 0x13d   :  { %1272 = vmatpush.msrb.mxu3 %v770_v10  ;;  %1214 = vmatpush.msrb.mxu0 %v570_v11  ;;  %v562_v23 = vld [vmem:[#allocation2 + $0x8b0] sm:$0xff]  ;;  %v471_v9 = vld [vmem:[#allocation2 + $0x5d8] sm:$0xff] }
 0x13e   :  { %1232 = vmatpush.msrb.mxu1 %v642_v13  ;;  %1254 = vmatpush.msrb.mxu2 %v698_v14  ;;  %v634_v25 = vld [vmem:[#allocation2 + $0xaf0] sm:$0xff]  ;;  %v539_v10 = vld [vmem:[#allocation2 + $0x7f8] sm:$0xff]  ;;  %v2615_v14 = vadd.f32 %v963_v50, %v944_v7 }
 0x13f   :  { %1273 = vmatpush.msrb.mxu3 %v766_v47  ;;  %1215 = vmatpush.msrb.mxu0 %v566_v17  ;;  %v690_v26 = vld [vmem:[#allocation2 + $0xcb0] sm:$0xff]  ;;  %v339_v13 = vld [vmem:[#allocation2 + $0x1b8] sm:$0xff] }
 0x140   :  { %1233 = vmatpush.msrb.mxu1 %v638_v18  ;;  %1255 = vmatpush.msrb.mxu2 %v694_v20  ;;  %v758_v27 = vld [vmem:[#allocation2 + $0xed0] sm:$0xff]  ;;  %v411_v47 = vld [vmem:[#allocation2 + $0x3f8] sm:$0xff] }
 0x141   :  { %v558_v28 = vld [vmem:[#allocation2 + $0x890] sm:$0xff]  ;;  %1274 = vmatpush.msrb.mxu3 %v762_v22  ;;  %1216 = vmatpush.msrb.mxu0 %v562_v23  ;;  %v467_v17 = vld [vmem:[#allocation2 + $0x5b8] sm:$0xff]  ;;  %v2347_v23 = vmov 2.0  }
 0x142   :  { %v630_v30 = vld [vmem:[#allocation2 + $0xad0] sm:$0xff]  ;;  %1234 = vmatpush.msrb.mxu1 %v634_v25  ;;  %1256 = vmatpush.msrb.mxu2 %v690_v26  ;;  %v535_v18 = vld [vmem:[#allocation2 + $0x7d8] sm:$0xff]  ;;  %2117 = vrcp.f32 %v2347_v23 }
 0x143   :  { %v686_v31 = vld [vmem:[#allocation2 + $0xc90] sm:$0xff]  ;;  %1275 = vmatpush.msrb.mxu3 %v758_v27  ;;  %1217 = vmatpush.msrb.mxu0 %v558_v28  ;;  %v335_v20 = vld [vmem:[#allocation2 + $0x198] sm:$0xff]  ;;  %v1449_v27 = vsel %vm1448_vm9, %v2615_v14, 0.0  ;;  %v1488_v28 = vmul.f32 %v2615_v14, %v2615_v14 }
 0x144   :  { %v754_v33 = vld [vmem:[#allocation2 + $0xeb0] sm:$0xff]  ;;  %1235 = vmatpush.msrb.mxu1 %v630_v30  ;;  %1257 = vmatpush.msrb.mxu2 %v686_v31  ;;  %v463_v22 = vld [vmem:[#allocation2 + $0x598] sm:$0xff] }
 0x145   :  { %v554_v35 = vld [vmem:[#allocation2 + $0x870] sm:$0xff]  ;;  %1276 = vmatpush.msrb.mxu3 %v754_v33  ;;  %1182 = vmatmul.f32.vlgmr.msra.gmra.mxu2 %v2563_v24  ;;  %v531_v25 = vld [vmem:[#allocation2 + $0x7b8] sm:$0xff]  ;;  %v1450_v33 = vrot.slane %v1449_v27, 4 }
 0x146   :  { %v626_v36 = vld [vmem:[#allocation2 + $0xab0] sm:$0xff]  ;;  %1218 = vmatpush.msrb.mxu0 %v554_v35  ;;  %1202 = vmatmul.f32.vlgmr.msra.gmra.mxu3 %v2567_v41  ;;  %v331_v26 = vld [vmem:[#allocation2 + $0x178] sm:$0xff] }
 0x147   :  { %v682_v38 = vld [vmem:[#allocation2 + $0xc70] sm:$0xff]  ;;  %1236 = vmatpush.msrb.mxu1 %v626_v36  ;;  %1142 = vmatmul.f32.vlgmr.msra.gmra.mxu0 %v2565_v60  ;;  %v459_v30 = vld [vmem:[#allocation2 + $0x578] sm:$0xff]  ;;  %v1492_v36 = vsel %vm1448_vm9, %v1488_v28, 0.0 }
 0x148   :  { %v750_v39 = vld [vmem:[#allocation2 + $0xe90] sm:$0xff]  ;;  %1258 = vmatpush.msrb.mxu2 %v682_v38  ;;  %1162 = vmatmul.f32.vlgmr.msra.gmra.mxu1 %v2575_v1  ;;  %v527_v31 = vld [vmem:[#allocation2 + $0x798] sm:$0xff]  ;;  %v1493_v52 = vrot.slane %v1492_v36, 4 }
 0x149   :  { %v550_v43 = vld [vmem:[#allocation2 + $0x850] sm:$0xff]  ;;  %1277 = vmatpush.msrb.mxu3 %v750_v39  ;;  %v455_v35 = vld [vmem:[#allocation2 + $0x558] sm:$0xff]  ;;  %v2623_v39 = vpop.eup %2117 }
 0x14a   :  { %v622_v44 = vld [vmem:[#allocation2 + $0xa90] sm:$0xff]  ;;  %1219 = vmatpush.msrb.mxu0 %v550_v43  ;;  %v323_v38 = vld [vmem:[#allocation2 + $0x138] sm:$0xff]  ;;  %v1478_v40 = vmul.f32 2.0, %v2623_v39  ;;  %vm1482_vm10 = vweird.f32 %v2623_v39 }
 0x14b   :  { %v678_v51 = vld [vmem:[#allocation2 + $0xc50] sm:$0xff]  ;;  %1237 = vmatpush.msrb.mxu1 %v622_v44  ;;  %v395_v43 = vld [vmem:[#allocation2 + $0x378] sm:$0xff] }
 0x14c   :  { %v746_v42 = vld [vmem:[#allocation2 + $0xe70] sm:$0xff]  ;;  %1259 = vmatpush.msrb.mxu2 %v678_v51  ;;  %v451_v44 = vld [vmem:[#allocation2 + $0x538] sm:$0xff] }
 0x14d   :  { %v546_v55 = vld [vmem:[#allocation2 + $0x830] sm:$0xff]  ;;  %1278 = vmatpush.msrb.mxu3 %v746_v42  ;;  %v319_v51 = vld [vmem:[#allocation2 + $0x118] sm:$0xff]  ;;  %v1451_v42 = vadd.f32 %v1450_v33, %v1449_v27 }
 0x14e   :  { %v618_v45 = vld [vmem:[#allocation2 + $0xa70] sm:$0xff]  ;;  %1220 = vmatpush.msrb.mxu0 %v546_v55  ;;  %v447_v55 = vld [vmem:[#allocation2 + $0x518] sm:$0xff] }
 0x14f   :  { %v674_v56 = vld [vmem:[#allocation2 + $0xc30] sm:$0xff]  ;;  %1238 = vmatpush.msrb.mxu1 %v618_v45  ;;  %v515_v45 = vld [vmem:[#allocation2 + $0x738] sm:$0xff] }
 0x150   :  { %v742_v58 = vld [vmem:[#allocation2 + $0xe50] sm:$0xff]  ;;  %1260 = vmatpush.msrb.mxu2 %v674_v56  ;;  %v315_v56 = vld [vmem:[#allocation2 + $0xf8] sm:$0xff] }
 0x151   :  { %v542_v59 = vld [vmem:[#allocation2 + $0x810] sm:$0xff]  ;;  %1279 = vmatpush.msrb.mxu3 %v742_v58  ;;  %v443_v58 = vld [vmem:[#allocation2 + $0x4f8] sm:$0xff] }
 0x152   :  { %v614_v49 = vld [vmem:[#allocation2 + $0xa50] sm:$0xff]  ;;  %1221 = vmatpush.msrb.mxu0 %v542_v59  ;;  %v511_v59 = vld [vmem:[#allocation2 + $0x718] sm:$0xff] }
 0x153   :  { %v670_v62 = vld [vmem:[#allocation2 + $0xc10] sm:$0xff]  ;;  %1239 = vmatpush.msrb.mxu1 %v614_v49  ;;  %1222 = vmatmul.f32.vlgmr.msrb.gmra.mxu0 %v2587_v16  ;;  %v1452_v49 = vrot.slane %v1451_v42, 2  ;;  %v307_v3 = vld [vmem:[#allocation2 + $0xb8] sm:$0xff] }
 0x154   :  { %v738_v63 = vld [vmem:[#allocation2 + $0xe30] sm:$0xff]  ;;  %1261 = vmatpush.msrb.mxu2 %v670_v62  ;;  %1286 = vmatpush.msra.mxu0 %v347_v0  ;;  %v1494_v62 = vadd.f32 %v1493_v52, %v1492_v36  ;;  %v1479_v0 = vsub.f32 1.0, %v1478_v40  ;;  %v503_v6 = vld [vmem:[#allocation2 + $0x6d8] sm:$0xff] }
 0x155   :  { %v610_v4 = vld [vmem:[#allocation2 + $0xa30] sm:$0xff]  ;;  %1280 = vmatpush.msrb.mxu3 %v738_v63  ;;  %1262 = vmatmul.f32.vlgmr.msrb.gmra.mxu2 %v2585_v15  ;;  %v439_v63 = vld [vmem:[#allocation2 + $0x4d8] sm:$0xff]  ;;  %v1453_v50 = vadd.f32 %v1452_v49, %v1451_v42 }
 0x156   :  { %v734_v5 = vld [vmem:[#allocation2 + $0xe10] sm:$0xff]  ;;  %1326 = vmatpush.msra.mxu2 %v475_v2  ;;  %1240 = vmatpush.msrb.mxu1 %v610_v4  ;;  %v507_v2 = vld [vmem:[#allocation2 + $0x6f8] sm:$0xff] }
 0x157   :  { %1281 = vmatpush.msrb.mxu3 %v734_v5  ;;  %v606_v11 = vld [vmem:[#allocation2 + $0xa10] sm:$0xff]  ;;  %1287 = vmatpush.msra.mxu0 %v343_v8  ;;  %v379_v4 = vld [vmem:[#allocation2 + $0x2f8] sm:$0xff]  ;;  %v1495_v8 = vrot.slane %v1494_v62, 2 }
 0x158   :  { %1282 = vmatmul.f32.vlgmr.msrb.gmra.mxu3 %v2589_v19  ;;  %1327 = vmatpush.msra.mxu2 %v471_v9  ;;  %v435_v5 = vld [vmem:[#allocation2 + $0x4b8] sm:$0xff] }
 0x159   :  { %1346 = vmatpush.msra.mxu3 %v539_v10  ;;  %1241 = vmatpush.msrb.mxu1 %v606_v11  ;;  %v303_v7 = vld [vmem:[#allocation2 + $0x98] sm:$0xff]  ;;  %v1480_v11 = vmul.f32 %v2623_v39, %v1479_v0  ;;  %v1496_v23 = vadd.f32 %v1495_v8, %v1494_v62 }
 0x15a   :  { %1242 = vmatmul.f32.vlgmr.msrb.gmra.mxu1 %v2591_v53  ;;  %1288 = vmatpush.msra.mxu0 %v339_v13  ;;  %v375_v9 = vld [vmem:[#allocation2 + $0x2d8] sm:$0xff] }
 0x15b   :  { %1306 = vmatpush.msra.mxu1 %v411_v47  ;;  %1328 = vmatpush.msra.mxu2 %v467_v17  ;;  %v431_v10 = vld [vmem:[#allocation2 + $0x498] sm:$0xff]  ;;  %v1481_v27 = vadd.f32 %v2623_v39, %v1480_v11 }
 0x15c   :  { %1347 = vmatpush.msra.mxu3 %v535_v18  ;;  %1289 = vmatpush.msra.mxu0 %v335_v20  ;;  %v499_v13 = vld [vmem:[#allocation2 + $0x6b8] sm:$0xff] }
 0x15d   :  { %1307 = vmatpush.msra.mxu1 %v407_v21  ;;  %1329 = vmatpush.msra.mxu2 %v463_v22  ;;  %v299_v47 = vld [vmem:[#allocation2 + $0x78] sm:$0xff]  ;;  %v1454_v22 = vrot.slane %v1453_v50, 1 }
 0x15e   :  { %1348 = vmatpush.msra.mxu3 %v531_v25  ;;  %1290 = vmatpush.msra.mxu0 %v331_v26  ;;  %v371_v17 = vld [vmem:[#allocation2 + $0x2b8] sm:$0xff] }
 0x15f   :  { %1308 = vmatpush.msra.mxu1 %v403_v29  ;;  %1330 = vmatpush.msra.mxu2 %v459_v30  ;;  %v427_v18 = vld [vmem:[#allocation2 + $0x478] sm:$0xff] }
 0x160   :  { %1349 = vmatpush.msra.mxu3 %v527_v31  ;;  %1291 = vmatpush.msra.mxu0 %v327_v32  ;;  %v495_v20 = vld [vmem:[#allocation2 + $0x698] sm:$0xff] }
 0x161   :  { %1309 = vmatpush.msra.mxu1 %v399_v34  ;;  %1331 = vmatpush.msra.mxu2 %v455_v35  ;;  %v295_v21 = vld [vmem:[#allocation2 + $0x58] sm:$0xff]  ;;  %v1455_v34 = vadd.f32 %v1454_v22, %v1453_v50  ;;  %v1497_v35 = vrot.slane %v1496_v23, 1 }
 0x162   :  { %1350 = vmatpush.msra.mxu3 %v523_v37  ;;  %1292 = vmatpush.msra.mxu0 %v323_v38  ;;  %v367_v25 = vld [vmem:[#allocation2 + $0x298] sm:$0xff]  ;;  %v2630_v38 = vsel %vm1482_vm10, %v2623_v39, %v1481_v27 }
 0x163   :  { %1310 = vmatpush.msra.mxu1 %v395_v43  ;;  %1332 = vmatpush.msra.mxu2 %v451_v44  ;;  %v423_v26 = vld [vmem:[#allocation2 + $0x458] sm:$0xff] }
 0x164   :  { %1351 = vmatpush.msra.mxu3 %v519_v48  ;;  %1293 = vmatpush.msra.mxu0 %v319_v51  ;;  %v491_v28 = vld [vmem:[#allocation2 + $0x678] sm:$0xff] }
 0x165   :  { %1311 = vmatpush.msra.mxu1 %v391_v54  ;;  %1333 = vmatpush.msra.mxu2 %v447_v55  ;;  %v291_v29 = vld [vmem:[#allocation2 + $0x38] sm:$0xff]  ;;  %v2633_v54 = vmul.f32 %v2630_v38, %v1455_v34  ;;  %v1498_v55 = vadd.f32 %v1497_v35, %v1496_v23 }
 0x166   :  { %1352 = vmatpush.msra.mxu3 %v515_v45  ;;  %1294 = vmatpush.msra.mxu0 %v315_v56  ;;  %v363_v30 = vld [vmem:[#allocation2 + $0x278] sm:$0xff] }
 0x167   :  { %1312 = vmatpush.msra.mxu1 %v387_v57  ;;  %1334 = vmatpush.msra.mxu2 %v443_v58  ;;  %v419_v31 = vld [vmem:[#allocation2 + $0x438] sm:$0xff]  ;;  %v1520_v49 = vmul.f32 %v1498_v55, %v2630_v38  ;;  %v1524_v62 = vmul.f32 %v2633_v54, %v2633_v54 }
 0x168   :  { %1353 = vmatpush.msra.mxu3 %v511_v59  ;;  %1295 = vmatpush.msra.mxu0 %v311_v61  ;;  %v487_v32 = vld [vmem:[#allocation2 + $0x658] sm:$0xff] }
 0x169   :  { %1313 = vmatpush.msra.mxu1 %v383_v46  ;;  %1335 = vmatpush.msra.mxu2 %v439_v63  ;;  %v287_v33 = vld [vmem:[#allocation2 + $0x18] sm:$0xff] }
 0x16a   :  { %1354 = vmatpush.msra.mxu3 %v507_v2  ;;  %1296 = vmatpush.msra.mxu0 %v307_v3  ;;  %v359_v36 = vld [vmem:[#allocation2 + $0x258] sm:$0xff] }
 0x16b   :  { %1314 = vmatpush.msra.mxu1 %v379_v4  ;;  %1336 = vmatpush.msra.mxu2 %v435_v5  ;;  %v415_v37 = vld [vmem:[#allocation2 + $0x418] sm:$0xff] }
 0x16c   :  { %1355 = vmatpush.msra.mxu3 %v503_v6  ;;  %1297 = vmatpush.msra.mxu0 %v303_v7  ;;  %v483_v43 = vld [vmem:[#allocation2 + $0x638] sm:$0xff]  ;;  %v1528_v7 = vsub.f32 %v1520_v49, %v1524_v62 }
 0x16d   :  { %1315 = vmatpush.msra.mxu1 %v375_v9  ;;  %1337 = vmatpush.msra.mxu2 %v431_v10  ;;  %v603_v44 = vld [vmem:[#allocation2 + $0x9f8] sm:$0xff] }
 0x16e   :  { %1356 = vmatpush.msra.mxu3 %v499_v13  ;;  %1298 = vmatpush.msra.mxu0 %v299_v47  ;;  %v731_v48 = vld [vmem:[#allocation2 + $0xdf8] sm:$0xff] }
 0x16f   :  { %1316 = vmatpush.msra.mxu1 %v371_v17  ;;  %1338 = vmatpush.msra.mxu2 %v427_v18  ;;  %v355_v51 = vld [vmem:[#allocation2 + $0x238] sm:$0xff]  ;;  %v1532_v18 = vmax.f32 %v1528_v7, 0.0 }
 0x170   :  { %1357 = vmatpush.msra.mxu3 %v495_v20  ;;  %1299 = vmatpush.msra.mxu0 %v295_v21  ;;  %v479_v42 = vld [vmem:[#allocation2 + $0x618] sm:$0xff] }
 0x171   :  { %1317 = vmatpush.msra.mxu1 %v367_v25  ;;  %1339 = vmatpush.msra.mxu2 %v423_v26  ;;  %v599_v52 = vld [vmem:[#allocation2 + $0x9d8] sm:$0xff]  ;;  %v799_v25 = vperm.slane %v2605_v12, 1 }
 0x172   :  { %1358 = vmatpush.msra.mxu3 %v491_v28  ;;  %1300 = vmatpush.msra.mxu0 %v291_v29  ;;  %v727_v39 = vld [vmem:[#allocation2 + $0xdd8] sm:$0xff] }
 0x173   :  { %1318 = vmatpush.msra.mxu1 %v363_v30  ;;  %1340 = vmatpush.msra.mxu2 %v419_v31  ;;  %v795_v40 = vld [vmem:[#allocation2 + $0xff8] sm:$0xff]  ;;  %v2639_v30 = vadd.f32 1e-05, %v1532_v18 }
 0x174   :  { %1359 = vmatpush.msra.mxu3 %v487_v32  ;;  %1301 = vmatpush.msra.mxu0 %v287_v33  ;;  %v351_v45 = vld [vmem:[#allocation2 + $0x218] sm:$0xff]  ;;  %v983_v33 = vpop.f32.mrf.mxu0 }
 0x175   :  { %1319 = vmatpush.msra.mxu1 %v359_v36  ;;  %1341 = vmatpush.msra.mxu2 %v415_v37  ;;  %v595_v56 = vld [vmem:[#allocation2 + $0x9b8] sm:$0xff]  ;;  %v984_v12 = vadd.f32 %v983_v33, %v799_v25  ;;  %2119 = vrsqrt.f32 %v2639_v30  ;;  %vm1550_vm12 = vweird.f32 %v2639_v30 }
 0x176   :  { %1360 = vmatpush.msra.mxu3 %v483_v43  ;;  %1366 = vmatpush.msrb.mxu0 %v603_v44  ;;  %v667_v57 = vld [vmem:[#allocation2 + $0xbf8] sm:$0xff] }
 0x177   :  { %1406 = vmatpush.msrb.mxu2 %v731_v48  ;;  %1320 = vmatpush.msra.mxu1 %v355_v51  ;;  %v723_v58 = vld [vmem:[#allocation2 + $0xdb8] sm:$0xff]  ;;  %v1003_v48 = vpop.f32.mrf.mxu1  ;;  %v1023_v51 = vpop.f32.mrf.mxu2 }
 0x178   :  { %1361 = vmatpush.msra.mxu3 %v479_v42  ;;  %1367 = vmatpush.msrb.mxu0 %v599_v52  ;;  %v791_v59 = vld [vmem:[#allocation2 + $0xfd8] sm:$0xff]  ;;  %v1004_v55 = vadd.f32 %v1003_v48, %v984_v12 }
 0x179   :  { %1407 = vmatpush.msrb.mxu2 %v727_v39  ;;  %v591_v61 = vld [vmem:[#allocation2 + $0x998] sm:$0xff]  ;;  %1321 = vmatpush.msra.mxu1 %v351_v45 }
 0x17a   :  { %1426 = vmatpush.msrb.mxu3 %v795_v40  ;;  %1368 = vmatpush.msrb.mxu0 %v595_v56  ;;  %v663_v46 = vld [vmem:[#allocation2 + $0xbd8] sm:$0xff]  ;;  %v1024_v56 = vadd.f32 %v1023_v51, %v1004_v55  ;;  %v1674_v51 = vld [vmem:[#allocation9 + $0x1c0] sm:$0xff] }
 0x17b   :  { %v719_v63 = vld [vmem:[#allocation2 + $0xd98] sm:$0xff]  ;;  %1386 = vmatpush.msrb.mxu1 %v667_v57  ;;  %1408 = vmatpush.msrb.mxu2 %v723_v58  ;;  %v1043_v57 = vpop.f32.mrf.mxu3 }
 0x17c   :  { %v787_v0 = vld [vmem:[#allocation2 + $0xfb8] sm:$0xff]  ;;  %1427 = vmatpush.msrb.mxu3 %v791_v59  ;;  %1369 = vmatpush.msrb.mxu0 %v591_v61  ;;  %v1044_v61 = vadd.f32 %v1043_v57, %v1024_v56  ;;  %v1670_v57 = vld [vmem:[#allocation9 + $0x1a0] sm:$0xff] }
 0x17d   :  { %v587_v2 = vld [vmem:[#allocation2 + $0x978] sm:$0xff]  ;;  %1387 = vmatpush.msrb.mxu1 %v663_v46  ;;  %1409 = vmatpush.msrb.mxu2 %v719_v63  ;;  %v2643_v46 = vpop.eup %2119 }
 0x17e   :  { %v659_v3 = vld [vmem:[#allocation2 + $0xbb8] sm:$0xff]  ;;  %1428 = vmatpush.msrb.mxu3 %v787_v0  ;;  %1370 = vmatpush.msrb.mxu0 %v587_v2  ;;  %vm1551_vm11 = vweird.f32 %v2643_v46 }
 0x17f   :  { %v715_v4 = vld [vmem:[#allocation2 + $0xd78] sm:$0xff]  ;;  %1388 = vmatpush.msrb.mxu1 %v659_v3  ;;  %1342 = vmatmul.f32.vlgmr.msra.gmra.mxu2 %v2563_v24  ;;  %vm2665_vm13 = vmor %vm1550_vm12, %vm1551_vm11 }
 0x180   :  { %v783_v5 = vld [vmem:[#allocation2 + $0xf98] sm:$0xff]  ;;  %1410 = vmatpush.msrb.mxu2 %v715_v4  ;;  %1302 = vmatmul.f32.vlgmr.msra.gmra.mxu0 %v2565_v60 }
 0x181   :  { %v583_v6 = vld [vmem:[#allocation2 + $0x958] sm:$0xff]  ;;  %1429 = vmatpush.msrb.mxu3 %v783_v5  ;;  %1322 = vmatmul.f32.vlgmr.msra.gmra.mxu1 %v2575_v1  ;;  %v1646_v1 = vld [vmem:[#allocation9 + $0xe0] sm:$0xff] }
 0x182   :  { %v655_v50 = vld [vmem:[#allocation2 + $0xb98] sm:$0xff]  ;;  %1371 = vmatpush.msrb.mxu0 %v583_v6  ;;  %1362 = vmatmul.f32.vlgmr.msra.gmra.mxu3 %v2567_v41  ;;  %v1545_v6 = vmul.f32 %v2643_v46, %v2639_v30 }
 0x183   :  { %v711_v8 = vld [vmem:[#allocation2 + $0xd58] sm:$0xff]  ;;  %1389 = vmatpush.msrb.mxu1 %v655_v50 }
 0x184   :  { %v779_v9 = vld [vmem:[#allocation2 + $0xf78] sm:$0xff]  ;;  %1411 = vmatpush.msrb.mxu2 %v711_v8 }
 0x185   :  { %v579_v10 = vld [vmem:[#allocation2 + $0x938] sm:$0xff]  ;;  %1430 = vmatpush.msrb.mxu3 %v779_v9 }
 0x186   :  { %v651_v11 = vld [vmem:[#allocation2 + $0xb78] sm:$0xff]  ;;  %1372 = vmatpush.msrb.mxu0 %v579_v10 }
 0x187   :  { %v707_v13 = vld [vmem:[#allocation2 + $0xd38] sm:$0xff]  ;;  %1390 = vmatpush.msrb.mxu1 %v651_v11  ;;  %v1063_v2 = vpop.f32.mrf.mxu0 }
 0x188   :  { %v775_v47 = vld [vmem:[#allocation2 + $0xf58] sm:$0xff]  ;;  %1412 = vmatpush.msrb.mxu2 %v707_v13  ;;  %v1064_v4 = vadd.f32 %v1063_v2, %v1044_v61  ;;  %v2669_v61 = vld [vmem:[#allocation6] sm:$0xf]  ;;  %v1630_v2 = vld [vmem:[#allocation9 + $0x60] sm:$0xff] }
 0x189   :  { %v575_v17 = vld [vmem:[#allocation2 + $0x918] sm:$0xff]  ;;  %1431 = vmatpush.msrb.mxu3 %v775_v47 }
 0x18a   :  { %v647_v20 = vld [vmem:[#allocation2 + $0xb58] sm:$0xff]  ;;  %1373 = vmatpush.msrb.mxu0 %v575_v17 }
 0x18b   :  { %v703_v21 = vld [vmem:[#allocation2 + $0xd18] sm:$0xff]  ;;  %1391 = vmatpush.msrb.mxu1 %v647_v20  ;;  %v1546_v20 = vmul.f32 %v2643_v46, %v1545_v6 }
 0x18c   :  { %v771_v22 = vld [vmem:[#allocation2 + $0xf38] sm:$0xff]  ;;  %1413 = vmatpush.msrb.mxu2 %v703_v21 }
 0x18d   :  { %v571_v23 = vld [vmem:[#allocation2 + $0x8f8] sm:$0xff]  ;;  %1432 = vmatpush.msrb.mxu3 %v771_v22 }
 0x18e   :  { %v643_v26 = vld [vmem:[#allocation2 + $0xb38] sm:$0xff]  ;;  %1374 = vmatpush.msrb.mxu0 %v571_v23  ;;  %v1083_v8 = vpop.f32.mrf.mxu1 }
 0x18f   :  { %v699_v27 = vld [vmem:[#allocation2 + $0xcf8] sm:$0xff]  ;;  %1392 = vmatpush.msrb.mxu1 %v643_v26  ;;  %v1103_v9 = vpop.f32.mrf.mxu2  ;;  %v1084_v10 = vadd.f32 %v1083_v8, %v1064_v4  ;;  %v2683_v8 = vld [vmem:[#allocation7] sm:$0xf] }
 0x190   :  { %v767_v28 = vld [vmem:[#allocation2 + $0xf18] sm:$0xff]  ;;  %1414 = vmatpush.msrb.mxu2 %v699_v27 }
 0x191   :  { %v567_v29 = vld [vmem:[#allocation2 + $0x8d8] sm:$0xff]  ;;  %1433 = vmatpush.msrb.mxu3 %v767_v28  ;;  %v1104_v17 = vadd.f32 %v1103_v9, %v1084_v10  ;;  %v1547_v28 = vmul.f32 0.5, %v1546_v20  ;;  %v1662_v9 = vld [vmem:[#allocation9 + $0x160] sm:$0xff]  ;;  %v1602_v10 = vperm.slane %v2683_v8, 0 }
 0x192   :  { %v639_v31 = vld [vmem:[#allocation2 + $0xb18] sm:$0xff]  ;;  %1375 = vmatpush.msrb.mxu0 %v567_v29  ;;  %v1123_v18 = vpop.f32.mrf.mxu3 }
 0x193   :  { %v695_v32 = vld [vmem:[#allocation2 + $0xcd8] sm:$0xff]  ;;  %1393 = vmatpush.msrb.mxu1 %v639_v31  ;;  %v2652_v22 = vadd.f32 %v1123_v18, %v1104_v17  ;;  %v1642_v31 = vld [vmem:[#allocation9 + $0xc0] sm:$0xff]  ;;  %v1548_v12 = vsub.f32 1.5, %v1547_v28 }
 0x194   :  { %v763_v34 = vld [vmem:[#allocation2 + $0xef8] sm:$0xff]  ;;  %1415 = vmatpush.msrb.mxu2 %v695_v32  ;;  %v1658_v17 = vld [vmem:[#allocation9 + $0x140] sm:$0xff] }
 0x195   :  { %v563_v35 = vld [vmem:[#allocation2 + $0x8b8] sm:$0xff]  ;;  %1434 = vmatpush.msrb.mxu3 %v763_v34  ;;  %v1456_v26 = vsel %vm1448_vm9, %v2652_v22, 0.0  ;;  %v1489_v27 = vmul.f32 %v2652_v22, %v2652_v22  ;;  %v1678_v34 = vld [vmem:[#allocation9 + $0x1e0] sm:$0xff] }
 0x196   :  { %v635_v36 = vld [vmem:[#allocation2 + $0xaf8] sm:$0xff]  ;;  %1376 = vmatpush.msrb.mxu0 %v563_v35  ;;  %v1457_v29 = vrot.slane %v1456_v26, 4 }
 0x197   :  { %v691_v37 = vld [vmem:[#allocation2 + $0xcb8] sm:$0xff]  ;;  %1394 = vmatpush.msrb.mxu1 %v635_v36  ;;  %v1499_v32 = vsel %vm1448_vm9, %v1489_v27, 0.0 }
 0x198   :  { %v759_v43 = vld [vmem:[#allocation2 + $0xed8] sm:$0xff]  ;;  %1416 = vmatpush.msrb.mxu2 %v691_v37  ;;  %v1500_v33 = vrot.slane %v1499_v32, 4 }
 0x199   :  { %v559_v44 = vld [vmem:[#allocation2 + $0x898] sm:$0xff]  ;;  %1435 = vmatpush.msrb.mxu3 %v759_v43  ;;  %v1638_v43 = vld [vmem:[#allocation9 + $0xa0] sm:$0xff] }
 0x19a   :  { %v631_v42 = vld [vmem:[#allocation2 + $0xad8] sm:$0xff]  ;;  %1377 = vmatpush.msrb.mxu0 %v559_v44  ;;  %v1501_v37 = vadd.f32 %v1500_v33, %v1499_v32  ;;  %v1681_v33 = vld [vmem:[#allocation9 + $0x1f8] sm:$0xff] }
 0x19b   :  { %v687_v52 = vld [vmem:[#allocation2 + $0xc98] sm:$0xff]  ;;  %1395 = vmatpush.msrb.mxu1 %v631_v42 }
 0x19c   :  { %v755_v39 = vld [vmem:[#allocation2 + $0xeb8] sm:$0xff]  ;;  %1417 = vmatpush.msrb.mxu2 %v687_v52  ;;  %v1502_v48 = vrot.slane %v1501_v37, 2 }
 0x19d   :  { %v555_v40 = vld [vmem:[#allocation2 + $0x878] sm:$0xff]  ;;  %1436 = vmatpush.msrb.mxu3 %v755_v39 }
 0x19e   :  { %v627_v45 = vld [vmem:[#allocation2 + $0xab8] sm:$0xff]  ;;  %1378 = vmatpush.msrb.mxu0 %v555_v40  ;;  %v1503_v55 = vadd.f32 %v1502_v48, %v1501_v37  ;;  %v1634_v40 = vld [vmem:[#allocation9 + $0x80] sm:$0xff] }
 0x19f   :  { %v683_v58 = vld [vmem:[#allocation2 + $0xc78] sm:$0xff]  ;;  %1396 = vmatpush.msrb.mxu1 %v627_v45 }
 0x1a0   :  { %v751_v59 = vld [vmem:[#allocation2 + $0xe98] sm:$0xff]  ;;  %1418 = vmatpush.msrb.mxu2 %v683_v58  ;;  %v1504_v56 = vrot.slane %v1503_v55, 1 }
 0x1a1   :  { %v551_v49 = vld [vmem:[#allocation2 + $0x858] sm:$0xff]  ;;  %1437 = vmatpush.msrb.mxu3 %v751_v59 }
 0x1a2   :  { %v623_v62 = vld [vmem:[#allocation2 + $0xa98] sm:$0xff]  ;;  %1379 = vmatpush.msrb.mxu0 %v551_v49  ;;  %v1505_v30 = vadd.f32 %v1504_v56, %v1503_v55 }
 0x1a3   :  { %v679_v63 = vld [vmem:[#allocation2 + $0xc58] sm:$0xff]  ;;  %1397 = vmatpush.msrb.mxu1 %v623_v62 }
 0x1a4   :  { %v747_v0 = vld [vmem:[#allocation2 + $0xe78] sm:$0xff]  ;;  %1419 = vmatpush.msrb.mxu2 %v679_v63 }
 0x1a5   :  { %v547_v3 = vld [vmem:[#allocation2 + $0x838] sm:$0xff]  ;;  %1438 = vmatpush.msrb.mxu3 %v747_v0  ;;  %v1536_v0 = vsub.f32 %v2615_v14, %v2633_v54  ;;  %v1626_v14 = vld [vmem:[#allocation9 + $0x40] sm:$0xff] }
 0x1a6   :  { %v619_v24 = vld [vmem:[#allocation2 + $0xa78] sm:$0xff]  ;;  %1380 = vmatpush.msrb.mxu0 %v547_v3  ;;  %v1521_v3 = vmul.f32 %v1505_v30, %v2630_v38  ;;  %v1669_v30 = vld [vmem:[#allocation9 + $0x198] sm:$0xff] }
 0x1a7   :  { %v675_v5 = vld [vmem:[#allocation2 + $0xc38] sm:$0xff]  ;;  %1398 = vmatpush.msrb.mxu1 %v619_v24  ;;  %v1666_v24 = vld [vmem:[#allocation9 + $0x180] sm:$0xff] }
 0x1a8   :  { %v743_v7 = vld [vmem:[#allocation2 + $0xe58] sm:$0xff]  ;;  %1420 = vmatpush.msrb.mxu2 %v675_v5 }
 0x1a9   :  { %v543_v50 = vld [vmem:[#allocation2 + $0x818] sm:$0xff]  ;;  %1439 = vmatpush.msrb.mxu3 %v743_v7 }
 0x1aa   :  { %v615_v60 = vld [vmem:[#allocation2 + $0xa58] sm:$0xff]  ;;  %1381 = vmatpush.msrb.mxu0 %v543_v50 }
 0x1ab   :  { %v671_v41 = vld [vmem:[#allocation2 + $0xc18] sm:$0xff]  ;;  %1399 = vmatpush.msrb.mxu1 %v615_v60  ;;  %1382 = vmatmul.f32.vlgmr.msrb.gmra.mxu0 %v2587_v16  ;;  %v1458_v16 = vadd.f32 %v1457_v29, %v1456_v26  ;;  %v1649_v26 = vld [vmem:[#allocation9 + $0xf8] sm:$0xff] }
 0x1ac   :  { %v739_v11 = vld [vmem:[#allocation2 + $0xe38] sm:$0xff]  ;;  %1421 = vmatpush.msrb.mxu2 %v671_v41 }
 0x1ad   :  { %v1648_v13 = vld [vmem:[#allocation9 + $0xf0] sm:$0xff]  ;;  %1440 = vmatpush.msrb.mxu3 %v739_v11  ;;  %1422 = vmatmul.f32.vlgmr.msrb.gmra.mxu2 %v2585_v15  ;;  %v1459_v36 = vrot.slane %v1458_v16, 2  ;;  %v1647_v29 = vld [vmem:[#allocation9 + $0xe8] sm:$0xff] }
 0x1ae   :  { %v611_v47 = vld [vmem:[#allocation2 + $0xa38] sm:$0xff]  ;;  %1752 = vmatpush.msra.mxu0 %v1648_v13 }
 0x1af   :  { %v735_v21 = vld [vmem:[#allocation2 + $0xe18] sm:$0xff]  ;;  %1400 = vmatpush.msrb.mxu1 %v611_v47  ;;  %v1460_v44 = vadd.f32 %v1459_v36, %v1458_v16  ;;  %v1622_v47 = vld [vmem:[#allocation9 + $0x20] sm:$0xff]  ;;  %v1645_v16 = vld [vmem:[#allocation9 + $0xd8] sm:$0xff] }
 0x1b0   :  { %v607_v23 = vld [vmem:[#allocation2 + $0xa18] sm:$0xff]  ;;  %1441 = vmatpush.msrb.mxu3 %v735_v21  ;;  %1753 = vmatpush.msra.mxu0 %v1646_v1  ;;  %v1618_v1 = vld [vmem:[#allocation9] sm:$0xff] }
 0x1b1   :  { %v1644_v25 = vld [vmem:[#allocation9 + $0xd0] sm:$0xff]  ;;  %1442 = vmatmul.f32.vlgmr.msrb.gmra.mxu3 %v2589_v19  ;;  %1401 = vmatpush.msrb.mxu1 %v607_v23  ;;  %v1461_v52 = vrot.slane %v1460_v44, 1  ;;  %v1654_v23 = vld [vmem:[#allocation9 + $0x120] sm:$0xff]  ;;  %v1679_v36 = vld [vmem:[#allocation9 + $0x1e8] sm:$0xff] }
 0x1b2   :  { %v1680_v15 = vld [vmem:[#allocation9 + $0x1f0] sm:$0xff]  ;;  %1402 = vmatmul.f32.vlgmr.msrb.gmra.mxu1 %v2591_v53  ;;  %1754 = vmatpush.msra.mxu0 %v1644_v25  ;;  %v1549_v53 = vmul.f32 %v2643_v46, %v1548_v12  ;;  %v1643_v12 = vld [vmem:[#allocation9 + $0xc8] sm:$0xff] }
 0x1b3   :  { %1772 = vmatpush.msra.mxu1 %v1680_v15  ;;  %v1640_v35 = vld [vmem:[#allocation9 + $0xb0] sm:$0xff]  ;;  %v1462_v45 = vadd.f32 %v1461_v52, %v1460_v44  ;;  %v1639_v48 = vld [vmem:[#allocation9 + $0xa8] sm:$0xff]  ;;  %v1590_v52 = vperm.slane %v2669_v61, 1 }
 0x1b4   :  { %1755 = vmatpush.msra.mxu0 %v1642_v31  ;;  %v1676_v19 = vld [vmem:[#allocation9 + $0x1d0] sm:$0xff]  ;;  %v1553_v49 = vsel %vm2665_vm13, %v2643_v46, %v1549_v53  ;;  %v1589_v46 = vperm.slane %v2669_v61, 0  ;;  %v1650_v31 = vld [vmem:[#allocation9 + $0x100] sm:$0xff]  ;;  %v1635_v58 = vld [vmem:[#allocation9 + $0x88] sm:$0xff] }
 0x1b5   :  { %1773 = vmatpush.msra.mxu1 %v1678_v34  ;;  %v1636_v42 = vld [vmem:[#allocation9 + $0x90] sm:$0xff]  ;;  %v2675_v62 = vmul.f32 %v2630_v38, %v1462_v45  ;;  %v1584_v5 = vmul.f32 %v1553_v49, %v1536_v0  ;;  %v1706_v49 = vld [vmem:[#allocation9 + $0x2c0] sm:$0xff] }
 0x1b6   :  { %1756 = vmatpush.msra.mxu0 %v1640_v35  ;;  %v1672_v39 = vld [vmem:[#allocation9 + $0x1b0] sm:$0xff] }
 0x1b7   :  { %1774 = vmatpush.msra.mxu1 %v1676_v19  ;;  %v1632_v59 = vld [vmem:[#allocation9 + $0x70] sm:$0xff]  ;;  %v1525_v4 = vmul.f32 %v2675_v62, %v2675_v62  ;;  %v1597_v60 = vmul.f32 %v1589_v46, %v1584_v5  ;;  %v1641_v19 = vld [vmem:[#allocation9 + $0xb8] sm:$0xff]  ;;  %v1537_v53 = vsub.f32 %v2652_v22, %v2675_v62  ;;  %v1702_v5 = vld [vmem:[#allocation9 + $0x2a0] sm:$0xff] }
 0x1b8   :  { %1757 = vmatpush.msra.mxu0 %v1638_v43  ;;  %v1668_v63 = vld [vmem:[#allocation9 + $0x190] sm:$0xff]  ;;  %v1677_v43 = vld [vmem:[#allocation9 + $0x1d8] sm:$0xff] }
 0x1b9   :  { %1775 = vmatpush.msra.mxu1 %v1674_v51  ;;  %v1628_v6 = vld [vmem:[#allocation9 + $0x50] sm:$0xff]  ;;  %v1529_v7 = vsub.f32 %v1521_v3, %v1525_v4  ;;  %v2686_v20 = vadd.f32 %v1602_v10, %v1597_v60  ;;  %v1675_v51 = vld [vmem:[#allocation9 + $0x1c8] sm:$0xff]  ;;  %v1633_v62 = vld [vmem:[#allocation9 + $0x78] sm:$0xff] }
 0x1ba   :  { %1758 = vmatpush.msra.mxu0 %v1636_v42  ;;  %v1664_v50 = vld [vmem:[#allocation9 + $0x170] sm:$0xff]  ;;  %v1710_v42 = vld [vmem:[#allocation9 + $0x2e0] sm:$0xff]  ;;  %v1631_v4 = vld [vmem:[#allocation9 + $0x68] sm:$0xff] }
 0x1bb   :  { %1776 = vmatpush.msra.mxu1 %v1672_v39  ;;  %v1533_v54 = vmax.f32 %v1529_v7, 0.0  ;;  %v1624_v41 = vld [vmem:[#allocation9 + $0x30] sm:$0xff]  ;;  %v1614_v25 = vmax.f32 %v2686_v20, 0.0  ;;  %v1637_v39 = vld [vmem:[#allocation9 + $0x98] sm:$0xff]  ;;  %v1663_v60 = vld [vmem:[#allocation9 + $0x168] sm:$0xff] }
 0x1bc   :  { %1759 = vmatpush.msra.mxu0 %v1634_v40  ;;  %v1660_v13 = vld [vmem:[#allocation9 + $0x150] sm:$0xff]  ;;  %v1673_v40 = vld [vmem:[#allocation9 + $0x1b8] sm:$0xff] }
 0x1bd   :  { %1777 = vmatpush.msra.mxu1 %v1670_v57  ;;  %v1541_v11 = vadd.f32 1e-05, %v1533_v54  ;;  %v1620_v18 = vld [vmem:[#allocation9 + $0x10] sm:$0xff]  ;;  %v1603_v57 = vperm.slane %v2683_v8, 1  ;;  %v1665_v7 = vld [vmem:[#allocation9 + $0x178] sm:$0xff] }
 0x1be   :  { %1760 = vmatpush.msra.mxu0 %v1632_v59  ;;  %v1656_v21 = vld [vmem:[#allocation9 + $0x130] sm:$0xff]  ;;  %v1671_v59 = vld [vmem:[#allocation9 + $0x1a8] sm:$0xff] }
 0x1bf   :  { %1778 = vmatpush.msra.mxu1 %v1668_v63  ;;  %2121 = vrsqrt.f32 %v1541_v11  ;;  %v1652_v28 = vld [vmem:[#allocation9 + $0x110] sm:$0xff]  ;;  %vm1560_vm15 = vweird.f32 %v1541_v11 }
 0x1c0   :  { %1761 = vmatpush.msra.mxu0 %v1630_v2  ;;  %v1712_v34 = vld [vmem:[#allocation9 + $0x2f0] sm:$0xff] }
 0x1c1   :  { %1779 = vmatpush.msra.mxu1 %v1666_v24  ;;  %1792 = vmatpush.msra.mxu2 %v1712_v34  ;;  %v1708_v45 = vld [vmem:[#allocation9 + $0x2d0] sm:$0xff]  ;;  %v1667_v24 = vld [vmem:[#allocation9 + $0x188] sm:$0xff]  ;;  %v1690_v34 = vld [vmem:[#allocation9 + $0x240] sm:$0xff] }
 0x1c2   :  { %1762 = vmatpush.msra.mxu0 %v1628_v6  ;;  %v1704_v63 = vld [vmem:[#allocation9 + $0x2b0] sm:$0xff]  ;;  %v1629_v6 = vld [vmem:[#allocation9 + $0x58] sm:$0xff] }
 0x1c3   :  { %1780 = vmatpush.msra.mxu1 %v1664_v50  ;;  %1793 = vmatpush.msra.mxu2 %v1710_v42  ;;  %v2695_v0 = vld [vmem:[#allocation4] sm:$0xf] }
 0x1c4   :  { %1763 = vmatpush.msra.mxu0 %v1626_v14  ;;  %v800_v2 = vperm.slane %v2695_v0, 2  ;;  %v1143_v50 = vpop.f32.mrf.mxu0  ;;  %v1700_v14 = vld [vmem:[#allocation9 + $0x290] sm:$0xff] }
 0x1c5   :  { %1781 = vmatpush.msra.mxu1 %v1662_v9  ;;  %v2122_v27 = vpop.eup %2121  ;;  %1794 = vmatpush.msra.mxu2 %v1708_v45  ;;  %v1627_v9 = vld [vmem:[#allocation9 + $0x48] sm:$0xff]  ;;  %v1163_v10 = vpop.f32.mrf.mxu1 }
 0x1c6   :  { %1764 = vmatpush.msra.mxu0 %v1624_v41  ;;  %v1555_v15 = vmul.f32 %v2122_v27, %v1541_v11  ;;  %vm1561_vm14 = vweird.f32 %v2122_v27  ;;  %v1144_v54 = vadd.f32 %v1143_v50, %v800_v2  ;;  %v1698_v41 = vld [vmem:[#allocation9 + $0x280] sm:$0xff]  ;;  %v1711_v45 = vld [vmem:[#allocation9 + $0x2e8] sm:$0xff]  ;;  %v1705_v2 = vld [vmem:[#allocation9 + $0x2b8] sm:$0xff] }
 0x1c7   :  { %1782 = vmatpush.msra.mxu1 %v1660_v13  ;;  %vm1562_vm0 = vmor %vm1560_vm15, %vm1561_vm14  ;;  %1795 = vmatpush.msra.mxu2 %v1706_v49  ;;  %v1625_v13 = vld [vmem:[#allocation9 + $0x38] sm:$0xff] }
 0x1c8   :  { %1765 = vmatpush.msra.mxu0 %v1622_v47  ;;  %v1556_v32 = vmul.f32 %v2122_v27, %v1555_v15  ;;  %v1183_v11 = vpop.f32.mrf.mxu2  ;;  %v1661_v47 = vld [vmem:[#allocation9 + $0x158] sm:$0xff] }
 0x1c9   :  { %1783 = vmatpush.msra.mxu1 %v1658_v17  ;;  %1796 = vmatpush.msra.mxu2 %v1704_v63  ;;  %v1164_v17 = vadd.f32 %v1163_v10, %v1144_v54  ;;  %v1657_v15 = vld [vmem:[#allocation9 + $0x138] sm:$0xff] }
 0x1ca   :  { %1766 = vmatpush.msra.mxu0 %v1620_v18  ;;  %v1557_v35 = vmul.f32 0.5, %v1556_v32  ;;  %v1696_v18 = vld [vmem:[#allocation9 + $0x270] sm:$0xff]  ;;  %v1619_v32 = vld [vmem:[#allocation9 + $0x8] sm:$0xff]  ;;  %v1697_v54 = vld [vmem:[#allocation9 + $0x278] sm:$0xff] }
 0x1cb   :  { %1784 = vmatpush.msra.mxu1 %v1656_v21  ;;  %1797 = vmatpush.msra.mxu2 %v1702_v5  ;;  %v1623_v21 = vld [vmem:[#allocation9 + $0x28] sm:$0xff] }
 0x1cc   :  { %1767 = vmatpush.msra.mxu0 %v1618_v1  ;;  %v1558_v37 = vsub.f32 1.5, %v1557_v35  ;;  %v1659_v1 = vld [vmem:[#allocation9 + $0x148] sm:$0xff] }
 0x1cd   :  { %1768 = vmatmul.f32.vlgmr.msra.gmra.mxu0 %v1614_v25  ;;  %1785 = vmatpush.msra.mxu1 %v1654_v23  ;;  %v1184_v23 = vadd.f32 %v1183_v11, %v1164_v17  ;;  %v1693_v11 = vld [vmem:[#allocation9 + $0x258] sm:$0xff] }
 0x1ce   :  { %1832 = vmatpush.msrb.mxu0 %v1649_v26  ;;  %v1559_v44 = vmul.f32 %v2122_v27, %v1558_v37  ;;  %1798 = vmatpush.msra.mxu2 %v1700_v14  ;;  %v1203_v26 = vpop.f32.mrf.mxu3 }
 0x1cf   :  { %1786 = vmatpush.msra.mxu1 %v1652_v28  ;;  %v1621_v28 = vld [vmem:[#allocation9 + $0x18] sm:$0xff] }
 0x1d0   :  { %1833 = vmatpush.msrb.mxu0 %v1647_v29  ;;  %v1563_v55 = vsel %vm1562_vm0, %v2122_v27, %v1559_v44  ;;  %1799 = vmatpush.msra.mxu2 %v1698_v41  ;;  %v1694_v27 = vld [vmem:[#allocation9 + $0x260] sm:$0xff]  ;;  %v1204_v29 = vadd.f32 %v1203_v26, %v1184_v23  ;;  %v1651_v44 = vld [vmem:[#allocation9 + $0x108] sm:$0xff] }
 0x1d1   :  { %1787 = vmatpush.msra.mxu1 %v1650_v31  ;;  %v1585_v56 = vmul.f32 %v1563_v55, %v1537_v53  ;;  %v1692_v31 = vld [vmem:[#allocation9 + $0x250] sm:$0xff]  ;;  %v1682_v55 = vld [vmem:[#allocation9 + $0x200] sm:$0xff]  ;;  %v1695_v41 = vld [vmem:[#allocation9 + $0x268] sm:$0xff] }
 0x1d2   :  { %1834 = vmatpush.msrb.mxu0 %v1645_v16  ;;  %1800 = vmatpush.msra.mxu2 %v1696_v18  ;;  %v1655_v16 = vld [vmem:[#allocation9 + $0x128] sm:$0xff]  ;;  %v1684_v53 = vld [vmem:[#allocation9 + $0x210] sm:$0xff]  ;;  %v1689_v18 = vld [vmem:[#allocation9 + $0x238] sm:$0xff] }
 0x1d3   :  { %1852 = vmatpush.msrb.mxu1 %v1681_v33  ;;  %v1598_v22 = vmul.f32 %v1590_v52, %v1585_v56  ;;  %v1223_v33 = vpop.f32.mrf.mxu0  ;;  %v1683_v26 = vld [vmem:[#allocation9 + $0x208] sm:$0xff] }
 0x1d4   :  { %1835 = vmatpush.msrb.mxu0 %v1643_v12  ;;  %1801 = vmatpush.msra.mxu2 %v1694_v27  ;;  %v1224_v35 = vadd.f32 %v1223_v33, %v1204_v29  ;;  %v1653_v12 = vld [vmem:[#allocation9 + $0x118] sm:$0xff]  ;;  %v1742_v29 = vld [vmem:[#allocation9 + $0x3e0] sm:$0xff] }
 0x1d5   :  { %1853 = vmatpush.msrb.mxu1 %v1679_v36  ;;  %v2698_v3 = vadd.f32 %v1603_v57, %v1598_v22  ;;  %v1688_v36 = vld [vmem:[#allocation9 + $0x230] sm:$0xff]  ;;  %v1738_v33 = vld [vmem:[#allocation9 + $0x3c0] sm:$0xff] }
 0x1d6   :  { %1836 = vmatpush.msrb.mxu0 %v1641_v19  ;;  %1802 = vmatpush.msra.mxu2 %v1692_v31 }
 0x1d7   :  { %1854 = vmatpush.msrb.mxu1 %v1677_v43  ;;  %v1615_v46 = vmax.f32 %v2698_v3, 0.0  ;;  %v1243_v37 = vpop.f32.mrf.mxu1 }
 0x1d8   :  { %1837 = vmatpush.msrb.mxu0 %v1639_v48  ;;  %1803 = vmatpush.msra.mxu2 %v1690_v34  ;;  %v1263_v19 = vpop.f32.mrf.mxu2  ;;  %v1244_v43 = vadd.f32 %v1243_v37, %v1224_v35  ;;  %v1686_v48 = vld [vmem:[#allocation9 + $0x220] sm:$0xff]  ;;  %v1736_v35 = vld [vmem:[#allocation9 + $0x3b0] sm:$0xff] }
 0x1d9   :  { %1855 = vmatpush.msrb.mxu1 %v1675_v51 }
 0x1da   :  { %1838 = vmatpush.msrb.mxu0 %v1637_v39  ;;  %1788 = vmatmul.f32.vlgmr.msra.gmra.mxu1 %v1615_v46  ;;  %v1264_v51 = vadd.f32 %v1263_v19, %v1244_v43  ;;  %v1713_v39 = vld [vmem:[#allocation9 + $0x2f8] sm:$0xff]  ;;  %v1734_v19 = vld [vmem:[#allocation9 + $0x3a0] sm:$0xff] }
 0x1db   :  { %1856 = vmatpush.msrb.mxu1 %v1673_v40  ;;  %1804 = vmatpush.msra.mxu2 %v1688_v36  ;;  %v1283_v42 = vpop.f32.mrf.mxu3  ;;  %v1591_v36 = vperm.slane %v2669_v61, 2 }
 0x1dc   :  { %1839 = vmatpush.msrb.mxu0 %v1635_v58  ;;  %v2707_v52 = vadd.f32 %v1283_v42, %v1264_v51  ;;  %v1730_v42 = vld [vmem:[#allocation9 + $0x380] sm:$0xff] }
 0x1dd   :  { %1857 = vmatpush.msrb.mxu1 %v1671_v59  ;;  %1805 = vmatpush.msra.mxu2 %v1686_v48  ;;  %v1709_v59 = vld [vmem:[#allocation9 + $0x2d8] sm:$0xff]  ;;  %v1732_v48 = vld [vmem:[#allocation9 + $0x390] sm:$0xff] }
 0x1de   :  { %1840 = vmatpush.msrb.mxu0 %v1633_v62  ;;  %v1463_v20 = vsel %vm1448_vm9, %v2707_v52, 0.0  ;;  %v1707_v62 = vld [vmem:[#allocation9 + $0x2c8] sm:$0xff] }
 0x1df   :  { %1858 = vmatpush.msrb.mxu1 %v1669_v30  ;;  %1806 = vmatpush.msra.mxu2 %v1684_v53  ;;  %v1464_v40 = vrot.slane %v1463_v20, 4  ;;  %v801_v53 = vperm.slane %v2695_v0, 3  ;;  %v1720_v0 = vld [vmem:[#allocation9 + $0x330] sm:$0xff] }
 0x1e0   :  { %1841 = vmatpush.msrb.mxu0 %v1631_v4 }
 0x1e1   :  { %1859 = vmatpush.msrb.mxu1 %v1667_v24  ;;  %1807 = vmatpush.msra.mxu2 %v1682_v55  ;;  %v1465_v57 = vadd.f32 %v1464_v40, %v1463_v20  ;;  %v1703_v24 = vld [vmem:[#allocation9 + $0x2a8] sm:$0xff] }
 0x1e2   :  { %1842 = vmatpush.msrb.mxu0 %v1629_v6  ;;  %v1701_v6 = vld [vmem:[#allocation9 + $0x298] sm:$0xff] }
 0x1e3   :  { %1860 = vmatpush.msrb.mxu1 %v1665_v7  ;;  %1872 = vmatpush.msrb.mxu2 %v1713_v39  ;;  %v1466_v49 = vrot.slane %v1465_v57, 2  ;;  %v1699_v7 = vld [vmem:[#allocation9 + $0x288] sm:$0xff]  ;;  %v1728_v39 = vld [vmem:[#allocation9 + $0x370] sm:$0xff] }
 0x1e4   :  { %1843 = vmatpush.msrb.mxu0 %v1627_v9 }
 0x1e5   :  { %1861 = vmatpush.msrb.mxu1 %v1663_v60  ;;  %1873 = vmatpush.msrb.mxu2 %v1711_v45  ;;  %v1467_v30 = vadd.f32 %v1466_v49, %v1465_v57  ;;  %v1724_v45 = vld [vmem:[#allocation9 + $0x350] sm:$0xff] }
 0x1e6   :  { %1844 = vmatpush.msrb.mxu0 %v1625_v13 }
 0x1e7   :  { %1862 = vmatpush.msrb.mxu1 %v1661_v47  ;;  %1874 = vmatpush.msrb.mxu2 %v1709_v59  ;;  %v1468_v3 = vrot.slane %v1467_v30, 1  ;;  %v1691_v47 = vld [vmem:[#allocation9 + $0x248] sm:$0xff]  ;;  %v1722_v59 = vld [vmem:[#allocation9 + $0x340] sm:$0xff] }
 0x1e8   :  { %1845 = vmatpush.msrb.mxu0 %v1623_v21  ;;  %v1687_v21 = vld [vmem:[#allocation9 + $0x228] sm:$0xff] }
 0x1e9   :  { %1863 = vmatpush.msrb.mxu1 %v1659_v1  ;;  %1875 = vmatpush.msrb.mxu2 %v1707_v62  ;;  %v1469_v5 = vadd.f32 %v1468_v3, %v1467_v30  ;;  %v1685_v1 = vld [vmem:[#allocation9 + $0x218] sm:$0xff]  ;;  %v1718_v30 = vld [vmem:[#allocation9 + $0x320] sm:$0xff]  ;;  %v1716_v3 = vld [vmem:[#allocation9 + $0x310] sm:$0xff] }
 0x1ea   :  { %1846 = vmatpush.msrb.mxu0 %v1621_v28  ;;  %v1744_v28 = vld [vmem:[#allocation9 + $0x3f0] sm:$0xff] }
 0x1eb   :  { %1864 = vmatpush.msrb.mxu1 %v1657_v15  ;;  %1876 = vmatpush.msrb.mxu2 %v1705_v2  ;;  %v1486_v50 = vmul.f32 %v2630_v38, %v1469_v5 }
 0x1ec   :  { %1847 = vmatpush.msrb.mxu0 %v1619_v32  ;;  %1812 = vmatpush.msra.mxu3 %v1744_v28  ;;  %v1740_v32 = vld [vmem:[#allocation9 + $0x3d0] sm:$0xff] }
 0x1ed   :  { %1865 = vmatpush.msrb.mxu1 %v1655_v16  ;;  %1848 = vmatmul.f32.vlgmr.msrb.gmra.mxu0 %v1614_v25  ;;  %v1490_v25 = vmul.f32 %v2707_v52, %v2707_v52  ;;  %v1526_v60 = vmul.f32 %v1486_v50, %v1486_v50 }
 0x1ee   :  { %1877 = vmatpush.msrb.mxu2 %v1703_v24  ;;  %1813 = vmatpush.msra.mxu3 %v1742_v29  ;;  %v1714_v24 = vld [vmem:[#allocation9 + $0x300] sm:$0xff] }
 0x1ef   :  { %1866 = vmatpush.msrb.mxu1 %v1653_v12  ;;  %v1506_v56 = vsel %vm1448_vm9, %v1490_v25, 0.0  ;;  %v1538_v12 = vsub.f32 %v2707_v52, %v1486_v50  ;;  %v1726_v25 = vld [vmem:[#allocation9 + $0x360] sm:$0xff]  ;;  %v1743_v50 = vld [vmem:[#allocation9 + $0x3e8] sm:$0xff] }
 0x1f0   :  { %v1507_v58 = vrot.slane %v1506_v56, 4  ;;  %1878 = vmatpush.msrb.mxu2 %v1701_v6  ;;  %1814 = vmatpush.msra.mxu3 %v1740_v32  ;;  %v1745_v6 = vld [vmem:[#allocation9 + $0x3f8] sm:$0xff] }
 0x1f1   :  { %1867 = vmatpush.msrb.mxu1 %v1651_v44  ;;  %v1604_v44 = vperm.slane %v2683_v8, 2  ;;  %v1729_v32 = vld [vmem:[#allocation9 + $0x378] sm:$0xff] }
 0x1f2   :  { %1868 = vmatmul.f32.vlgmr.msrb.gmra.mxu1 %v1615_v46  ;;  %v1508_v22 = vadd.f32 %v1507_v58, %v1506_v56  ;;  %1879 = vmatpush.msrb.mxu2 %v1699_v7 }
 0x1f3   :  { %1815 = vmatpush.msra.mxu3 %v1738_v33 }
 0x1f4   :  { %v1509_v63 = vrot.slane %v1508_v22, 2  ;;  %1880 = vmatpush.msrb.mxu2 %v1697_v54 }
 0x1f5   :  { %1816 = vmatpush.msra.mxu3 %v1736_v35  ;;  %v1725_v35 = vld [vmem:[#allocation9 + $0x358] sm:$0xff] }
 0x1f6   :  { %v1510_v4 = vadd.f32 %v1509_v63, %v1508_v22  ;;  %1881 = vmatpush.msrb.mxu2 %v1695_v41 }
 0x1f7   :  { %1817 = vmatpush.msra.mxu3 %v1734_v19 }
 0x1f8   :  { %v1511_v46 = vrot.slane %v1510_v4, 1  ;;  %1882 = vmatpush.msrb.mxu2 %v1693_v11 }
 0x1f9   :  { %1818 = vmatpush.msra.mxu3 %v1732_v48  ;;  %v1721_v48 = vld [vmem:[#allocation9 + $0x338] sm:$0xff] }
 0x1fa   :  { %v1512_v14 = vadd.f32 %v1511_v46, %v1510_v4  ;;  %1883 = vmatpush.msrb.mxu2 %v1691_v47  ;;  %v1737_v47 = vld [vmem:[#allocation9 + $0x3b8] sm:$0xff] }
 0x1fb   :  { %1819 = vmatpush.msra.mxu3 %v1730_v42  ;;  %v1719_v42 = vld [vmem:[#allocation9 + $0x328] sm:$0xff] }
 0x1fc   :  { %v1522_v9 = vmul.f32 %v1512_v14, %v2630_v38  ;;  %1884 = vmatpush.msrb.mxu2 %v1689_v18 }
 0x1fd   :  { %1820 = vmatpush.msra.mxu3 %v1728_v39  ;;  %v1303_v20 = vpop.f32.mrf.mxu0  ;;  %v1715_v39 = vld [vmem:[#allocation9 + $0x308] sm:$0xff] }
 0x1fe   :  { %v1530_v10 = vsub.f32 %v1522_v9, %v1526_v60  ;;  %1885 = vmatpush.msrb.mxu2 %v1687_v21  ;;  %v1304_v40 = vadd.f32 %v1303_v20, %v801_v53  ;;  %v1323_v56 = vpop.f32.mrf.mxu1  ;;  %v1741_v9 = vld [vmem:[#allocation9 + $0x3d8] sm:$0xff]  ;;  %v1735_v21 = vld [vmem:[#allocation9 + $0x3a8] sm:$0xff] }
 0x1ff   :  { %1821 = vmatpush.msra.mxu3 %v1726_v25 }
 0x200   :  { %v1534_v13 = vmax.f32 %v1530_v10, 0.0  ;;  %1886 = vmatpush.msrb.mxu2 %v1685_v1  ;;  %v1324_v58 = vadd.f32 %v1323_v56, %v1304_v40  ;;  %v1739_v10 = vld [vmem:[#allocation9 + $0x3c8] sm:$0xff] }
 0x201   :  { %1822 = vmatpush.msra.mxu3 %v1724_v45 }
 0x202   :  { %v1542_v17 = vadd.f32 1e-05, %v1534_v13  ;;  %1887 = vmatpush.msrb.mxu2 %v1683_v26  ;;  %v1343_v57 = vpop.f32.mrf.mxu2  ;;  %v1733_v26 = vld [vmem:[#allocation9 + $0x398] sm:$0xff] }
 0x203   :  { %1823 = vmatpush.msra.mxu3 %v1722_v59  ;;  %v1344_v49 = vadd.f32 %v1343_v57, %v1324_v58  ;;  %v1592_v58 = vperm.slane %v2669_v61, 3  ;;  %v2010_v61 = vld [vmem:[%s2866_s12 + $0x70] sm:$0xff] }
 0x204   :  { %2123 = vrsqrt.f32 %v1542_v17  ;;  %vm1570_vm2 = vweird.f32 %v1542_v17 }
 0x205   :  { %v1363_v22 = vpop.f32.mrf.mxu3  ;;  %1824 = vmatpush.msra.mxu3 %v1720_v0 }
 0x206   :  { %v1364_v62 = vadd.f32 %v1363_v22, %v1344_v49  ;;  %v1605_v22 = vperm.slane %v2683_v8, 3  ;;  %v2009_v8 = vld [vmem:[%s2866_s12 + $0x68] sm:$0xff] }
 0x207   :  { %1825 = vmatpush.msra.mxu3 %v1718_v30 }
 0x209   :  { %1826 = vmatpush.msra.mxu3 %v1716_v3 }
 0x20a   :  { %v2124_v23 = vpop.eup %2123 }
 0x20b   :  { %v1565_v27 = vmul.f32 %v2124_v23, %v1542_v17  ;;  %vm1571_vm1 = vweird.f32 %v2124_v23  ;;  %1827 = vmatpush.msra.mxu3 %v1714_v24 }
 0x20c   :  { %vm1572_vm3 = vmor %vm1570_vm2, %vm1571_vm1 }
 0x20d   :  { %v1566_v15 = vmul.f32 %v2124_v23, %v1565_v27  ;;  %1892 = vmatpush.msrb.mxu3 %v1745_v6  ;;  %v2008_v6 = vld [vmem:[%s2866_s12 + $0x60] sm:$0xff] }
 0x20f   :  { %v1567_v31 = vmul.f32 0.5, %v1566_v15  ;;  %1893 = vmatpush.msrb.mxu3 %v1743_v50  ;;  %v1731_v15 = vld [vmem:[#allocation9 + $0x388] sm:$0xff] }
 0x210   :  { %v2007_v50 = vld [vmem:[%s2866_s12 + $0x58] sm:$0xff] }
 0x211   :  { %v1568_v16 = vsub.f32 1.5, %v1567_v31  ;;  %1894 = vmatpush.msrb.mxu3 %v1741_v9 }
 0x213   :  { %v1569_v34 = vmul.f32 %v2124_v23, %v1568_v16  ;;  %1895 = vmatpush.msrb.mxu3 %v1739_v10 }
 0x215   :  { %v1573_v37 = vsel %vm1572_vm3, %v2124_v23, %v1569_v34  ;;  %1896 = vmatpush.msrb.mxu3 %v1737_v47  ;;  %v1727_v34 = vld [vmem:[#allocation9 + $0x368] sm:$0xff]  ;;  %v2005_v47 = vld [vmem:[%s2866_s12 + $0x48] sm:$0xff] }
 0x216   :  { %v1586_v43 = vmul.f32 %v1573_v37, %v1538_v12  ;;  %v1723_v37 = vld [vmem:[#allocation9 + $0x348] sm:$0xff] }
 0x217   :  { %1897 = vmatpush.msrb.mxu3 %v1735_v21 }
 0x218   :  { %v1599_v51 = vmul.f32 %v1591_v36, %v1586_v43 }
 0x219   :  { %1898 = vmatpush.msrb.mxu3 %v1733_v26  ;;  %v2004_v26 = vld [vmem:[%s2866_s12 + $0x40] sm:$0xff] }
 0x21a   :  { %v1612_v55 = vadd.f32 %v1604_v44, %v1599_v51 }
 0x21b   :  { %1899 = vmatpush.msrb.mxu3 %v1731_v15 }
 0x21c   :  { %v1616_v52 = vmax.f32 %v1612_v55, 0.0  ;;  %v1717_v55 = vld [vmem:[#allocation9 + $0x318] sm:$0xff] }
 0x21d   :  { %1900 = vmatpush.msrb.mxu3 %v1729_v32  ;;  %v2003_v32 = vld [vmem:[%s2866_s12 + $0x38] sm:$0xff] }
 0x21e   :  { %1808 = vmatmul.f32.vlgmr.msra.gmra.mxu2 %v1616_v52 }
 0x21f   :  { %1901 = vmatpush.msrb.mxu3 %v1727_v34 }
 0x221   :  { %1902 = vmatpush.msrb.mxu3 %v1725_v35 }
 0x223   :  { %1903 = vmatpush.msrb.mxu3 %v1723_v37 }
 0x225   :  { %1904 = vmatpush.msrb.mxu3 %v1721_v48  ;;  %v2001_v48 = vld [vmem:[%s2866_s12 + $0x28] sm:$0xff] }
 0x226   :  { %1888 = vmatmul.f32.vlgmr.msrb.gmra.mxu2 %v1616_v52 }
 0x227   :  { %1905 = vmatpush.msrb.mxu3 %v1719_v42 }
 0x228   :  { %v1383_v63 = vpop.f32.mrf.mxu0 }
 0x229   :  { %v1384_v2 = vadd.f32 %v1383_v63, %v1364_v62  ;;  %1906 = vmatpush.msrb.mxu3 %v1717_v55  ;;  %v1746_v63 = vld [vmem:[#allocation10] sm:$0x3] }
 0x22a   :  { %v1748_v3 = vperm.slane %v1746_v63, 0 }
 0x22b   :  { %1907 = vmatpush.msrb.mxu3 %v1715_v39 }
 0x22f   :  { %v1403_v4 = vpop.f32.mrf.mxu1 }
 0x230   :  { %v1404_v5 = vadd.f32 %v1403_v4, %v1384_v2  ;;  %v1423_v46 = vpop.f32.mrf.mxu2  ;;  %v2011_v2 = vld [vmem:[%s2866_s12 + $0x78] sm:$0xff] }
 0x231   :  { %2032 = vmatpush.msra.mxu0 %v2011_v2 }
 0x232   :  { %v1424_v7 = vadd.f32 %v1423_v46, %v1404_v5 }
 0x233   :  { %2033 = vmatpush.msra.mxu0 %v2010_v61 }
 0x234   :  { %v1443_v14 = vpop.f32.mrf.mxu3 }
 0x235   :  { %v2720_v54 = vadd.f32 %v1443_v14, %v1424_v7  ;;  %2034 = vmatpush.msra.mxu0 %v2009_v8  ;;  %v2027_v14 = vld [vmem:[%s2866_s12 + $0xf8] sm:$0xff] }
 0x236   :  { %2052 = vmatpush.msra.mxu1 %v2027_v14 }
 0x237   :  { %v1470_v60 = vsel %vm1448_vm9, %v2720_v54, 0.0  ;;  %v1491_v41 = vmul.f32 %v2720_v54, %v2720_v54  ;;  %2035 = vmatpush.msra.mxu0 %v2008_v6 }
 0x238   :  { %v1471_v11 = vrot.slane %v1470_v60, 4 }
 0x239   :  { %v1513_v13 = vsel %vm1448_vm9, %v1491_v41, 0.0  ;;  %2036 = vmatpush.msra.mxu0 %v2007_v50  ;;  %v2026_v41 = vld [vmem:[%s2866_s12 + $0xf0] sm:$0xff]  ;;  %v2016_v50 = vld [vmem:[%s2866_s12 + $0xa0] sm:$0xff] }
 0x23a   :  { %v1472_v17 = vadd.f32 %v1471_v11, %v1470_v60  ;;  %v1514_v18 = vrot.slane %v1513_v13, 4  ;;  %v2006_v60 = vld [vmem:[%s2866_s12 + $0x50] sm:$0xff]  ;;  %2053 = vmatpush.msra.mxu1 %v2026_v41 }
 0x23b   :  { %2037 = vmatpush.msra.mxu0 %v2006_v60  ;;  %v2015_v60 = vld [vmem:[%s2866_s12 + $0x98] sm:$0xff] }
 0x23c   :  { %v1473_v1 = vrot.slane %v1472_v17, 2  ;;  %v1515_v23 = vadd.f32 %v1514_v18, %v1513_v13 }
 0x23d   :  { %2038 = vmatpush.msra.mxu0 %v2005_v47  ;;  %v2014_v47 = vld [vmem:[%s2866_s12 + $0x90] sm:$0xff] }
 0x23e   :  { %v1474_v27 = vadd.f32 %v1473_v1, %v1472_v17  ;;  %v1516_v28 = vrot.slane %v1515_v23, 2  ;;  %v2025_v17 = vld [vmem:[%s2866_s12 + $0xe8] sm:$0xff] }
 0x23f   :  { %2054 = vmatpush.msra.mxu1 %v2025_v17  ;;  %2039 = vmatpush.msra.mxu0 %v2004_v26  ;;  %v2012_v26 = vld [vmem:[%s2866_s12 + $0x80] sm:$0xff] }
 0x240   :  { %v1475_v29 = vrot.slane %v1474_v27, 1  ;;  %v1517_v31 = vadd.f32 %v1516_v28, %v1515_v23 }
 0x241   :  { %2040 = vmatpush.msra.mxu0 %v2003_v32 }
 0x242   :  { %v1476_v16 = vadd.f32 %v1475_v29, %v1474_v27  ;;  %v1518_v33 = vrot.slane %v1517_v31, 1  ;;  %v2024_v27 = vld [vmem:[%s2866_s12 + $0xe0] sm:$0xff] }
 0x243   :  { %2055 = vmatpush.msra.mxu1 %v2024_v27 }
 0x244   :  { %v1487_v12 = vmul.f32 %v2630_v38, %v1476_v16  ;;  %v1519_v36 = vadd.f32 %v1518_v33, %v1517_v31  ;;  %v2023_v16 = vld [vmem:[%s2866_s12 + $0xd8] sm:$0xff] }
 0x245   :  { %2056 = vmatpush.msra.mxu1 %v2023_v16 }
 0x246   :  { %v1523_v19 = vmul.f32 %v1519_v36, %v2630_v38  ;;  %v1527_v43 = vmul.f32 %v1487_v12, %v1487_v12  ;;  %v1539_v57 = vsub.f32 %v2720_v54, %v1487_v12  ;;  %v1749_v54 = vperm.slane %v1746_v63, 1  ;;  %v2002_v12 = vld [vmem:[%s2866_s12 + $0x30] sm:$0xff] }
 0x247   :  { %v2022_v36 = vld [vmem:[%s2866_s12 + $0xd0] sm:$0xff]  ;;  %2041 = vmatpush.msra.mxu0 %v2002_v12 }
 0x248   :  { %v1531_v44 = vsub.f32 %v1523_v19, %v1527_v43  ;;  %2057 = vmatpush.msra.mxu1 %v2022_v36 }
 0x249   :  { %2042 = vmatpush.msra.mxu0 %v2001_v48 }
 0x24a   :  { %v1535_v51 = vmax.f32 %v1531_v44, 0.0  ;;  %v1769_v4 = vpop.f32.mrf.mxu0 }
 0x24b   :  { %v1770_v46 = vadd.f32 %v1769_v4, %v1748_v3  ;;  %v1997_v4 = vld [vmem:[%s2866_s12 + $0x8] sm:$0xff] }
 0x24c   :  { %v1543_v53 = vadd.f32 1e-05, %v1535_v51  ;;  %v2021_v51 = vld [vmem:[%s2866_s12 + $0xc8] sm:$0xff] }
 0x24d   :  { %2058 = vmatpush.msra.mxu1 %v2021_v51 }
 0x24e   :  { %2125 = vrsqrt.f32 %v1543_v53  ;;  %vm1580_vm5 = vweird.f32 %v1543_v53 }
 0x254   :  { %v2126_v52 = vpop.eup %2125 }
 0x255   :  { %v1575_v20 = vmul.f32 %v2126_v52, %v1543_v53  ;;  %vm1581_vm4 = vweird.f32 %v2126_v52 }
 0x256   :  { %vm1582_vm6 = vmor %vm1580_vm5, %vm1581_vm4 }
 0x257   :  { %v1576_v25 = vmul.f32 %v2126_v52, %v1575_v20  ;;  %v1789_v24 = vpop.f32.mrf.mxu1  ;;  %v2020_v20 = vld [vmem:[%s2866_s12 + $0xc0] sm:$0xff] }
 0x258   :  { %v1790_v7 = vadd.f32 %v1789_v24, %v1770_v46  ;;  %2059 = vmatpush.msra.mxu1 %v2020_v20  ;;  %v2017_v24 = vld [vmem:[%s2866_s12 + $0xa8] sm:$0xff] }
 0x259   :  { %v1577_v40 = vmul.f32 0.5, %v1576_v25 }
 0x25b   :  { %v1578_v45 = vsub.f32 1.5, %v1577_v40 }
 0x25d   :  { %v1579_v56 = vmul.f32 %v2126_v52, %v1578_v45 }
 0x25f   :  { %v1583_v59 = vsel %vm1582_vm6, %v2126_v52, %v1579_v56  ;;  %v2000_v52 = vld [vmem:[%s2866_s12 + $0x20] sm:$0xff] }
 0x260   :  { %v1587_v49 = vmul.f32 %v1583_v59, %v1539_v57  ;;  %2043 = vmatpush.msra.mxu0 %v2000_v52  ;;  %v1999_v57 = vld [vmem:[%s2866_s12 + $0x18] sm:$0xff] }
 0x262   :  { %v1600_v0 = vmul.f32 %v1592_v58, %v1587_v49  ;;  %v2019_v58 = vld [vmem:[%s2866_s12 + $0xb8] sm:$0xff]  ;;  %2044 = vmatpush.msra.mxu0 %v1999_v57 }
 0x263   :  { %2060 = vmatpush.msra.mxu1 %v2019_v58 }
 0x264   :  { %v1613_v62 = vadd.f32 %v1605_v22, %v1600_v0 }
 0x266   :  { %v1617_v30 = vmax.f32 %v1613_v62, 0.0  ;;  %v1998_v62 = vld [vmem:[%s2866_s12 + $0x10] sm:$0xff] }
 0x267   :  { %2045 = vmatpush.msra.mxu0 %v1998_v62 }
 0x268   :  { %1828 = vmatmul.f32.vlgmr.msra.gmra.mxu3 %v1617_v30 }
 0x269   :  { %2046 = vmatpush.msra.mxu0 %v1997_v4 }
 0x26a   :  { %v1849_v10 = vpop.f32.mrf.mxu0 }
 0x26b   :  { %v1850_v21 = vadd.f32 %v1849_v10, %v1749_v54 }
 0x26f   :  { %v1869_v18 = vpop.f32.mrf.mxu1 }
 0x270   :  { %1908 = vmatmul.f32.vlgmr.msrb.gmra.mxu3 %v1617_v30  ;;  %v1870_v29 = vadd.f32 %v1869_v18, %v1850_v21  ;;  %v2018_v30 = vld [vmem:[%s2866_s12 + $0xb0] sm:$0xff]  ;;  %v2013_v21 = vld [vmem:[%s2866_s12 + $0x88] sm:$0xff] }
 0x271   :  { %2061 = vmatpush.msra.mxu1 %v2018_v30 }
 0x273   :  { %2062 = vmatpush.msra.mxu1 %v2017_v24 }
 0x275   :  { %2063 = vmatpush.msra.mxu1 %v2016_v50 }
 0x277   :  { %2064 = vmatpush.msra.mxu1 %v2015_v60 }
 0x279   :  { %2065 = vmatpush.msra.mxu1 %v2014_v47 }
 0x27b   :  { %2066 = vmatpush.msra.mxu1 %v2013_v21 }
 0x27d   :  { %2067 = vmatpush.msra.mxu1 %v2012_v26 }
 0x2a1   :  { %v1809_v5 = vpop.f32.mrf.mxu2 }
 0x2a2   :  { %v1810_v9 = vadd.f32 %v1809_v5, %v1790_v7  ;;  %v1996_v7 = vld [vmem:[%s2866_s12] sm:$0xff] }
 0x2a3   :  { %2047 = vmatpush.msra.mxu0 %v1996_v7 }
 0x2a9   :  { %v1889_v28 = vpop.f32.mrf.mxu2 }
 0x2aa   :  { %v1890_v35 = vadd.f32 %v1889_v28, %v1870_v29 }
 0x2eb   :  { %v1829_v11 = vpop.f32.mrf.mxu3 }
 0x2ec   :  { %v2756_v13 = vadd.f32 %v1829_v11, %v1810_v9 }
 0x2ee   :  { %v1914_v1 = vsel %vm1448_vm9, %v2756_v13, 0.0  ;;  %v1930_v23 = vmul.f32 %v2756_v13, %v2756_v13 }
 0x2ef   :  { %v1915_v15 = vrot.slane %v1914_v1, 4 }
 0x2f0   :  { %v1932_v31 = vsel %vm1448_vm9, %v1930_v23, 0.0 }
 0x2f1   :  { %v1916_v33 = vadd.f32 %v1915_v15, %v1914_v1  ;;  %v1933_v34 = vrot.slane %v1932_v31, 4 }
 0x2f3   :  { %v1917_v37 = vrot.slane %v1916_v33, 2  ;;  %v1934_v19 = vadd.f32 %v1933_v34, %v1932_v31  ;;  %v1909_v43 = vpop.f32.mrf.mxu3  ;;  %v1912_v34 = vld [vmem:[#allocation12] sm:$0x3] }
 0x2f4   :  { %v2787_v44 = vadd.f32 %v1909_v43, %v1890_v35 }
 0x2f5   :  { %v1918_v42 = vadd.f32 %v1917_v37, %v1916_v33  ;;  %v1935_v53 = vrot.slane %v1934_v19, 2  ;;  %v1913_v37 = vld [vmem:[#allocation13] sm:$0x3] }
 0x2f6   :  { %v1921_v55 = vsel %vm1448_vm9, %v2787_v44, 0.0  ;;  %v1931_v39 = vmul.f32 %v2787_v44, %v2787_v44  ;;  %v1989_v58 = vperm.slane %v1913_v37, 1 }
 0x2f7   :  { %v1919_v25 = vrot.slane %v1918_v42, 1  ;;  %v1936_v40 = vadd.f32 %v1935_v53, %v1934_v19  ;;  %v1922_v45 = vrot.slane %v1921_v55, 4  ;;  %v1988_v53 = vperm.slane %v1913_v37, 0 }
 0x2f8   :  { %v1939_v56 = vsel %vm1448_vm9, %v1931_v39, 0.0 }
 0x2f9   :  { %v1920_v59 = vadd.f32 %v1919_v25, %v1918_v42  ;;  %v1937_v49 = vrot.slane %v1936_v40, 1  ;;  %v1923_v22 = vadd.f32 %v1922_v45, %v1921_v55  ;;  %v1940_v0 = vrot.slane %v1939_v56, 4 }
 0x2fb   :  { %v1928_v63 = vmul.f32 %v1920_v59, %v2630_v38  ;;  %v1938_v2 = vadd.f32 %v1937_v49, %v1936_v40  ;;  %v1924_v3 = vrot.slane %v1923_v22, 2  ;;  %v1941_v61 = vadd.f32 %v1940_v0, %v1939_v56 }
 0x2fc   :  { %v1982_v56 = vperm.slane %v1912_v34, 1  ;;  %v2072_v0 = vlaneseq }
 0x2fd   :  { %v1946_v8 = vmul.f32 %v1938_v2, %v2630_v38  ;;  %v1948_v5 = vmul.f32 %v1928_v63, %v1928_v63  ;;  %v1925_v46 = vadd.f32 %v1924_v3, %v1923_v22  ;;  %v1942_v6 = vrot.slane %v1941_v61, 2 }
 0x2fe   :  { %v1954_v19 = vsub.f32 %v2756_v13, %v1928_v63  ;;  %v2073_v62 = vand.u32 127, %v2072_v0  ;;  %v2116_v63 = vld [vmem:[%s2867_s13] ss:$0 sm:$0xff] }
 0x2ff   :  { %v1950_v14 = vsub.f32 %v1946_v8, %v1948_v5  ;;  %v1926_v54 = vrot.slane %v1925_v46, 1  ;;  %v1943_v9 = vadd.f32 %v1942_v6, %v1941_v61  ;;  %v2348_v61 = vmov 0.0  }
 0x300   :  { %v2079_v30 = vand.u32 3, %v2073_v62  ;;  %vm2074_vm13 = vcmp.lt.s32.totalorder %v2073_v62, 9 }
 0x301   :  { %v1952_v41 = vmax.f32 %v1950_v14, 0.0  ;;  %v1927_v10 = vadd.f32 %v1926_v54, %v1925_v46  ;;  %v1944_v11 = vrot.slane %v1943_v9, 1 }
 0x302   :  { %vm2087_vm14 = vcmp.eq.s32.totalorder %v2079_v30, 0 }
 0x303   :  { %v1956_v17 = vadd.f32 1e-05, %v1952_v41  ;;  %v1929_v18 = vmul.f32 %v1927_v10, %v2630_v38  ;;  %v1945_v1 = vadd.f32 %v1944_v11, %v1943_v9  ;;  %vm2088_vm15 = vmand %vm2074_vm13, %vm2087_vm14 }
 0x304   :  { %v2089_v4 = vsel %vm2088_vm15, 1.0, %v2348_v61 }
 0x305   :  { %2127 = vrsqrt.f32 %v1956_v17  ;;  %v1949_v23 = vmul.f32 %v1929_v18, %v1929_v18  ;;  %v1947_v27 = vmul.f32 %v1945_v1, %v2630_v38  ;;  %vm1964_vm8 = vweird.f32 %v1956_v17 }
 0x306   :  { %v1981_v38 = vperm.slane %v1912_v34, 0  ;;  %v1955_v45 = vsub.f32 %v2787_v44, %v1929_v18 }
 0x307   :  { %v1951_v28 = vsub.f32 %v1947_v27, %v1949_v23 }
 0x309   :  { %v1953_v15 = vmax.f32 %v1951_v28, 0.0 }
 0x30b   :  { %v2128_v29 = vpop.eup %2127  ;;  %v1957_v32 = vadd.f32 1e-05, %v1953_v15 }
 0x30c   :  { %v1959_v31 = vmul.f32 %v2128_v29, %v1956_v17  ;;  %vm1965_vm7 = vweird.f32 %v2128_v29 }
 0x30d   :  { %2129 = vrsqrt.f32 %v1957_v32  ;;  %vm1966_vm9 = vmor %vm1964_vm8, %vm1965_vm7  ;;  %vm1974_vm11 = vweird.f32 %v1957_v32 }
 0x30e   :  { %v1960_v16 = vmul.f32 %v2128_v29, %v1959_v31 }
 0x310   :  { %v1961_v33 = vmul.f32 0.5, %v1960_v16 }
 0x312   :  { %v1962_v35 = vsub.f32 1.5, %v1961_v33 }
 0x313   :  { %v2130_v12 = vpop.eup %2129 }
 0x314   :  { %v1963_v36 = vmul.f32 %v2128_v29, %v1962_v35  ;;  %v1969_v43 = vmul.f32 %v2130_v12, %v1957_v32  ;;  %vm1975_vm10 = vweird.f32 %v2130_v12 }
 0x315   :  { %vm1976_vm12 = vmor %vm1974_vm11, %vm1975_vm10 }
 0x316   :  { %v1967_v48 = vsel %vm1966_vm9, %v2128_v29, %v1963_v36  ;;  %v1970_v42 = vmul.f32 %v2130_v12, %v1969_v43 }
 0x317   :  { %v1978_v51 = vmul.f32 %v1967_v48, %v1954_v19 }
 0x318   :  { %v1971_v39 = vmul.f32 0.5, %v1970_v42 }
 0x319   :  { %v1985_v55 = vmul.f32 %v1981_v38, %v1978_v51 }
 0x31a   :  { %v1972_v52 = vsub.f32 1.5, %v1971_v39 }
 0x31b   :  { %v1992_v20 = vadd.f32 %v1988_v53, %v1985_v55 }
 0x31c   :  { %v1973_v25 = vmul.f32 %v2130_v12, %v1972_v52 }
 0x31d   :  { %v1994_v40 = vmax.f32 %v1992_v20, 0.0 }
 0x31e   :  { %v1977_v13 = vsel %vm1976_vm12, %v2130_v12, %v1973_v25 }
 0x31f   :  { %2048 = vmatmul.f32.vlgmr.msra.gmra.mxu0 %v1994_v40  ;;  %v1979_v57 = vmul.f32 %v1977_v13, %v1955_v45 }
 0x321   :  { %v1986_v59 = vmul.f32 %v1982_v56, %v1979_v57 }
 0x323   :  { %v1993_v49 = vadd.f32 %v1989_v58, %v1986_v59 }
 0x325   :  { %v1995_v22 = vmax.f32 %v1993_v49, 0.0 }
 0x327   :  { %2068 = vmatmul.f32.vlgmr.msra.gmra.mxu1 %v1995_v22 }
 0x39c   :  { %v2049_v44 = vpop.f32.mrf.mxu0 }
 0x39d   :  { %v2050_v2 = vadd.f32 %v2116_v63, %v2049_v44 }
 0x3a4   :  { %v2069_v3 = vpop.f32.mrf.mxu1 }
 0x3a5   :  { %v2070_v24 = vadd.f32 %v2069_v3, %v2050_v2 }
 0x3a7   :  { %v2090_v8 = vadd.f32 %v2089_v4, %v2070_v24 }
 0x3a9   :  { %2091 = vst [vmem:[%s2868_s14] sm:$0x3] %v2090_v8 }
 0x3aa   :  { %2096 = vsyncpa [#allocation3], 1 }
 0x3ab   :  { %2097 = vsyncpa [#allocation5], 1 }
 0x3ac   :  { %2098 = vsyncpa [#allocation8], 1 }
 0x3ad   :  { %2099 = vsyncpa [#allocation11], 1 }
 0x3ae   :  { %2100 = vsyncpa [#allocation14], 1 }

</bundles_post_ra>
